<compile_context>
chip_gen: v7x
topology: tpu7x:2x2x1
jax: 0.10.0
libtpu: 0.0.40
codegen_flags: <defaults>
</compile_context>

<pallas_src>
import functools
import math

import jax
import jax.numpy as jnp
from jax import lax
from jax.experimental import pallas as pl
from jax.experimental.pallas import tpu as pltpu

EPS = 1e-5  # torch.nn.LayerNorm default


# ----------------------------- in-kernel math ------------------------------

def _layernorm(x, g, b):
    mu = jnp.mean(x, axis=-1, keepdims=True)
    var = jnp.mean(jnp.square(x - mu), axis=-1, keepdims=True)
    return (x - mu) * lax.rsqrt(var + EPS) * g + b


def _silu(x):
    return x * jax.nn.sigmoid(x)


def _softplus(x):
    # matches torch.nn.functional.softplus (beta=1, threshold=20)
    return jnp.where(x > 20.0, x, jnp.log1p(jnp.exp(jnp.minimum(x, 20.0))))


def _erf(x):
    # Abramowitz & Stegun 7.1.26 polynomial, |err| <= 1.5e-7 (f32-exact).
    a1, a2, a3, a4, a5 = 0.254829592, -0.284496736, 1.421413741, -1.453152027, 1.061405429
    p = 0.3275911
    s = jnp.where(x >= 0.0, 1.0, -1.0)
    ax = jnp.abs(x)
    t = 1.0 / (1.0 + p * ax)
    poly = ((((a5 * t + a4) * t + a3) * t + a2) * t + a1) * t
    return s * (1.0 - poly * jnp.exp(-ax * ax))


def _gelu_exact(x):
    # nn.GELU() default is exact (erf-based) GELU.
    return 0.5 * x * (1.0 + _erf(x * (1.0 / math.sqrt(2.0))))


# ------------------------------ fused kernel --------------------------------

def fused_qnet_kernel(x_ref,
                      in_g_ref, in_b_ref,
                      ln_g_ref, ln_b_ref,
                      w_in_ref, w_conv_ref, b_conv_ref,
                      w_xproj_ref, b_dt_ref,
                      neg_A_T_ref, D_ref, w_out_ref,
                      f_g_ref, f_b_ref,
                      w1_ref, b1_ref, w2_ref, b2_ref, w3_ref, b3_ref,
                      o_ref,
                      *, B, L, d_inner, d_state, d_conv, n_layers):
    BL = B * L
    x = _layernorm(x_ref[...], in_g_ref[...], in_b_ref[...])            # (BL, D)

    for layer in range(n_layers):                                       # static unroll
        residual = x
        xn = _layernorm(x, ln_g_ref[layer], ln_b_ref[layer])

        # in_proj: single lane-dense (D, 2*d_inner) matmul, then x / z split.
        xz = jnp.dot(xn, w_in_ref[layer], preferred_element_type=jnp.float32)
        xb = xz[:, :d_inner]                                             # (BL, d_inner)
        zb = xz[:, d_inner:]

        # Causal depthwise conv1d via static sublane shifts + zero-fill
        # (no MXU, no shift matrices): conv[t] = b + sum_k w[k]*x[t-(d_conv-1-k)],
        # shifts done per batch on the (B, L, d_inner) view so nothing leaks
        # across batch boundaries.
        wconv = w_conv_ref[layer]                                        # (d_conv, d_inner)
        xb3 = xb.reshape(B, L, d_inner)
        conv = xb3 * wconv[d_conv - 1:d_conv, :]                         # off=0 tap
        for k in range(d_conv - 1):
            off = d_conv - 1 - k
            shifted = jnp.concatenate(
                [jnp.zeros((B, off, d_inner), jnp.float32),
                 xb3[:, :L - off, :]], axis=1)
            conv = conv + shifted * wconv[k:k + 1, :]
        xs3 = _silu(conv + b_conv_ref[layer])                            # (B, L, d_inner)
        xs = xs3.reshape(BL, d_inner)

        # x_proj with dt_proj pre-folded into the weight: one matmul emitting
        # [dt_pre | B | C] of width d_inner + 2*d_state.
        x_dbl = jnp.dot(xs, w_xproj_ref[layer],
                        preferred_element_type=jnp.float32)              # (BL, d_inner+2N)
        dt = _softplus(x_dbl[:, :d_inner] + b_dt_ref[layer])             # (BL, d_inner)
        Bp = x_dbl[:, d_inner:d_inner + d_state]                         # (BL, N)
        Cp = x_dbl[:, d_inner + d_state:]                                # (BL, N)

        # Hoist every EUP exp / VPU product out of the serial recurrence so the
        # per-step critical path is mul + add + reduce only.
        AT = neg_A_T_ref[layer]                                          # (N, d_inner), = -exp(A_log)^T
        dt3 = dt.reshape(B, L, d_inner)
        dtxs3 = (dt * xs).reshape(B, L, d_inner)
        Bp3 = Bp.reshape(B, L, d_state)
        Cp3 = Cp.reshape(B, L, d_state)
        dA_all = jnp.exp(dt3[:, :, None, :] * AT[None, None])            # (B, L, N, d_inner)
        dBx_all = dtxs3[:, :, None, :] * Bp3[:, :, :, None]              # (B, L, N, d_inner)
        Cc_all = Cp3[:, :, :, None]                                      # (B, L, N, 1)

        # Sequential selective scan; state keeps d_inner on lanes. Per-step y
        # values stay vreg-resident (no scratch stores), stacked once after.
        # TODO(synk): at large B fold batch into lanes ((d_state, B*d_inner)
        # state) and/or use a log-depth scan; below noise at B=2, L=8.
        h = jnp.zeros((B, d_state, d_inner), jnp.float32)
        ys = []
        for l in range(L):                                               # static unroll (L=8)
            h = dA_all[:, l] * h + dBx_all[:, l]
            ys.append(jnp.sum(h * Cc_all[:, l], axis=1))                 # (B, d_inner)
        y = jnp.stack(ys, axis=1).reshape(BL, d_inner) + D_ref[layer] * xs
        y = y * _silu(zb)                                                # gate
        x = jnp.dot(y, w_out_ref[layer],
                    preferred_element_type=jnp.float32) + residual       # (BL, D)

    # Head: final norm, mean-pool over L, fc1 -> GELU -> fc2 -> GELU -> fc_out.
    xf = _layernorm(x, f_g_ref[...], f_b_ref[...])
    pooled = jnp.mean(xf.reshape(B, L, xf.shape[-1]), axis=1)            # (B, D)
    h1 = _gelu_exact(jnp.dot(pooled, w1_ref[...],
                             preferred_element_type=jnp.float32) + b1_ref[...])
    # TODO(synk): nn.Dropout is identity at inference time; no stochastic drop applied.
    h2 = _gelu_exact(jnp.dot(h1, w2_ref[...],
                             preferred_element_type=jnp.float32) + b2_ref[...])
    o_ref[...] = jnp.dot(h2, w3_ref[...],
                         preferred_element_type=jnp.float32) + b3_ref[...]


# -------------------------------- wrapper ------------------------------------

def ssm_qnetwork_forward(x, params, cfg):
    B, L, D = x.shape
    d_inner, d_state = cfg["d_inner"], cfg["d_state"]
    d_conv, dt_rank = cfg["d_conv"], cfg["dt_rank"]
    n_layers = cfg["ssm_layers"]
    action_size = params["w3"].shape[1]

    # Pure parameter transforms hoisted out of the kernel (tiny, fused by XLA):
    #   * A = -exp(A_log), pre-transposed to (n_layers, d_state, d_inner)
    #   * dt_proj folded into x_proj: [Wxp_dt @ Wdt | Wxp_B | Wxp_C]
    neg_A_T = -jnp.exp(jnp.swapaxes(params["A_log"], -1, -2))
    w_dt_folded = jnp.einsum("ldr,lrm->ldm",
                             params["w_xproj"][..., :dt_rank], params["w_dt"])
    w_xproj_folded = jnp.concatenate(
        [w_dt_folded, params["w_xproj"][..., dt_rank:]], axis=-1)

    kernel = functools.partial(
        fused_qnet_kernel, B=B, L=L, d_inner=d_inner, d_state=d_state,
        d_conv=d_conv, n_layers=n_layers)

    # Single fused, gridless pallas_call: all weights/activations (<100 KB) fit
    # VMEM on every TPU generation (incl. v7x's 64 MiB), so no grid, BlockSpec
    # tiling or pipelining knobs are needed.  Only (B, action_size) is written.
    # TODO(synk): for large serving batch on v7x, add a leading "parallel" grid
    # axis over batch so both TensorCores are used.
    return pl.pallas_call(
        kernel,
        out_shape=jax.ShapeDtypeStruct((B, action_size), jnp.float32),
    )(x.reshape(B * L, D),
      params["in_g"], params["in_b"],
      params["ln_g"], params["ln_b"],
      params["w_in"], params["w_conv"], params["b_conv"],
      w_xproj_folded, params["b_dt"],
      neg_A_T, params["D"], params["w_out"],
      params["f_g"], params["f_b"],
      params["w1"], params["b1"], params["w2"], params["b2"],
      params["w3"], params["b3"])


# ------------------------- deterministic parameters --------------------------

def init_params(key, cfg):
    D, d_inner, N = cfg["d_model"], cfg["d_inner"], cfg["d_state"]
    d_conv, dt_rank = cfg["d_conv"], cfg["dt_rank"]
    n_layers, A_sz = cfg["ssm_layers"], cfg["action_size"]

    def dense(k, shape, scale):
        return jax.random.normal(k, shape, jnp.float32) * scale

    keys = iter(jax.random.split(key, 7 * n_layers + 3))

    layers = []
    for _ in range(n_layers):
        layers.append(dict(
            ln_g=jnp.ones((1, D), jnp.float32),
            ln_b=jnp.zeros((1, D), jnp.float32),
            # in_proj: single Linear(D, 2*d_inner, bias=False); columns [x | z]
            w_in=dense(next(keys), (D, 2 * d_inner), 1.0 / math.sqrt(D)),
            w_conv=dense(next(keys), (d_conv, d_inner), 1.0 / math.sqrt(d_conv)),
            b_conv=dense(next(keys), (1, d_inner), 0.02),
            # x_proj: single Linear(d_inner, dt_rank + 2N, bias=False); [dt | B | C]
            w_xproj=dense(next(keys), (d_inner, dt_rank + 2 * N),
                          1.0 / math.sqrt(d_inner)),
            w_dt=dense(next(keys), (dt_rank, d_inner), 1.0 / math.sqrt(dt_rank)),
            b_dt=dense(next(keys), (1, d_inner), 0.02),
            A_log=jnp.log(jnp.tile(jnp.arange(1, N + 1, dtype=jnp.float32)[None, :],
                                   (d_inner, 1))),
            D=jnp.ones((1, d_inner), jnp.float32),
            w_out=dense(next(keys), (d_inner, D), 1.0 / math.sqrt(d_inner)),
        ))
    stacked = {k: jnp.stack([lp[k] for lp in layers]) for k in layers[0]}

    return dict(
        in_g=jnp.ones((1, D), jnp.float32),
        in_b=jnp.zeros((1, D), jnp.float32),
        **stacked,
        f_g=jnp.ones((1, D), jnp.float32),
        f_b=jnp.zeros((1, D), jnp.float32),
        w1=dense(next(keys), (D, D // 2), 1.0 / math.sqrt(D)),
        b1=jnp.zeros((1, D // 2), jnp.float32),
        w2=dense(next(keys), (D // 2, D // 4), 1.0 / math.sqrt(D // 2)),
        b2=jnp.zeros((1, D // 4), jnp.float32),
        w3=dense(next(keys), (D // 4, A_sz), 1.0 / math.sqrt(D // 4)),
        b3=jnp.zeros((1, A_sz), jnp.float32),
    )


# ------------------------- pure-JAX reference model --------------------------

def forward_ref(x, params, cfg):
    d_inner, N, d_conv = cfg["d_inner"], cfg["d_state"], cfg["d_conv"]
    dt_rank, n_layers = cfg["dt_rank"], cfg["ssm_layers"]
    hp = lax.Precision.HIGHEST

    def ln(x, g, b):
        mu = jnp.mean(x, axis=-1, keepdims=True)
        var = jnp.mean(jnp.square(x - mu), axis=-1, keepdims=True)
        return (x - mu) / jnp.sqrt(var + EPS) * g + b

    x = ln(x, params["in_g"], params["in_b"])
    B, L, _ = x.shape
    for i in range(n_layers):
        residual = x
        xn = ln(x, params["ln_g"][i], params["ln_b"][i])
        xz = jnp.dot(xn, params["w_in"][i], precision=hp)
        xb, zb = xz[..., :d_inner], xz[..., d_inner:]
        xb_pad = jnp.pad(xb, ((0, 0), (d_conv - 1, 0), (0, 0)))
        conv = jnp.zeros_like(xb)
        for k in range(d_conv):
            conv = conv + xb_pad[:, k:k + L, :] * params["w_conv"][i][k][None, None, :]
        conv = conv + params["b_conv"][i]
        xs = jax.nn.silu(conv)
        x_dbl = jnp.dot(xs, params["w_xproj"][i], precision=hp)
        dt_low = x_dbl[..., :dt_rank]
        Bp = x_dbl[..., dt_rank:dt_rank + N]
        Cp = x_dbl[..., dt_rank + N:]
        dt = _softplus(jnp.dot(dt_low, params["w_dt"][i], precision=hp)
                       + params["b_dt"][i])
        A = -jnp.exp(params["A_log"][i])
        dA = jnp.exp(dt[..., None] * A[None, None])
        dBx = dt[..., None] * Bp[:, :, None, :] * xs[..., None]
        h = jnp.zeros((B, d_inner, N), jnp.float32)
        ys = []
        for l in range(L):
            h = dA[:, l] * h + dBx[:, l]
            ys.append(jnp.einsum("bdn,bn->bd", h, Cp[:, l], precision=hp))
        y = jnp.stack(ys, axis=1) + params["D"][i] * xs
        y = y * jax.nn.silu(zb)
        x = jnp.dot(y, params["w_out"][i], precision=hp) + residual

    x = ln(x, params["f_g"], params["f_b"])
    pooled = jnp.mean(x, axis=1)
    h1 = jax.nn.gelu(jnp.dot(pooled, params["w1"], precision=hp) + params["b1"],
                     approximate=False)
    h2 = jax.nn.gelu(jnp.dot(h1, params["w2"], precision=hp) + params["b2"],
                     approximate=False)
    return jnp.dot(h2, params["w3"], precision=hp) + params["b3"]


# ----------------------------------- main ------------------------------------

if __name__ == "__main__":
    cfg = dict(d_model=32, sequence_len=8, d_state=16, d_conv=4, expand=2,
               dt_rank=2, ssm_layers=2, action_size=4)
    cfg["d_inner"] = cfg["expand"] * cfg["d_model"]

    key = jax.random.PRNGKey(0)
    pkey, xkey = jax.random.split(key)
    params = init_params(pkey, cfg)

    batch = 2
    x = jax.random.normal(xkey, (batch, cfg["sequence_len"], cfg["d_model"]),
                          jnp.float32)

    fwd = jax.jit(functools.partial(ssm_qnetwork_forward, cfg=cfg))
    q = jax.block_until_ready(fwd(x, params))
    q_ref = forward_ref(x, params, cfg)

    assert q.shape == (batch, cfg["action_size"])
    assert bool(jnp.all(jnp.isfinite(q))), "non-finite Q values"
    max_err = float(jnp.max(jnp.abs(q - q_ref)))
    assert max_err < 5e-3, f"mismatch vs reference: {max_err}"
    print("KERNEL_OK")
</pallas_src>

<mosaic_0001>
module attributes {stable_mosaic.version = 11 : i64} {
  func.func @fused_qnet_kernel(%arg0: memref<16x32xf32, #tpu.memory_space<vmem>>, %arg1: memref<1x32xf32, #tpu.memory_space<vmem>>, %arg2: memref<1x32xf32, #tpu.memory_space<vmem>>, %arg3: memref<2x1x32xf32, #tpu.memory_space<vmem>>, %arg4: memref<2x1x32xf32, #tpu.memory_space<vmem>>, %arg5: memref<2x32x128xf32, #tpu.memory_space<vmem>>, %arg6: memref<2x4x64xf32, #tpu.memory_space<vmem>>, %arg7: memref<2x1x64xf32, #tpu.memory_space<vmem>>, %arg8: memref<2x64x96xf32, #tpu.memory_space<vmem>>, %arg9: memref<2x1x64xf32, #tpu.memory_space<vmem>>, %arg10: memref<2x16x64xf32, #tpu.memory_space<vmem>>, %arg11: memref<2x1x64xf32, #tpu.memory_space<vmem>>, %arg12: memref<2x64x32xf32, #tpu.memory_space<vmem>>, %arg13: memref<1x32xf32, #tpu.memory_space<vmem>>, %arg14: memref<1x32xf32, #tpu.memory_space<vmem>>, %arg15: memref<32x16xf32, #tpu.memory_space<vmem>>, %arg16: memref<1x16xf32, #tpu.memory_space<vmem>>, %arg17: memref<16x8xf32, #tpu.memory_space<vmem>>, %arg18: memref<1x8xf32, #tpu.memory_space<vmem>>, %arg19: memref<8x4xf32, #tpu.memory_space<vmem>>, %arg20: memref<1x4xf32, #tpu.memory_space<vmem>>, %arg21: memref<2x4xf32, #tpu.memory_space<vmem>>) attributes {dimension_semantics = [], scalar_prefetch = 0 : i64, scratch_operands = 0 : i64, tpu.core_type = #tpu.core_type<tc>} {
    %c0 = arith.constant 0 : index
    %c0_0 = arith.constant 0 : index
    %0 = vector.load %arg0[%c0, %c0_0] : memref<16x32xf32, #tpu.memory_space<vmem>>, vector<16x32xf32>
    %c0_1 = arith.constant 0 : index
    %c0_2 = arith.constant 0 : index
    %1 = vector.load %arg1[%c0_1, %c0_2] : memref<1x32xf32, #tpu.memory_space<vmem>>, vector<1x32xf32>
    %c0_3 = arith.constant 0 : index
    %c0_4 = arith.constant 0 : index
    %2 = vector.load %arg2[%c0_3, %c0_4] : memref<1x32xf32, #tpu.memory_space<vmem>>, vector<1x32xf32>
    %cst = arith.constant dense<0.000000e+00> : vector<16xf32>
    %3 = vector.multi_reduction <add>, %0, %cst [1] : vector<16x32xf32> to vector<16xf32>
    %4 = vector.shape_cast %3 : vector<16xf32> to vector<16x1xf32>
    %cst_5 = arith.constant 3.200000e+01 : f32
    %5 = vector.broadcast %cst_5 : f32 to vector<16x1xf32>
    %6 = arith.divf %4, %5 : vector<16x1xf32>
    %7 = vector.broadcast %6 : vector<16x1xf32> to vector<16x32xf32>
    %8 = arith.subf %0, %7 : vector<16x32xf32>
    %9 = arith.mulf %8, %8 : vector<16x32xf32>
    %cst_6 = arith.constant dense<0.000000e+00> : vector<16xf32>
    %10 = vector.multi_reduction <add>, %9, %cst_6 [1] : vector<16x32xf32> to vector<16xf32>
    %11 = vector.shape_cast %10 : vector<16xf32> to vector<16x1xf32>
    %cst_7 = arith.constant 3.200000e+01 : f32
    %12 = vector.broadcast %cst_7 : f32 to vector<16x1xf32>
    %13 = arith.divf %11, %12 : vector<16x1xf32>
    %14 = vector.broadcast %6 : vector<16x1xf32> to vector<16x32xf32>
    %15 = arith.subf %0, %14 : vector<16x32xf32>
    %cst_8 = arith.constant 9.99999974E-6 : f32
    %16 = vector.broadcast %cst_8 : f32 to vector<16x1xf32>
    %17 = arith.addf %13, %16 : vector<16x1xf32>
    %18 = math.rsqrt %17 : vector<16x1xf32>
    %19 = vector.broadcast %18 : vector<16x1xf32> to vector<16x32xf32>
    %20 = arith.mulf %15, %19 : vector<16x32xf32>
    %21 = vector.broadcast %1 : vector<1x32xf32> to vector<16x32xf32>
    %22 = arith.mulf %20, %21 : vector<16x32xf32>
    %23 = vector.broadcast %2 : vector<1x32xf32> to vector<16x32xf32>
    %24 = arith.addf %22, %23 : vector<16x32xf32>
    %c0_9 = arith.constant 0 : index
    %c0_10 = arith.constant 0 : index
    %c0_11 = arith.constant 0 : index
    %25 = vector.load %arg3[%c0_9, %c0_10, %c0_11] : memref<2x1x32xf32, #tpu.memory_space<vmem>>, vector<1x1x32xf32>
    %26 = vector.shape_cast %25 : vector<1x1x32xf32> to vector<1x32xf32>
    %c0_12 = arith.constant 0 : index
    %c0_13 = arith.constant 0 : index
    %c0_14 = arith.constant 0 : index
    %27 = vector.load %arg4[%c0_12, %c0_13, %c0_14] : memref<2x1x32xf32, #tpu.memory_space<vmem>>, vector<1x1x32xf32>
    %28 = vector.shape_cast %27 : vector<1x1x32xf32> to vector<1x32xf32>
    %cst_15 = arith.constant dense<0.000000e+00> : vector<16xf32>
    %29 = vector.multi_reduction <add>, %24, %cst_15 [1] : vector<16x32xf32> to vector<16xf32>
    %30 = vector.shape_cast %29 : vector<16xf32> to vector<16x1xf32>
    %cst_16 = arith.constant 3.200000e+01 : f32
    %31 = vector.broadcast %cst_16 : f32 to vector<16x1xf32>
    %32 = arith.divf %30, %31 : vector<16x1xf32>
    %33 = vector.broadcast %32 : vector<16x1xf32> to vector<16x32xf32>
    %34 = arith.subf %24, %33 : vector<16x32xf32>
    %35 = arith.mulf %34, %34 : vector<16x32xf32>
    %cst_17 = arith.constant dense<0.000000e+00> : vector<16xf32>
    %36 = vector.multi_reduction <add>, %35, %cst_17 [1] : vector<16x32xf32> to vector<16xf32>
    %37 = vector.shape_cast %36 : vector<16xf32> to vector<16x1xf32>
    %cst_18 = arith.constant 3.200000e+01 : f32
    %38 = vector.broadcast %cst_18 : f32 to vector<16x1xf32>
    %39 = arith.divf %37, %38 : vector<16x1xf32>
    %40 = vector.broadcast %32 : vector<16x1xf32> to vector<16x32xf32>
    %41 = arith.subf %24, %40 : vector<16x32xf32>
    %cst_19 = arith.constant 9.99999974E-6 : f32
    %42 = vector.broadcast %cst_19 : f32 to vector<16x1xf32>
    %43 = arith.addf %39, %42 : vector<16x1xf32>
    %44 = math.rsqrt %43 : vector<16x1xf32>
    %45 = vector.broadcast %44 : vector<16x1xf32> to vector<16x32xf32>
    %46 = arith.mulf %41, %45 : vector<16x32xf32>
    %47 = vector.broadcast %26 : vector<1x32xf32> to vector<16x32xf32>
    %48 = arith.mulf %46, %47 : vector<16x32xf32>
    %49 = vector.broadcast %28 : vector<1x32xf32> to vector<16x32xf32>
    %50 = arith.addf %48, %49 : vector<16x32xf32>
    %c0_20 = arith.constant 0 : index
    %c0_21 = arith.constant 0 : index
    %c0_22 = arith.constant 0 : index
    %51 = vector.load %arg5[%c0_20, %c0_21, %c0_22] : memref<2x32x128xf32, #tpu.memory_space<vmem>>, vector<1x32x128xf32>
    %52 = vector.shape_cast %51 : vector<1x32x128xf32> to vector<32x128xf32>
    %cst_23 = arith.constant dense<0.000000e+00> : vector<16x128xf32>
    %53 = tpu.matmul %50, %52, %cst_23 {dimension_numbers = #tpu.dot_dimension_numbers<[1], [0], [0], [1], [0, 0, 1, 1], [], []>} : vector<16x32xf32>, vector<32x128xf32>, vector<16x128xf32> -> vector<16x128xf32>
    %54 = vector.extract_strided_slice %53 {offsets = [0, 0], sizes = [16, 64], strides = [1, 1]} : vector<16x128xf32> to vector<16x64xf32>
    %55 = vector.extract_strided_slice %53 {offsets = [0, 64], sizes = [16, 64], strides = [1, 1]} : vector<16x128xf32> to vector<16x64xf32>
    %c0_24 = arith.constant 0 : index
    %c0_25 = arith.constant 0 : index
    %c0_26 = arith.constant 0 : index
    %56 = vector.load %arg6[%c0_24, %c0_25, %c0_26] : memref<2x4x64xf32, #tpu.memory_space<vmem>>, vector<1x4x64xf32>
    %57 = vector.shape_cast %56 : vector<1x4x64xf32> to vector<4x64xf32>
    %58 = vector.shape_cast %54 : vector<16x64xf32> to vector<2x8x64xf32>
    %59 = vector.extract_strided_slice %57 {offsets = [3, 0], sizes = [1, 64], strides = [1, 1]} : vector<4x64xf32> to vector<1x64xf32>
    %60 = vector.shape_cast %59 : vector<1x64xf32> to vector<1x1x64xf32>
    %61 = vector.broadcast %60 : vector<1x1x64xf32> to vector<2x8x64xf32>
    %62 = arith.mulf %58, %61 : vector<2x8x64xf32>
    %cst_27 = arith.constant 0.000000e+00 : f32
    %63 = vector.broadcast %cst_27 : f32 to vector<2x3x64xf32>
    %64 = vector.extract_strided_slice %58 {offsets = [0, 0, 0], sizes = [2, 5, 64], strides = [1, 1, 1]} : vector<2x8x64xf32> to vector<2x5x64xf32>
    %65 = tpu.concatenate %63, %64 in 1 : vector<2x3x64xf32>, vector<2x5x64xf32> -> vector<2x8x64xf32>
    %66 = vector.extract_strided_slice %57 {offsets = [0, 0], sizes = [1, 64], strides = [1, 1]} : vector<4x64xf32> to vector<1x64xf32>
    %67 = vector.shape_cast %66 : vector<1x64xf32> to vector<1x1x64xf32>
    %68 = vector.broadcast %67 : vector<1x1x64xf32> to vector<2x8x64xf32>
    %69 = arith.mulf %65, %68 : vector<2x8x64xf32>
    %70 = arith.addf %62, %69 : vector<2x8x64xf32>
    %cst_28 = arith.constant 0.000000e+00 : f32
    %71 = vector.broadcast %cst_28 : f32 to vector<2x2x64xf32>
    %72 = vector.extract_strided_slice %58 {offsets = [0, 0, 0], sizes = [2, 6, 64], strides = [1, 1, 1]} : vector<2x8x64xf32> to vector<2x6x64xf32>
    %73 = tpu.concatenate %71, %72 in 1 : vector<2x2x64xf32>, vector<2x6x64xf32> -> vector<2x8x64xf32>
    %74 = vector.extract_strided_slice %57 {offsets = [1, 0], sizes = [1, 64], strides = [1, 1]} : vector<4x64xf32> to vector<1x64xf32>
    %75 = vector.shape_cast %74 : vector<1x64xf32> to vector<1x1x64xf32>
    %76 = vector.broadcast %75 : vector<1x1x64xf32> to vector<2x8x64xf32>
    %77 = arith.mulf %73, %76 : vector<2x8x64xf32>
    %78 = arith.addf %70, %77 : vector<2x8x64xf32>
    %cst_29 = arith.constant 0.000000e+00 : f32
    %79 = vector.broadcast %cst_29 : f32 to vector<2x1x64xf32>
    %80 = vector.extract_strided_slice %58 {offsets = [0, 0, 0], sizes = [2, 7, 64], strides = [1, 1, 1]} : vector<2x8x64xf32> to vector<2x7x64xf32>
    %81 = tpu.concatenate %79, %80 in 1 : vector<2x1x64xf32>, vector<2x7x64xf32> -> vector<2x8x64xf32>
    %82 = vector.extract_strided_slice %57 {offsets = [2, 0], sizes = [1, 64], strides = [1, 1]} : vector<4x64xf32> to vector<1x64xf32>
    %83 = vector.shape_cast %82 : vector<1x64xf32> to vector<1x1x64xf32>
    %84 = vector.broadcast %83 : vector<1x1x64xf32> to vector<2x8x64xf32>
    %85 = arith.mulf %81, %84 : vector<2x8x64xf32>
    %86 = arith.addf %78, %85 : vector<2x8x64xf32>
    %c0_30 = arith.constant 0 : index
    %c0_31 = arith.constant 0 : index
    %c0_32 = arith.constant 0 : index
    %87 = vector.load %arg7[%c0_30, %c0_31, %c0_32] : memref<2x1x64xf32, #tpu.memory_space<vmem>>, vector<1x1x64xf32>
    %88 = vector.shape_cast %87 : vector<1x1x64xf32> to vector<1x64xf32>
    %89 = vector.shape_cast %88 : vector<1x64xf32> to vector<1x1x64xf32>
    %90 = vector.broadcast %89 : vector<1x1x64xf32> to vector<2x8x64xf32>
    %91 = arith.addf %86, %90 : vector<2x8x64xf32>
    %92 = arith.negf %91 : vector<2x8x64xf32>
    %93 = math.exp %92 : vector<2x8x64xf32>
    %cst_33 = arith.constant 1.000000e+00 : f32
    %94 = vector.broadcast %cst_33 : f32 to vector<2x8x64xf32>
    %95 = arith.addf %94, %93 : vector<2x8x64xf32>
    %96 = arith.divf %94, %95 : vector<2x8x64xf32>
    %97 = arith.mulf %91, %96 : vector<2x8x64xf32>
    %98 = vector.shape_cast %97 : vector<2x8x64xf32> to vector<16x64xf32>
    %c0_34 = arith.constant 0 : index
    %c0_35 = arith.constant 0 : index
    %c0_36 = arith.constant 0 : index
    %99 = vector.load %arg8[%c0_34, %c0_35, %c0_36] : memref<2x64x96xf32, #tpu.memory_space<vmem>>, vector<1x64x96xf32>
    %100 = vector.shape_cast %99 : vector<1x64x96xf32> to vector<64x96xf32>
    %cst_37 = arith.constant dense<0.000000e+00> : vector<16x96xf32>
    %101 = tpu.matmul %98, %100, %cst_37 {dimension_numbers = #tpu.dot_dimension_numbers<[1], [0], [0], [1], [0, 0, 1, 1], [], []>} : vector<16x64xf32>, vector<64x96xf32>, vector<16x96xf32> -> vector<16x96xf32>
    %102 = vector.extract_strided_slice %101 {offsets = [0, 0], sizes = [16, 64], strides = [1, 1]} : vector<16x96xf32> to vector<16x64xf32>
    %c0_38 = arith.constant 0 : index
    %c0_39 = arith.constant 0 : index
    %c0_40 = arith.constant 0 : index
    %103 = vector.load %arg9[%c0_38, %c0_39, %c0_40] : memref<2x1x64xf32, #tpu.memory_space<vmem>>, vector<1x1x64xf32>
    %104 = vector.shape_cast %103 : vector<1x1x64xf32> to vector<1x64xf32>
    %105 = vector.broadcast %104 : vector<1x64xf32> to vector<16x64xf32>
    %106 = arith.addf %102, %105 : vector<16x64xf32>
    %cst_41 = arith.constant 2.000000e+01 : f32
    %107 = vector.broadcast %cst_41 : f32 to vector<16x64xf32>
    %108 = arith.cmpf ogt, %106, %107 : vector<16x64xf32>
    %cst_42 = arith.constant 2.000000e+01 : f32
    %109 = vector.broadcast %cst_42 : f32 to vector<16x64xf32>
    %110 = arith.minimumf %106, %109 : vector<16x64xf32>
    %111 = math.exp %110 : vector<16x64xf32>
    %112 = math.log1p %111 : vector<16x64xf32>
    %113 = arith.select %108, %106, %112 : vector<16x64xi1>, vector<16x64xf32>
    %114 = vector.extract_strided_slice %101 {offsets = [0, 64], sizes = [16, 16], strides = [1, 1]} : vector<16x96xf32> to vector<16x16xf32>
    %115 = vector.extract_strided_slice %101 {offsets = [0, 80], sizes = [16, 16], strides = [1, 1]} : vector<16x96xf32> to vector<16x16xf32>
    %c0_43 = arith.constant 0 : index
    %c0_44 = arith.constant 0 : index
    %c0_45 = arith.constant 0 : index
    %116 = vector.load %arg10[%c0_43, %c0_44, %c0_45] : memref<2x16x64xf32, #tpu.memory_space<vmem>>, vector<1x16x64xf32>
    %117 = vector.shape_cast %116 : vector<1x16x64xf32> to vector<16x64xf32>
    %118 = vector.shape_cast %113 : vector<16x64xf32> to vector<2x8x64xf32>
    %119 = arith.mulf %113, %98 : vector<16x64xf32>
    %120 = vector.shape_cast %119 : vector<16x64xf32> to vector<2x8x64xf32>
    %121 = vector.shape_cast %114 : vector<16x16xf32> to vector<2x8x16xf32>
    %122 = vector.shape_cast %115 : vector<16x16xf32> to vector<2x8x16xf32>
    %123 = vector.shape_cast %118 : vector<2x8x64xf32> to vector<2x8x1x64xf32>
    %124 = vector.shape_cast %117 : vector<16x64xf32> to vector<1x1x16x64xf32>
    %125 = vector.broadcast %123 : vector<2x8x1x64xf32> to vector<2x8x16x64xf32>
    %126 = vector.broadcast %124 : vector<1x1x16x64xf32> to vector<2x8x16x64xf32>
    %127 = arith.mulf %125, %126 : vector<2x8x16x64xf32>
    %128 = math.exp %127 : vector<2x8x16x64xf32>
    %129 = vector.shape_cast %120 : vector<2x8x64xf32> to vector<2x8x1x64xf32>
    %130 = vector.shape_cast %121 : vector<2x8x16xf32> to vector<2x8x16x1xf32>
    %131 = vector.broadcast %129 : vector<2x8x1x64xf32> to vector<2x8x16x64xf32>
    %132 = vector.broadcast %130 : vector<2x8x16x1xf32> to vector<2x8x16x64xf32>
    %133 = arith.mulf %131, %132 : vector<2x8x16x64xf32>
    %134 = vector.shape_cast %122 : vector<2x8x16xf32> to vector<2x8x16x1xf32>
    %cst_46 = arith.constant 0.000000e+00 : f32
    %135 = vector.broadcast %cst_46 : f32 to vector<2x16x64xf32>
    %136 = vector.extract_strided_slice %128 {offsets = [0, 0, 0, 0], sizes = [2, 1, 16, 64], strides = [1, 1, 1, 1]} : vector<2x8x16x64xf32> to vector<2x1x16x64xf32>
    %137 = vector.shape_cast %136 : vector<2x1x16x64xf32> to vector<2x16x64xf32>
    %138 = arith.mulf %137, %135 : vector<2x16x64xf32>
    %139 = vector.extract_strided_slice %133 {offsets = [0, 0, 0, 0], sizes = [2, 1, 16, 64], strides = [1, 1, 1, 1]} : vector<2x8x16x64xf32> to vector<2x1x16x64xf32>
    %140 = vector.shape_cast %139 : vector<2x1x16x64xf32> to vector<2x16x64xf32>
    %141 = arith.addf %138, %140 : vector<2x16x64xf32>
    %142 = vector.extract_strided_slice %134 {offsets = [0, 0, 0, 0], sizes = [2, 1, 16, 1], strides = [1, 1, 1, 1]} : vector<2x8x16x1xf32> to vector<2x1x16x1xf32>
    %143 = vector.shape_cast %142 : vector<2x1x16x1xf32> to vector<2x16x1xf32>
    %144 = vector.broadcast %143 : vector<2x16x1xf32> to vector<2x16x64xf32>
    %145 = arith.mulf %141, %144 : vector<2x16x64xf32>
    %cst_47 = arith.constant dense<0.000000e+00> : vector<2x64xf32>
    %146 = vector.multi_reduction <add>, %145, %cst_47 [1] : vector<2x16x64xf32> to vector<2x64xf32>
    %147 = vector.extract_strided_slice %128 {offsets = [0, 1, 0, 0], sizes = [2, 1, 16, 64], strides = [1, 1, 1, 1]} : vector<2x8x16x64xf32> to vector<2x1x16x64xf32>
    %148 = vector.shape_cast %147 : vector<2x1x16x64xf32> to vector<2x16x64xf32>
    %149 = arith.mulf %148, %141 : vector<2x16x64xf32>
    %150 = vector.extract_strided_slice %133 {offsets = [0, 1, 0, 0], sizes = [2, 1, 16, 64], strides = [1, 1, 1, 1]} : vector<2x8x16x64xf32> to vector<2x1x16x64xf32>
    %151 = vector.shape_cast %150 : vector<2x1x16x64xf32> to vector<2x16x64xf32>
    %152 = arith.addf %149, %151 : vector<2x16x64xf32>
    %153 = vector.extract_strided_slice %134 {offsets = [0, 1, 0, 0], sizes = [2, 1, 16, 1], strides = [1, 1, 1, 1]} : vector<2x8x16x1xf32> to vector<2x1x16x1xf32>
    %154 = vector.shape_cast %153 : vector<2x1x16x1xf32> to vector<2x16x1xf32>
    %155 = vector.broadcast %154 : vector<2x16x1xf32> to vector<2x16x64xf32>
    %156 = arith.mulf %152, %155 : vector<2x16x64xf32>
    %cst_48 = arith.constant dense<0.000000e+00> : vector<2x64xf32>
    %157 = vector.multi_reduction <add>, %156, %cst_48 [1] : vector<2x16x64xf32> to vector<2x64xf32>
    %158 = vector.extract_strided_slice %128 {offsets = [0, 2, 0, 0], sizes = [2, 1, 16, 64], strides = [1, 1, 1, 1]} : vector<2x8x16x64xf32> to vector<2x1x16x64xf32>
    %159 = vector.shape_cast %158 : vector<2x1x16x64xf32> to vector<2x16x64xf32>
    %160 = arith.mulf %159, %152 : vector<2x16x64xf32>
    %161 = vector.extract_strided_slice %133 {offsets = [0, 2, 0, 0], sizes = [2, 1, 16, 64], strides = [1, 1, 1, 1]} : vector<2x8x16x64xf32> to vector<2x1x16x64xf32>
    %162 = vector.shape_cast %161 : vector<2x1x16x64xf32> to vector<2x16x64xf32>
    %163 = arith.addf %160, %162 : vector<2x16x64xf32>
    %164 = vector.extract_strided_slice %134 {offsets = [0, 2, 0, 0], sizes = [2, 1, 16, 1], strides = [1, 1, 1, 1]} : vector<2x8x16x1xf32> to vector<2x1x16x1xf32>
    %165 = vector.shape_cast %164 : vector<2x1x16x1xf32> to vector<2x16x1xf32>
    %166 = vector.broadcast %165 : vector<2x16x1xf32> to vector<2x16x64xf32>
    %167 = arith.mulf %163, %166 : vector<2x16x64xf32>
    %cst_49 = arith.constant dense<0.000000e+00> : vector<2x64xf32>
    %168 = vector.multi_reduction <add>, %167, %cst_49 [1] : vector<2x16x64xf32> to vector<2x64xf32>
    %169 = vector.extract_strided_slice %128 {offsets = [0, 3, 0, 0], sizes = [2, 1, 16, 64], strides = [1, 1, 1, 1]} : vector<2x8x16x64xf32> to vector<2x1x16x64xf32>
    %170 = vector.shape_cast %169 : vector<2x1x16x64xf32> to vector<2x16x64xf32>
    %171 = arith.mulf %170, %163 : vector<2x16x64xf32>
    %172 = vector.extract_strided_slice %133 {offsets = [0, 3, 0, 0], sizes = [2, 1, 16, 64], strides = [1, 1, 1, 1]} : vector<2x8x16x64xf32> to vector<2x1x16x64xf32>
    %173 = vector.shape_cast %172 : vector<2x1x16x64xf32> to vector<2x16x64xf32>
    %174 = arith.addf %171, %173 : vector<2x16x64xf32>
    %175 = vector.extract_strided_slice %134 {offsets = [0, 3, 0, 0], sizes = [2, 1, 16, 1], strides = [1, 1, 1, 1]} : vector<2x8x16x1xf32> to vector<2x1x16x1xf32>
    %176 = vector.shape_cast %175 : vector<2x1x16x1xf32> to vector<2x16x1xf32>
    %177 = vector.broadcast %176 : vector<2x16x1xf32> to vector<2x16x64xf32>
    %178 = arith.mulf %174, %177 : vector<2x16x64xf32>
    %cst_50 = arith.constant dense<0.000000e+00> : vector<2x64xf32>
    %179 = vector.multi_reduction <add>, %178, %cst_50 [1] : vector<2x16x64xf32> to vector<2x64xf32>
    %180 = vector.extract_strided_slice %128 {offsets = [0, 4, 0, 0], sizes = [2, 1, 16, 64], strides = [1, 1, 1, 1]} : vector<2x8x16x64xf32> to vector<2x1x16x64xf32>
    %181 = vector.shape_cast %180 : vector<2x1x16x64xf32> to vector<2x16x64xf32>
    %182 = arith.mulf %181, %174 : vector<2x16x64xf32>
    %183 = vector.extract_strided_slice %133 {offsets = [0, 4, 0, 0], sizes = [2, 1, 16, 64], strides = [1, 1, 1, 1]} : vector<2x8x16x64xf32> to vector<2x1x16x64xf32>
    %184 = vector.shape_cast %183 : vector<2x1x16x64xf32> to vector<2x16x64xf32>
    %185 = arith.addf %182, %184 : vector<2x16x64xf32>
    %186 = vector.extract_strided_slice %134 {offsets = [0, 4, 0, 0], sizes = [2, 1, 16, 1], strides = [1, 1, 1, 1]} : vector<2x8x16x1xf32> to vector<2x1x16x1xf32>
    %187 = vector.shape_cast %186 : vector<2x1x16x1xf32> to vector<2x16x1xf32>
    %188 = vector.broadcast %187 : vector<2x16x1xf32> to vector<2x16x64xf32>
    %189 = arith.mulf %185, %188 : vector<2x16x64xf32>
    %cst_51 = arith.constant dense<0.000000e+00> : vector<2x64xf32>
    %190 = vector.multi_reduction <add>, %189, %cst_51 [1] : vector<2x16x64xf32> to vector<2x64xf32>
    %191 = vector.extract_strided_slice %128 {offsets = [0, 5, 0, 0], sizes = [2, 1, 16, 64], strides = [1, 1, 1, 1]} : vector<2x8x16x64xf32> to vector<2x1x16x64xf32>
    %192 = vector.shape_cast %191 : vector<2x1x16x64xf32> to vector<2x16x64xf32>
    %193 = arith.mulf %192, %185 : vector<2x16x64xf32>
    %194 = vector.extract_strided_slice %133 {offsets = [0, 5, 0, 0], sizes = [2, 1, 16, 64], strides = [1, 1, 1, 1]} : vector<2x8x16x64xf32> to vector<2x1x16x64xf32>
    %195 = vector.shape_cast %194 : vector<2x1x16x64xf32> to vector<2x16x64xf32>
    %196 = arith.addf %193, %195 : vector<2x16x64xf32>
    %197 = vector.extract_strided_slice %134 {offsets = [0, 5, 0, 0], sizes = [2, 1, 16, 1], strides = [1, 1, 1, 1]} : vector<2x8x16x1xf32> to vector<2x1x16x1xf32>
    %198 = vector.shape_cast %197 : vector<2x1x16x1xf32> to vector<2x16x1xf32>
    %199 = vector.broadcast %198 : vector<2x16x1xf32> to vector<2x16x64xf32>
    %200 = arith.mulf %196, %199 : vector<2x16x64xf32>
    %cst_52 = arith.constant dense<0.000000e+00> : vector<2x64xf32>
    %201 = vector.multi_reduction <add>, %200, %cst_52 [1] : vector<2x16x64xf32> to vector<2x64xf32>
    %202 = vector.extract_strided_slice %128 {offsets = [0, 6, 0, 0], sizes = [2, 1, 16, 64], strides = [1, 1, 1, 1]} : vector<2x8x16x64xf32> to vector<2x1x16x64xf32>
    %203 = vector.shape_cast %202 : vector<2x1x16x64xf32> to vector<2x16x64xf32>
    %204 = arith.mulf %203, %196 : vector<2x16x64xf32>
    %205 = vector.extract_strided_slice %133 {offsets = [0, 6, 0, 0], sizes = [2, 1, 16, 64], strides = [1, 1, 1, 1]} : vector<2x8x16x64xf32> to vector<2x1x16x64xf32>
    %206 = vector.shape_cast %205 : vector<2x1x16x64xf32> to vector<2x16x64xf32>
    %207 = arith.addf %204, %206 : vector<2x16x64xf32>
    %208 = vector.extract_strided_slice %134 {offsets = [0, 6, 0, 0], sizes = [2, 1, 16, 1], strides = [1, 1, 1, 1]} : vector<2x8x16x1xf32> to vector<2x1x16x1xf32>
    %209 = vector.shape_cast %208 : vector<2x1x16x1xf32> to vector<2x16x1xf32>
    %210 = vector.broadcast %209 : vector<2x16x1xf32> to vector<2x16x64xf32>
    %211 = arith.mulf %207, %210 : vector<2x16x64xf32>
    %cst_53 = arith.constant dense<0.000000e+00> : vector<2x64xf32>
    %212 = vector.multi_reduction <add>, %211, %cst_53 [1] : vector<2x16x64xf32> to vector<2x64xf32>
    %213 = vector.extract_strided_slice %128 {offsets = [0, 7, 0, 0], sizes = [2, 1, 16, 64], strides = [1, 1, 1, 1]} : vector<2x8x16x64xf32> to vector<2x1x16x64xf32>
    %214 = vector.shape_cast %213 : vector<2x1x16x64xf32> to vector<2x16x64xf32>
    %215 = arith.mulf %214, %207 : vector<2x16x64xf32>
    %216 = vector.extract_strided_slice %133 {offsets = [0, 7, 0, 0], sizes = [2, 1, 16, 64], strides = [1, 1, 1, 1]} : vector<2x8x16x64xf32> to vector<2x1x16x64xf32>
    %217 = vector.shape_cast %216 : vector<2x1x16x64xf32> to vector<2x16x64xf32>
    %218 = arith.addf %215, %217 : vector<2x16x64xf32>
    %219 = vector.extract_strided_slice %134 {offsets = [0, 7, 0, 0], sizes = [2, 1, 16, 1], strides = [1, 1, 1, 1]} : vector<2x8x16x1xf32> to vector<2x1x16x1xf32>
    %220 = vector.shape_cast %219 : vector<2x1x16x1xf32> to vector<2x16x1xf32>
    %221 = vector.broadcast %220 : vector<2x16x1xf32> to vector<2x16x64xf32>
    %222 = arith.mulf %218, %221 : vector<2x16x64xf32>
    %cst_54 = arith.constant dense<0.000000e+00> : vector<2x64xf32>
    %223 = vector.multi_reduction <add>, %222, %cst_54 [1] : vector<2x16x64xf32> to vector<2x64xf32>
    %224 = vector.shape_cast %146 : vector<2x64xf32> to vector<2x1x64xf32>
    %225 = vector.shape_cast %157 : vector<2x64xf32> to vector<2x1x64xf32>
    %226 = vector.shape_cast %168 : vector<2x64xf32> to vector<2x1x64xf32>
    %227 = vector.shape_cast %179 : vector<2x64xf32> to vector<2x1x64xf32>
    %228 = vector.shape_cast %190 : vector<2x64xf32> to vector<2x1x64xf32>
    %229 = vector.shape_cast %201 : vector<2x64xf32> to vector<2x1x64xf32>
    %230 = vector.shape_cast %212 : vector<2x64xf32> to vector<2x1x64xf32>
    %231 = vector.shape_cast %223 : vector<2x64xf32> to vector<2x1x64xf32>
    %232 = tpu.concatenate %224, %225, %226, %227, %228, %229, %230, %231 in 1 : vector<2x1x64xf32>, vector<2x1x64xf32>, vector<2x1x64xf32>, vector<2x1x64xf32>, vector<2x1x64xf32>, vector<2x1x64xf32>, vector<2x1x64xf32>, vector<2x1x64xf32> -> vector<2x8x64xf32>
    %233 = vector.shape_cast %232 : vector<2x8x64xf32> to vector<16x64xf32>
    %c0_55 = arith.constant 0 : index
    %c0_56 = arith.constant 0 : index
    %c0_57 = arith.constant 0 : index
    %234 = vector.load %arg11[%c0_55, %c0_56, %c0_57] : memref<2x1x64xf32, #tpu.memory_space<vmem>>, vector<1x1x64xf32>
    %235 = vector.shape_cast %234 : vector<1x1x64xf32> to vector<1x64xf32>
    %236 = vector.broadcast %235 : vector<1x64xf32> to vector<16x64xf32>
    %237 = arith.mulf %236, %98 : vector<16x64xf32>
    %238 = arith.addf %233, %237 : vector<16x64xf32>
    %239 = arith.negf %55 : vector<16x64xf32>
    %240 = math.exp %239 : vector<16x64xf32>
    %cst_58 = arith.constant 1.000000e+00 : f32
    %241 = vector.broadcast %cst_58 : f32 to vector<16x64xf32>
    %242 = arith.addf %241, %240 : vector<16x64xf32>
    %243 = arith.divf %241, %242 : vector<16x64xf32>
    %244 = arith.mulf %55, %243 : vector<16x64xf32>
    %245 = arith.mulf %238, %244 : vector<16x64xf32>
    %c0_59 = arith.constant 0 : index
    %c0_60 = arith.constant 0 : index
    %c0_61 = arith.constant 0 : index
    %246 = vector.load %arg12[%c0_59, %c0_60, %c0_61] : memref<2x64x32xf32, #tpu.memory_space<vmem>>, vector<1x64x32xf32>
    %247 = vector.shape_cast %246 : vector<1x64x32xf32> to vector<64x32xf32>
    %cst_62 = arith.constant dense<0.000000e+00> : vector<16x32xf32>
    %248 = tpu.matmul %245, %247, %cst_62 {dimension_numbers = #tpu.dot_dimension_numbers<[1], [0], [0], [1], [0, 0, 1, 1], [], []>} : vector<16x64xf32>, vector<64x32xf32>, vector<16x32xf32> -> vector<16x32xf32>
    %249 = arith.addf %248, %24 : vector<16x32xf32>
    %c1 = arith.constant 1 : index
    %c0_63 = arith.constant 0 : index
    %c0_64 = arith.constant 0 : index
    %250 = vector.load %arg3[%c1, %c0_63, %c0_64] : memref<2x1x32xf32, #tpu.memory_space<vmem>>, vector<1x1x32xf32>
    %251 = vector.shape_cast %250 : vector<1x1x32xf32> to vector<1x32xf32>
    %c1_65 = arith.constant 1 : index
    %c0_66 = arith.constant 0 : index
    %c0_67 = arith.constant 0 : index
    %252 = vector.load %arg4[%c1_65, %c0_66, %c0_67] : memref<2x1x32xf32, #tpu.memory_space<vmem>>, vector<1x1x32xf32>
    %253 = vector.shape_cast %252 : vector<1x1x32xf32> to vector<1x32xf32>
    %cst_68 = arith.constant dense<0.000000e+00> : vector<16xf32>
    %254 = vector.multi_reduction <add>, %249, %cst_68 [1] : vector<16x32xf32> to vector<16xf32>
    %255 = vector.shape_cast %254 : vector<16xf32> to vector<16x1xf32>
    %cst_69 = arith.constant 3.200000e+01 : f32
    %256 = vector.broadcast %cst_69 : f32 to vector<16x1xf32>
    %257 = arith.divf %255, %256 : vector<16x1xf32>
    %258 = vector.broadcast %257 : vector<16x1xf32> to vector<16x32xf32>
    %259 = arith.subf %249, %258 : vector<16x32xf32>
    %260 = arith.mulf %259, %259 : vector<16x32xf32>
    %cst_70 = arith.constant dense<0.000000e+00> : vector<16xf32>
    %261 = vector.multi_reduction <add>, %260, %cst_70 [1] : vector<16x32xf32> to vector<16xf32>
    %262 = vector.shape_cast %261 : vector<16xf32> to vector<16x1xf32>
    %cst_71 = arith.constant 3.200000e+01 : f32
    %263 = vector.broadcast %cst_71 : f32 to vector<16x1xf32>
    %264 = arith.divf %262, %263 : vector<16x1xf32>
    %265 = vector.broadcast %257 : vector<16x1xf32> to vector<16x32xf32>
    %266 = arith.subf %249, %265 : vector<16x32xf32>
    %cst_72 = arith.constant 9.99999974E-6 : f32
    %267 = vector.broadcast %cst_72 : f32 to vector<16x1xf32>
    %268 = arith.addf %264, %267 : vector<16x1xf32>
    %269 = math.rsqrt %268 : vector<16x1xf32>
    %270 = vector.broadcast %269 : vector<16x1xf32> to vector<16x32xf32>
    %271 = arith.mulf %266, %270 : vector<16x32xf32>
    %272 = vector.broadcast %251 : vector<1x32xf32> to vector<16x32xf32>
    %273 = arith.mulf %271, %272 : vector<16x32xf32>
    %274 = vector.broadcast %253 : vector<1x32xf32> to vector<16x32xf32>
    %275 = arith.addf %273, %274 : vector<16x32xf32>
    %c1_73 = arith.constant 1 : index
    %c0_74 = arith.constant 0 : index
    %c0_75 = arith.constant 0 : index
    %276 = vector.load %arg5[%c1_73, %c0_74, %c0_75] : memref<2x32x128xf32, #tpu.memory_space<vmem>>, vector<1x32x128xf32>
    %277 = vector.shape_cast %276 : vector<1x32x128xf32> to vector<32x128xf32>
    %cst_76 = arith.constant dense<0.000000e+00> : vector<16x128xf32>
    %278 = tpu.matmul %275, %277, %cst_76 {dimension_numbers = #tpu.dot_dimension_numbers<[1], [0], [0], [1], [0, 0, 1, 1], [], []>} : vector<16x32xf32>, vector<32x128xf32>, vector<16x128xf32> -> vector<16x128xf32>
    %279 = vector.extract_strided_slice %278 {offsets = [0, 0], sizes = [16, 64], strides = [1, 1]} : vector<16x128xf32> to vector<16x64xf32>
    %280 = vector.extract_strided_slice %278 {offsets = [0, 64], sizes = [16, 64], strides = [1, 1]} : vector<16x128xf32> to vector<16x64xf32>
    %c1_77 = arith.constant 1 : index
    %c0_78 = arith.constant 0 : index
    %c0_79 = arith.constant 0 : index
    %281 = vector.load %arg6[%c1_77, %c0_78, %c0_79] : memref<2x4x64xf32, #tpu.memory_space<vmem>>, vector<1x4x64xf32>
    %282 = vector.shape_cast %281 : vector<1x4x64xf32> to vector<4x64xf32>
    %283 = vector.shape_cast %279 : vector<16x64xf32> to vector<2x8x64xf32>
    %284 = vector.extract_strided_slice %282 {offsets = [3, 0], sizes = [1, 64], strides = [1, 1]} : vector<4x64xf32> to vector<1x64xf32>
    %285 = vector.shape_cast %284 : vector<1x64xf32> to vector<1x1x64xf32>
    %286 = vector.broadcast %285 : vector<1x1x64xf32> to vector<2x8x64xf32>
    %287 = arith.mulf %283, %286 : vector<2x8x64xf32>
    %cst_80 = arith.constant 0.000000e+00 : f32
    %288 = vector.broadcast %cst_80 : f32 to vector<2x3x64xf32>
    %289 = vector.extract_strided_slice %283 {offsets = [0, 0, 0], sizes = [2, 5, 64], strides = [1, 1, 1]} : vector<2x8x64xf32> to vector<2x5x64xf32>
    %290 = tpu.concatenate %288, %289 in 1 : vector<2x3x64xf32>, vector<2x5x64xf32> -> vector<2x8x64xf32>
    %291 = vector.extract_strided_slice %282 {offsets = [0, 0], sizes = [1, 64], strides = [1, 1]} : vector<4x64xf32> to vector<1x64xf32>
    %292 = vector.shape_cast %291 : vector<1x64xf32> to vector<1x1x64xf32>
    %293 = vector.broadcast %292 : vector<1x1x64xf32> to vector<2x8x64xf32>
    %294 = arith.mulf %290, %293 : vector<2x8x64xf32>
    %295 = arith.addf %287, %294 : vector<2x8x64xf32>
    %cst_81 = arith.constant 0.000000e+00 : f32
    %296 = vector.broadcast %cst_81 : f32 to vector<2x2x64xf32>
    %297 = vector.extract_strided_slice %283 {offsets = [0, 0, 0], sizes = [2, 6, 64], strides = [1, 1, 1]} : vector<2x8x64xf32> to vector<2x6x64xf32>
    %298 = tpu.concatenate %296, %297 in 1 : vector<2x2x64xf32>, vector<2x6x64xf32> -> vector<2x8x64xf32>
    %299 = vector.extract_strided_slice %282 {offsets = [1, 0], sizes = [1, 64], strides = [1, 1]} : vector<4x64xf32> to vector<1x64xf32>
    %300 = vector.shape_cast %299 : vector<1x64xf32> to vector<1x1x64xf32>
    %301 = vector.broadcast %300 : vector<1x1x64xf32> to vector<2x8x64xf32>
    %302 = arith.mulf %298, %301 : vector<2x8x64xf32>
    %303 = arith.addf %295, %302 : vector<2x8x64xf32>
    %cst_82 = arith.constant 0.000000e+00 : f32
    %304 = vector.broadcast %cst_82 : f32 to vector<2x1x64xf32>
    %305 = vector.extract_strided_slice %283 {offsets = [0, 0, 0], sizes = [2, 7, 64], strides = [1, 1, 1]} : vector<2x8x64xf32> to vector<2x7x64xf32>
    %306 = tpu.concatenate %304, %305 in 1 : vector<2x1x64xf32>, vector<2x7x64xf32> -> vector<2x8x64xf32>
    %307 = vector.extract_strided_slice %282 {offsets = [2, 0], sizes = [1, 64], strides = [1, 1]} : vector<4x64xf32> to vector<1x64xf32>
    %308 = vector.shape_cast %307 : vector<1x64xf32> to vector<1x1x64xf32>
    %309 = vector.broadcast %308 : vector<1x1x64xf32> to vector<2x8x64xf32>
    %310 = arith.mulf %306, %309 : vector<2x8x64xf32>
    %311 = arith.addf %303, %310 : vector<2x8x64xf32>
    %c1_83 = arith.constant 1 : index
    %c0_84 = arith.constant 0 : index
    %c0_85 = arith.constant 0 : index
    %312 = vector.load %arg7[%c1_83, %c0_84, %c0_85] : memref<2x1x64xf32, #tpu.memory_space<vmem>>, vector<1x1x64xf32>
    %313 = vector.shape_cast %312 : vector<1x1x64xf32> to vector<1x64xf32>
    %314 = vector.shape_cast %313 : vector<1x64xf32> to vector<1x1x64xf32>
    %315 = vector.broadcast %314 : vector<1x1x64xf32> to vector<2x8x64xf32>
    %316 = arith.addf %311, %315 : vector<2x8x64xf32>
    %317 = arith.negf %316 : vector<2x8x64xf32>
    %318 = math.exp %317 : vector<2x8x64xf32>
    %cst_86 = arith.constant 1.000000e+00 : f32
    %319 = vector.broadcast %cst_86 : f32 to vector<2x8x64xf32>
    %320 = arith.addf %319, %318 : vector<2x8x64xf32>
    %321 = arith.divf %319, %320 : vector<2x8x64xf32>
    %322 = arith.mulf %316, %321 : vector<2x8x64xf32>
    %323 = vector.shape_cast %322 : vector<2x8x64xf32> to vector<16x64xf32>
    %c1_87 = arith.constant 1 : index
    %c0_88 = arith.constant 0 : index
    %c0_89 = arith.constant 0 : index
    %324 = vector.load %arg8[%c1_87, %c0_88, %c0_89] : memref<2x64x96xf32, #tpu.memory_space<vmem>>, vector<1x64x96xf32>
    %325 = vector.shape_cast %324 : vector<1x64x96xf32> to vector<64x96xf32>
    %cst_90 = arith.constant dense<0.000000e+00> : vector<16x96xf32>
    %326 = tpu.matmul %323, %325, %cst_90 {dimension_numbers = #tpu.dot_dimension_numbers<[1], [0], [0], [1], [0, 0, 1, 1], [], []>} : vector<16x64xf32>, vector<64x96xf32>, vector<16x96xf32> -> vector<16x96xf32>
    %327 = vector.extract_strided_slice %326 {offsets = [0, 0], sizes = [16, 64], strides = [1, 1]} : vector<16x96xf32> to vector<16x64xf32>
    %c1_91 = arith.constant 1 : index
    %c0_92 = arith.constant 0 : index
    %c0_93 = arith.constant 0 : index
    %328 = vector.load %arg9[%c1_91, %c0_92, %c0_93] : memref<2x1x64xf32, #tpu.memory_space<vmem>>, vector<1x1x64xf32>
    %329 = vector.shape_cast %328 : vector<1x1x64xf32> to vector<1x64xf32>
    %330 = vector.broadcast %329 : vector<1x64xf32> to vector<16x64xf32>
    %331 = arith.addf %327, %330 : vector<16x64xf32>
    %cst_94 = arith.constant 2.000000e+01 : f32
    %332 = vector.broadcast %cst_94 : f32 to vector<16x64xf32>
    %333 = arith.cmpf ogt, %331, %332 : vector<16x64xf32>
    %cst_95 = arith.constant 2.000000e+01 : f32
    %334 = vector.broadcast %cst_95 : f32 to vector<16x64xf32>
    %335 = arith.minimumf %331, %334 : vector<16x64xf32>
    %336 = math.exp %335 : vector<16x64xf32>
    %337 = math.log1p %336 : vector<16x64xf32>
    %338 = arith.select %333, %331, %337 : vector<16x64xi1>, vector<16x64xf32>
    %339 = vector.extract_strided_slice %326 {offsets = [0, 64], sizes = [16, 16], strides = [1, 1]} : vector<16x96xf32> to vector<16x16xf32>
    %340 = vector.extract_strided_slice %326 {offsets = [0, 80], sizes = [16, 16], strides = [1, 1]} : vector<16x96xf32> to vector<16x16xf32>
    %c1_96 = arith.constant 1 : index
    %c0_97 = arith.constant 0 : index
    %c0_98 = arith.constant 0 : index
    %341 = vector.load %arg10[%c1_96, %c0_97, %c0_98] : memref<2x16x64xf32, #tpu.memory_space<vmem>>, vector<1x16x64xf32>
    %342 = vector.shape_cast %341 : vector<1x16x64xf32> to vector<16x64xf32>
    %343 = vector.shape_cast %338 : vector<16x64xf32> to vector<2x8x64xf32>
    %344 = arith.mulf %338, %323 : vector<16x64xf32>
    %345 = vector.shape_cast %344 : vector<16x64xf32> to vector<2x8x64xf32>
    %346 = vector.shape_cast %339 : vector<16x16xf32> to vector<2x8x16xf32>
    %347 = vector.shape_cast %340 : vector<16x16xf32> to vector<2x8x16xf32>
    %348 = vector.shape_cast %343 : vector<2x8x64xf32> to vector<2x8x1x64xf32>
    %349 = vector.shape_cast %342 : vector<16x64xf32> to vector<1x1x16x64xf32>
    %350 = vector.broadcast %348 : vector<2x8x1x64xf32> to vector<2x8x16x64xf32>
    %351 = vector.broadcast %349 : vector<1x1x16x64xf32> to vector<2x8x16x64xf32>
    %352 = arith.mulf %350, %351 : vector<2x8x16x64xf32>
    %353 = math.exp %352 : vector<2x8x16x64xf32>
    %354 = vector.shape_cast %345 : vector<2x8x64xf32> to vector<2x8x1x64xf32>
    %355 = vector.shape_cast %346 : vector<2x8x16xf32> to vector<2x8x16x1xf32>
    %356 = vector.broadcast %354 : vector<2x8x1x64xf32> to vector<2x8x16x64xf32>
    %357 = vector.broadcast %355 : vector<2x8x16x1xf32> to vector<2x8x16x64xf32>
    %358 = arith.mulf %356, %357 : vector<2x8x16x64xf32>
    %359 = vector.shape_cast %347 : vector<2x8x16xf32> to vector<2x8x16x1xf32>
    %cst_99 = arith.constant 0.000000e+00 : f32
    %360 = vector.broadcast %cst_99 : f32 to vector<2x16x64xf32>
    %361 = vector.extract_strided_slice %353 {offsets = [0, 0, 0, 0], sizes = [2, 1, 16, 64], strides = [1, 1, 1, 1]} : vector<2x8x16x64xf32> to vector<2x1x16x64xf32>
    %362 = vector.shape_cast %361 : vector<2x1x16x64xf32> to vector<2x16x64xf32>
    %363 = arith.mulf %362, %360 : vector<2x16x64xf32>
    %364 = vector.extract_strided_slice %358 {offsets = [0, 0, 0, 0], sizes = [2, 1, 16, 64], strides = [1, 1, 1, 1]} : vector<2x8x16x64xf32> to vector<2x1x16x64xf32>
    %365 = vector.shape_cast %364 : vector<2x1x16x64xf32> to vector<2x16x64xf32>
    %366 = arith.addf %363, %365 : vector<2x16x64xf32>
    %367 = vector.extract_strided_slice %359 {offsets = [0, 0, 0, 0], sizes = [2, 1, 16, 1], strides = [1, 1, 1, 1]} : vector<2x8x16x1xf32> to vector<2x1x16x1xf32>
    %368 = vector.shape_cast %367 : vector<2x1x16x1xf32> to vector<2x16x1xf32>
    %369 = vector.broadcast %368 : vector<2x16x1xf32> to vector<2x16x64xf32>
    %370 = arith.mulf %366, %369 : vector<2x16x64xf32>
    %cst_100 = arith.constant dense<0.000000e+00> : vector<2x64xf32>
    %371 = vector.multi_reduction <add>, %370, %cst_100 [1] : vector<2x16x64xf32> to vector<2x64xf32>
    %372 = vector.extract_strided_slice %353 {offsets = [0, 1, 0, 0], sizes = [2, 1, 16, 64], strides = [1, 1, 1, 1]} : vector<2x8x16x64xf32> to vector<2x1x16x64xf32>
    %373 = vector.shape_cast %372 : vector<2x1x16x64xf32> to vector<2x16x64xf32>
    %374 = arith.mulf %373, %366 : vector<2x16x64xf32>
    %375 = vector.extract_strided_slice %358 {offsets = [0, 1, 0, 0], sizes = [2, 1, 16, 64], strides = [1, 1, 1, 1]} : vector<2x8x16x64xf32> to vector<2x1x16x64xf32>
    %376 = vector.shape_cast %375 : vector<2x1x16x64xf32> to vector<2x16x64xf32>
    %377 = arith.addf %374, %376 : vector<2x16x64xf32>
    %378 = vector.extract_strided_slice %359 {offsets = [0, 1, 0, 0], sizes = [2, 1, 16, 1], strides = [1, 1, 1, 1]} : vector<2x8x16x1xf32> to vector<2x1x16x1xf32>
    %379 = vector.shape_cast %378 : vector<2x1x16x1xf32> to vector<2x16x1xf32>
    %380 = vector.broadcast %379 : vector<2x16x1xf32> to vector<2x16x64xf32>
    %381 = arith.mulf %377, %380 : vector<2x16x64xf32>
    %cst_101 = arith.constant dense<0.000000e+00> : vector<2x64xf32>
    %382 = vector.multi_reduction <add>, %381, %cst_101 [1] : vector<2x16x64xf32> to vector<2x64xf32>
    %383 = vector.extract_strided_slice %353 {offsets = [0, 2, 0, 0], sizes = [2, 1, 16, 64], strides = [1, 1, 1, 1]} : vector<2x8x16x64xf32> to vector<2x1x16x64xf32>
    %384 = vector.shape_cast %383 : vector<2x1x16x64xf32> to vector<2x16x64xf32>
    %385 = arith.mulf %384, %377 : vector<2x16x64xf32>
    %386 = vector.extract_strided_slice %358 {offsets = [0, 2, 0, 0], sizes = [2, 1, 16, 64], strides = [1, 1, 1, 1]} : vector<2x8x16x64xf32> to vector<2x1x16x64xf32>
    %387 = vector.shape_cast %386 : vector<2x1x16x64xf32> to vector<2x16x64xf32>
    %388 = arith.addf %385, %387 : vector<2x16x64xf32>
    %389 = vector.extract_strided_slice %359 {offsets = [0, 2, 0, 0], sizes = [2, 1, 16, 1], strides = [1, 1, 1, 1]} : vector<2x8x16x1xf32> to vector<2x1x16x1xf32>
    %390 = vector.shape_cast %389 : vector<2x1x16x1xf32> to vector<2x16x1xf32>
    %391 = vector.broadcast %390 : vector<2x16x1xf32> to vector<2x16x64xf32>
    %392 = arith.mulf %388, %391 : vector<2x16x64xf32>
    %cst_102 = arith.constant dense<0.000000e+00> : vector<2x64xf32>
    %393 = vector.multi_reduction <add>, %392, %cst_102 [1] : vector<2x16x64xf32> to vector<2x64xf32>
    %394 = vector.extract_strided_slice %353 {offsets = [0, 3, 0, 0], sizes = [2, 1, 16, 64], strides = [1, 1, 1, 1]} : vector<2x8x16x64xf32> to vector<2x1x16x64xf32>
    %395 = vector.shape_cast %394 : vector<2x1x16x64xf32> to vector<2x16x64xf32>
    %396 = arith.mulf %395, %388 : vector<2x16x64xf32>
    %397 = vector.extract_strided_slice %358 {offsets = [0, 3, 0, 0], sizes = [2, 1, 16, 64], strides = [1, 1, 1, 1]} : vector<2x8x16x64xf32> to vector<2x1x16x64xf32>
    %398 = vector.shape_cast %397 : vector<2x1x16x64xf32> to vector<2x16x64xf32>
    %399 = arith.addf %396, %398 : vector<2x16x64xf32>
    %400 = vector.extract_strided_slice %359 {offsets = [0, 3, 0, 0], sizes = [2, 1, 16, 1], strides = [1, 1, 1, 1]} : vector<2x8x16x1xf32> to vector<2x1x16x1xf32>
    %401 = vector.shape_cast %400 : vector<2x1x16x1xf32> to vector<2x16x1xf32>
    %402 = vector.broadcast %401 : vector<2x16x1xf32> to vector<2x16x64xf32>
    %403 = arith.mulf %399, %402 : vector<2x16x64xf32>
    %cst_103 = arith.constant dense<0.000000e+00> : vector<2x64xf32>
    %404 = vector.multi_reduction <add>, %403, %cst_103 [1] : vector<2x16x64xf32> to vector<2x64xf32>
    %405 = vector.extract_strided_slice %353 {offsets = [0, 4, 0, 0], sizes = [2, 1, 16, 64], strides = [1, 1, 1, 1]} : vector<2x8x16x64xf32> to vector<2x1x16x64xf32>
    %406 = vector.shape_cast %405 : vector<2x1x16x64xf32> to vector<2x16x64xf32>
    %407 = arith.mulf %406, %399 : vector<2x16x64xf32>
    %408 = vector.extract_strided_slice %358 {offsets = [0, 4, 0, 0], sizes = [2, 1, 16, 64], strides = [1, 1, 1, 1]} : vector<2x8x16x64xf32> to vector<2x1x16x64xf32>
    %409 = vector.shape_cast %408 : vector<2x1x16x64xf32> to vector<2x16x64xf32>
    %410 = arith.addf %407, %409 : vector<2x16x64xf32>
    %411 = vector.extract_strided_slice %359 {offsets = [0, 4, 0, 0], sizes = [2, 1, 16, 1], strides = [1, 1, 1, 1]} : vector<2x8x16x1xf32> to vector<2x1x16x1xf32>
    %412 = vector.shape_cast %411 : vector<2x1x16x1xf32> to vector<2x16x1xf32>
    %413 = vector.broadcast %412 : vector<2x16x1xf32> to vector<2x16x64xf32>
    %414 = arith.mulf %410, %413 : vector<2x16x64xf32>
    %cst_104 = arith.constant dense<0.000000e+00> : vector<2x64xf32>
    %415 = vector.multi_reduction <add>, %414, %cst_104 [1] : vector<2x16x64xf32> to vector<2x64xf32>
    %416 = vector.extract_strided_slice %353 {offsets = [0, 5, 0, 0], sizes = [2, 1, 16, 64], strides = [1, 1, 1, 1]} : vector<2x8x16x64xf32> to vector<2x1x16x64xf32>
    %417 = vector.shape_cast %416 : vector<2x1x16x64xf32> to vector<2x16x64xf32>
    %418 = arith.mulf %417, %410 : vector<2x16x64xf32>
    %419 = vector.extract_strided_slice %358 {offsets = [0, 5, 0, 0], sizes = [2, 1, 16, 64], strides = [1, 1, 1, 1]} : vector<2x8x16x64xf32> to vector<2x1x16x64xf32>
    %420 = vector.shape_cast %419 : vector<2x1x16x64xf32> to vector<2x16x64xf32>
    %421 = arith.addf %418, %420 : vector<2x16x64xf32>
    %422 = vector.extract_strided_slice %359 {offsets = [0, 5, 0, 0], sizes = [2, 1, 16, 1], strides = [1, 1, 1, 1]} : vector<2x8x16x1xf32> to vector<2x1x16x1xf32>
    %423 = vector.shape_cast %422 : vector<2x1x16x1xf32> to vector<2x16x1xf32>
    %424 = vector.broadcast %423 : vector<2x16x1xf32> to vector<2x16x64xf32>
    %425 = arith.mulf %421, %424 : vector<2x16x64xf32>
    %cst_105 = arith.constant dense<0.000000e+00> : vector<2x64xf32>
    %426 = vector.multi_reduction <add>, %425, %cst_105 [1] : vector<2x16x64xf32> to vector<2x64xf32>
    %427 = vector.extract_strided_slice %353 {offsets = [0, 6, 0, 0], sizes = [2, 1, 16, 64], strides = [1, 1, 1, 1]} : vector<2x8x16x64xf32> to vector<2x1x16x64xf32>
    %428 = vector.shape_cast %427 : vector<2x1x16x64xf32> to vector<2x16x64xf32>
    %429 = arith.mulf %428, %421 : vector<2x16x64xf32>
    %430 = vector.extract_strided_slice %358 {offsets = [0, 6, 0, 0], sizes = [2, 1, 16, 64], strides = [1, 1, 1, 1]} : vector<2x8x16x64xf32> to vector<2x1x16x64xf32>
    %431 = vector.shape_cast %430 : vector<2x1x16x64xf32> to vector<2x16x64xf32>
    %432 = arith.addf %429, %431 : vector<2x16x64xf32>
    %433 = vector.extract_strided_slice %359 {offsets = [0, 6, 0, 0], sizes = [2, 1, 16, 1], strides = [1, 1, 1, 1]} : vector<2x8x16x1xf32> to vector<2x1x16x1xf32>
    %434 = vector.shape_cast %433 : vector<2x1x16x1xf32> to vector<2x16x1xf32>
    %435 = vector.broadcast %434 : vector<2x16x1xf32> to vector<2x16x64xf32>
    %436 = arith.mulf %432, %435 : vector<2x16x64xf32>
    %cst_106 = arith.constant dense<0.000000e+00> : vector<2x64xf32>
    %437 = vector.multi_reduction <add>, %436, %cst_106 [1] : vector<2x16x64xf32> to vector<2x64xf32>
    %438 = vector.extract_strided_slice %353 {offsets = [0, 7, 0, 0], sizes = [2, 1, 16, 64], strides = [1, 1, 1, 1]} : vector<2x8x16x64xf32> to vector<2x1x16x64xf32>
    %439 = vector.shape_cast %438 : vector<2x1x16x64xf32> to vector<2x16x64xf32>
    %440 = arith.mulf %439, %432 : vector<2x16x64xf32>
    %441 = vector.extract_strided_slice %358 {offsets = [0, 7, 0, 0], sizes = [2, 1, 16, 64], strides = [1, 1, 1, 1]} : vector<2x8x16x64xf32> to vector<2x1x16x64xf32>
    %442 = vector.shape_cast %441 : vector<2x1x16x64xf32> to vector<2x16x64xf32>
    %443 = arith.addf %440, %442 : vector<2x16x64xf32>
    %444 = vector.extract_strided_slice %359 {offsets = [0, 7, 0, 0], sizes = [2, 1, 16, 1], strides = [1, 1, 1, 1]} : vector<2x8x16x1xf32> to vector<2x1x16x1xf32>
    %445 = vector.shape_cast %444 : vector<2x1x16x1xf32> to vector<2x16x1xf32>
    %446 = vector.broadcast %445 : vector<2x16x1xf32> to vector<2x16x64xf32>
    %447 = arith.mulf %443, %446 : vector<2x16x64xf32>
    %cst_107 = arith.constant dense<0.000000e+00> : vector<2x64xf32>
    %448 = vector.multi_reduction <add>, %447, %cst_107 [1] : vector<2x16x64xf32> to vector<2x64xf32>
    %449 = vector.shape_cast %371 : vector<2x64xf32> to vector<2x1x64xf32>
    %450 = vector.shape_cast %382 : vector<2x64xf32> to vector<2x1x64xf32>
    %451 = vector.shape_cast %393 : vector<2x64xf32> to vector<2x1x64xf32>
    %452 = vector.shape_cast %404 : vector<2x64xf32> to vector<2x1x64xf32>
    %453 = vector.shape_cast %415 : vector<2x64xf32> to vector<2x1x64xf32>
    %454 = vector.shape_cast %426 : vector<2x64xf32> to vector<2x1x64xf32>
    %455 = vector.shape_cast %437 : vector<2x64xf32> to vector<2x1x64xf32>
    %456 = vector.shape_cast %448 : vector<2x64xf32> to vector<2x1x64xf32>
    %457 = tpu.concatenate %449, %450, %451, %452, %453, %454, %455, %456 in 1 : vector<2x1x64xf32>, vector<2x1x64xf32>, vector<2x1x64xf32>, vector<2x1x64xf32>, vector<2x1x64xf32>, vector<2x1x64xf32>, vector<2x1x64xf32>, vector<2x1x64xf32> -> vector<2x8x64xf32>
    %458 = vector.shape_cast %457 : vector<2x8x64xf32> to vector<16x64xf32>
    %c1_108 = arith.constant 1 : index
    %c0_109 = arith.constant 0 : index
    %c0_110 = arith.constant 0 : index
    %459 = vector.load %arg11[%c1_108, %c0_109, %c0_110] : memref<2x1x64xf32, #tpu.memory_space<vmem>>, vector<1x1x64xf32>
    %460 = vector.shape_cast %459 : vector<1x1x64xf32> to vector<1x64xf32>
    %461 = vector.broadcast %460 : vector<1x64xf32> to vector<16x64xf32>
    %462 = arith.mulf %461, %323 : vector<16x64xf32>
    %463 = arith.addf %458, %462 : vector<16x64xf32>
    %464 = arith.negf %280 : vector<16x64xf32>
    %465 = math.exp %464 : vector<16x64xf32>
    %cst_111 = arith.constant 1.000000e+00 : f32
    %466 = vector.broadcast %cst_111 : f32 to vector<16x64xf32>
    %467 = arith.addf %466, %465 : vector<16x64xf32>
    %468 = arith.divf %466, %467 : vector<16x64xf32>
    %469 = arith.mulf %280, %468 : vector<16x64xf32>
    %470 = arith.mulf %463, %469 : vector<16x64xf32>
    %c1_112 = arith.constant 1 : index
    %c0_113 = arith.constant 0 : index
    %c0_114 = arith.constant 0 : index
    %471 = vector.load %arg12[%c1_112, %c0_113, %c0_114] : memref<2x64x32xf32, #tpu.memory_space<vmem>>, vector<1x64x32xf32>
    %472 = vector.shape_cast %471 : vector<1x64x32xf32> to vector<64x32xf32>
    %cst_115 = arith.constant dense<0.000000e+00> : vector<16x32xf32>
    %473 = tpu.matmul %470, %472, %cst_115 {dimension_numbers = #tpu.dot_dimension_numbers<[1], [0], [0], [1], [0, 0, 1, 1], [], []>} : vector<16x64xf32>, vector<64x32xf32>, vector<16x32xf32> -> vector<16x32xf32>
    %474 = arith.addf %473, %249 : vector<16x32xf32>
    %c0_116 = arith.constant 0 : index
    %c0_117 = arith.constant 0 : index
    %475 = vector.load %arg13[%c0_116, %c0_117] : memref<1x32xf32, #tpu.memory_space<vmem>>, vector<1x32xf32>
    %c0_118 = arith.constant 0 : index
    %c0_119 = arith.constant 0 : index
    %476 = vector.load %arg14[%c0_118, %c0_119] : memref<1x32xf32, #tpu.memory_space<vmem>>, vector<1x32xf32>
    %cst_120 = arith.constant dense<0.000000e+00> : vector<16xf32>
    %477 = vector.multi_reduction <add>, %474, %cst_120 [1] : vector<16x32xf32> to vector<16xf32>
    %478 = vector.shape_cast %477 : vector<16xf32> to vector<16x1xf32>
    %cst_121 = arith.constant 3.200000e+01 : f32
    %479 = vector.broadcast %cst_121 : f32 to vector<16x1xf32>
    %480 = arith.divf %478, %479 : vector<16x1xf32>
    %481 = vector.broadcast %480 : vector<16x1xf32> to vector<16x32xf32>
    %482 = arith.subf %474, %481 : vector<16x32xf32>
    %483 = arith.mulf %482, %482 : vector<16x32xf32>
    %cst_122 = arith.constant dense<0.000000e+00> : vector<16xf32>
    %484 = vector.multi_reduction <add>, %483, %cst_122 [1] : vector<16x32xf32> to vector<16xf32>
    %485 = vector.shape_cast %484 : vector<16xf32> to vector<16x1xf32>
    %cst_123 = arith.constant 3.200000e+01 : f32
    %486 = vector.broadcast %cst_123 : f32 to vector<16x1xf32>
    %487 = arith.divf %485, %486 : vector<16x1xf32>
    %488 = vector.broadcast %480 : vector<16x1xf32> to vector<16x32xf32>
    %489 = arith.subf %474, %488 : vector<16x32xf32>
    %cst_124 = arith.constant 9.99999974E-6 : f32
    %490 = vector.broadcast %cst_124 : f32 to vector<16x1xf32>
    %491 = arith.addf %487, %490 : vector<16x1xf32>
    %492 = math.rsqrt %491 : vector<16x1xf32>
    %493 = vector.broadcast %492 : vector<16x1xf32> to vector<16x32xf32>
    %494 = arith.mulf %489, %493 : vector<16x32xf32>
    %495 = vector.broadcast %475 : vector<1x32xf32> to vector<16x32xf32>
    %496 = arith.mulf %494, %495 : vector<16x32xf32>
    %497 = vector.broadcast %476 : vector<1x32xf32> to vector<16x32xf32>
    %498 = arith.addf %496, %497 : vector<16x32xf32>
    %499 = vector.shape_cast %498 : vector<16x32xf32> to vector<2x8x32xf32>
    %cst_125 = arith.constant dense<0.000000e+00> : vector<2x32xf32>
    %500 = vector.multi_reduction <add>, %499, %cst_125 [1] : vector<2x8x32xf32> to vector<2x32xf32>
    %cst_126 = arith.constant 8.000000e+00 : f32
    %501 = vector.broadcast %cst_126 : f32 to vector<2x32xf32>
    %502 = arith.divf %500, %501 : vector<2x32xf32>
    %c0_127 = arith.constant 0 : index
    %c0_128 = arith.constant 0 : index
    %503 = vector.load %arg15[%c0_127, %c0_128] : memref<32x16xf32, #tpu.memory_space<vmem>>, vector<32x16xf32>
    %cst_129 = arith.constant dense<0.000000e+00> : vector<2x16xf32>
    %504 = tpu.matmul %502, %503, %cst_129 {dimension_numbers = #tpu.dot_dimension_numbers<[1], [0], [0], [1], [0, 0, 1, 1], [], []>} : vector<2x32xf32>, vector<32x16xf32>, vector<2x16xf32> -> vector<2x16xf32>
    %c0_130 = arith.constant 0 : index
    %c0_131 = arith.constant 0 : index
    %505 = vector.load %arg16[%c0_130, %c0_131] : memref<1x16xf32, #tpu.memory_space<vmem>>, vector<1x16xf32>
    %506 = vector.broadcast %505 : vector<1x16xf32> to vector<2x16xf32>
    %507 = arith.addf %504, %506 : vector<2x16xf32>
    %cst_132 = arith.constant 5.000000e-01 : f32
    %508 = vector.broadcast %cst_132 : f32 to vector<2x16xf32>
    %509 = arith.mulf %508, %507 : vector<2x16xf32>
    %cst_133 = arith.constant 0.707106769 : f32
    %510 = vector.broadcast %cst_133 : f32 to vector<2x16xf32>
    %511 = arith.mulf %507, %510 : vector<2x16xf32>
    %cst_134 = arith.constant 0.000000e+00 : f32
    %512 = vector.broadcast %cst_134 : f32 to vector<2x16xf32>
    %513 = arith.cmpf oge, %511, %512 : vector<2x16xf32>
    %cst_135 = arith.constant 1.000000e+00 : f32
    %cst_136 = arith.constant -1.000000e+00 : f32
    %514 = vector.broadcast %cst_135 : f32 to vector<2x16xf32>
    %515 = vector.broadcast %cst_136 : f32 to vector<2x16xf32>
    %516 = arith.select %513, %514, %515 : vector<2x16xi1>, vector<2x16xf32>
    %517 = math.absf %511 : vector<2x16xf32>
    %cst_137 = arith.constant 0.327591091 : f32
    %518 = vector.broadcast %cst_137 : f32 to vector<2x16xf32>
    %519 = arith.mulf %518, %517 : vector<2x16xf32>
    %cst_138 = arith.constant 1.000000e+00 : f32
    %520 = vector.broadcast %cst_138 : f32 to vector<2x16xf32>
    %521 = arith.addf %520, %519 : vector<2x16xf32>
    %cst_139 = arith.constant 1.000000e+00 : f32
    %522 = vector.broadcast %cst_139 : f32 to vector<2x16xf32>
    %523 = arith.divf %522, %521 : vector<2x16xf32>
    %cst_140 = arith.constant 1.06140542 : f32
    %524 = vector.broadcast %cst_140 : f32 to vector<2x16xf32>
    %525 = arith.mulf %524, %523 : vector<2x16xf32>
    %cst_141 = arith.constant -1.45315206 : f32
    %526 = vector.broadcast %cst_141 : f32 to vector<2x16xf32>
    %527 = arith.addf %525, %526 : vector<2x16xf32>
    %528 = arith.mulf %527, %523 : vector<2x16xf32>
    %cst_142 = arith.constant 1.42141378 : f32
    %529 = vector.broadcast %cst_142 : f32 to vector<2x16xf32>
    %530 = arith.addf %528, %529 : vector<2x16xf32>
    %531 = arith.mulf %530, %523 : vector<2x16xf32>
    %cst_143 = arith.constant -0.284496725 : f32
    %532 = vector.broadcast %cst_143 : f32 to vector<2x16xf32>
    %533 = arith.addf %531, %532 : vector<2x16xf32>
    %534 = arith.mulf %533, %523 : vector<2x16xf32>
    %cst_144 = arith.constant 0.254829586 : f32
    %535 = vector.broadcast %cst_144 : f32 to vector<2x16xf32>
    %536 = arith.addf %534, %535 : vector<2x16xf32>
    %537 = arith.mulf %536, %523 : vector<2x16xf32>
    %cst_145 = arith.constant 0.000000e+00 : f32
    %538 = vector.broadcast %cst_145 : f32 to vector<2x16xf32>
    %539 = arith.subf %538, %517 : vector<2x16xf32>
    %540 = arith.mulf %539, %517 : vector<2x16xf32>
    %541 = math.exp %540 : vector<2x16xf32>
    %542 = arith.mulf %537, %541 : vector<2x16xf32>
    %cst_146 = arith.constant 1.000000e+00 : f32
    %543 = vector.broadcast %cst_146 : f32 to vector<2x16xf32>
    %544 = arith.subf %543, %542 : vector<2x16xf32>
    %545 = arith.mulf %516, %544 : vector<2x16xf32>
    %cst_147 = arith.constant 1.000000e+00 : f32
    %546 = vector.broadcast %cst_147 : f32 to vector<2x16xf32>
    %547 = arith.addf %546, %545 : vector<2x16xf32>
    %548 = arith.mulf %509, %547 : vector<2x16xf32>
    %c0_148 = arith.constant 0 : index
    %c0_149 = arith.constant 0 : index
    %549 = vector.load %arg17[%c0_148, %c0_149] : memref<16x8xf32, #tpu.memory_space<vmem>>, vector<16x8xf32>
    %cst_150 = arith.constant dense<0.000000e+00> : vector<2x8xf32>
    %550 = tpu.matmul %548, %549, %cst_150 {dimension_numbers = #tpu.dot_dimension_numbers<[1], [0], [0], [1], [0, 0, 1, 1], [], []>} : vector<2x16xf32>, vector<16x8xf32>, vector<2x8xf32> -> vector<2x8xf32>
    %c0_151 = arith.constant 0 : index
    %c0_152 = arith.constant 0 : index
    %551 = vector.load %arg18[%c0_151, %c0_152] : memref<1x8xf32, #tpu.memory_space<vmem>>, vector<1x8xf32>
    %552 = vector.broadcast %551 : vector<1x8xf32> to vector<2x8xf32>
    %553 = arith.addf %550, %552 : vector<2x8xf32>
    %cst_153 = arith.constant 5.000000e-01 : f32
    %554 = vector.broadcast %cst_153 : f32 to vector<2x8xf32>
    %555 = arith.mulf %554, %553 : vector<2x8xf32>
    %cst_154 = arith.constant 0.707106769 : f32
    %556 = vector.broadcast %cst_154 : f32 to vector<2x8xf32>
    %557 = arith.mulf %553, %556 : vector<2x8xf32>
    %cst_155 = arith.constant 0.000000e+00 : f32
    %558 = vector.broadcast %cst_155 : f32 to vector<2x8xf32>
    %559 = arith.cmpf oge, %557, %558 : vector<2x8xf32>
    %cst_156 = arith.constant 1.000000e+00 : f32
    %cst_157 = arith.constant -1.000000e+00 : f32
    %560 = vector.broadcast %cst_156 : f32 to vector<2x8xf32>
    %561 = vector.broadcast %cst_157 : f32 to vector<2x8xf32>
    %562 = arith.select %559, %560, %561 : vector<2x8xi1>, vector<2x8xf32>
    %563 = math.absf %557 : vector<2x8xf32>
    %cst_158 = arith.constant 0.327591091 : f32
    %564 = vector.broadcast %cst_158 : f32 to vector<2x8xf32>
    %565 = arith.mulf %564, %563 : vector<2x8xf32>
    %cst_159 = arith.constant 1.000000e+00 : f32
    %566 = vector.broadcast %cst_159 : f32 to vector<2x8xf32>
    %567 = arith.addf %566, %565 : vector<2x8xf32>
    %cst_160 = arith.constant 1.000000e+00 : f32
    %568 = vector.broadcast %cst_160 : f32 to vector<2x8xf32>
    %569 = arith.divf %568, %567 : vector<2x8xf32>
    %cst_161 = arith.constant 1.06140542 : f32
    %570 = vector.broadcast %cst_161 : f32 to vector<2x8xf32>
    %571 = arith.mulf %570, %569 : vector<2x8xf32>
    %cst_162 = arith.constant -1.45315206 : f32
    %572 = vector.broadcast %cst_162 : f32 to vector<2x8xf32>
    %573 = arith.addf %571, %572 : vector<2x8xf32>
    %574 = arith.mulf %573, %569 : vector<2x8xf32>
    %cst_163 = arith.constant 1.42141378 : f32
    %575 = vector.broadcast %cst_163 : f32 to vector<2x8xf32>
    %576 = arith.addf %574, %575 : vector<2x8xf32>
    %577 = arith.mulf %576, %569 : vector<2x8xf32>
    %cst_164 = arith.constant -0.284496725 : f32
    %578 = vector.broadcast %cst_164 : f32 to vector<2x8xf32>
    %579 = arith.addf %577, %578 : vector<2x8xf32>
    %580 = arith.mulf %579, %569 : vector<2x8xf32>
    %cst_165 = arith.constant 0.254829586 : f32
    %581 = vector.broadcast %cst_165 : f32 to vector<2x8xf32>
    %582 = arith.addf %580, %581 : vector<2x8xf32>
    %583 = arith.mulf %582, %569 : vector<2x8xf32>
    %cst_166 = arith.constant 0.000000e+00 : f32
    %584 = vector.broadcast %cst_166 : f32 to vector<2x8xf32>
    %585 = arith.subf %584, %563 : vector<2x8xf32>
    %586 = arith.mulf %585, %563 : vector<2x8xf32>
    %587 = math.exp %586 : vector<2x8xf32>
    %588 = arith.mulf %583, %587 : vector<2x8xf32>
    %cst_167 = arith.constant 1.000000e+00 : f32
    %589 = vector.broadcast %cst_167 : f32 to vector<2x8xf32>
    %590 = arith.subf %589, %588 : vector<2x8xf32>
    %591 = arith.mulf %562, %590 : vector<2x8xf32>
    %cst_168 = arith.constant 1.000000e+00 : f32
    %592 = vector.broadcast %cst_168 : f32 to vector<2x8xf32>
    %593 = arith.addf %592, %591 : vector<2x8xf32>
    %594 = arith.mulf %555, %593 : vector<2x8xf32>
    %c0_169 = arith.constant 0 : index
    %c0_170 = arith.constant 0 : index
    %595 = vector.load %arg19[%c0_169, %c0_170] : memref<8x4xf32, #tpu.memory_space<vmem>>, vector<8x4xf32>
    %cst_171 = arith.constant dense<0.000000e+00> : vector<2x4xf32>
    %596 = tpu.matmul %594, %595, %cst_171 {dimension_numbers = #tpu.dot_dimension_numbers<[1], [0], [0], [1], [0, 0, 1, 1], [], []>} : vector<2x8xf32>, vector<8x4xf32>, vector<2x4xf32> -> vector<2x4xf32>
    %c0_172 = arith.constant 0 : index
    %c0_173 = arith.constant 0 : index
    %597 = vector.load %arg20[%c0_172, %c0_173] : memref<1x4xf32, #tpu.memory_space<vmem>>, vector<1x4xf32>
    %598 = vector.broadcast %597 : vector<1x4xf32> to vector<2x4xf32>
    %599 = arith.addf %596, %598 : vector<2x4xf32>
    %c0_174 = arith.constant 0 : index
    %c0_175 = arith.constant 0 : index
    %600 = vector.load %arg21[%c0_174, %c0_175] : memref<2x4xf32, #tpu.memory_space<vmem>>, vector<2x4xf32>
    tpu.vector_store %arg21[%c0_174, %c0_175], %599 {strides = array<i32>} : memref<2x4xf32, #tpu.memory_space<vmem>>, vector<2x4xf32>,
    return
  }
}

</mosaic_0001>

<bundles_post_ra>
// kernel: ssm_qnetwork_forward.1
= control target key start
LH: loop header
LB: loop body
LE: loop exit
PB: predicated region body
PF: predicated region fallthrough
CT: control target
= control target key end

     0   :  { %s5570_s0 = inlined_call_operand.vmem [shape: f32[16,32], index: 0, kind: input, shape index: {}]   ;;  %s5571_s1 = inlined_call_operand.vmem [shape: f32[1,32], index: 1, kind: input, shape index: {}]   ;;  %s5572_s2 = inlined_call_operand.vmem [shape: f32[1,32], index: 2, kind: input, shape index: {}]   ;;  %s5573_s3 = inlined_call_operand.vmem [shape: f32[2,1,32], index: 3, kind: input, shape index: {}]   ;;  %s5574_s4 = inlined_call_operand.vmem [shape: f32[2,1,32], index: 4, kind: input, shape index: {}]   ;;  %s5575_s5 = inlined_call_operand.vmem [shape: f32[2,32,128], index: 5, kind: input, shape index: {}]   ;;  %s5576_s6 = inlined_call_operand.vmem [shape: f32[2,4,64], index: 6, kind: input, shape index: {}]   ;;  %s5577_s7 = inlined_call_operand.vmem [shape: f32[2,1,64], index: 7, kind: input, shape index: {}]   ;;  %s5578_s8 = inlined_call_operand.vmem [shape: f32[2,64,96], index: 8, kind: input, shape index: {}]   ;;  %s5579_s9 = inlined_call_operand.vmem [shape: f32[2,1,64], index: 9, kind: input, shape index: {}]   ;;  %s5580_s10 = inlined_call_operand.vmem [shape: f32[2,16,64], index: 10, kind: input, shape index: {}]   ;;  %s5581_s11 = inlined_call_operand.vmem [shape: f32[2,1,64], index: 11, kind: input, shape index: {}]   ;;  %s5582_s12 = inlined_call_operand.vmem [shape: f32[2,64,32], index: 12, kind: input, shape index: {}]   ;;  %s5583_s13 = inlined_call_operand.vmem [shape: f32[1,32], index: 13, kind: input, shape index: {}]   ;;  %s5584_s14 = inlined_call_operand.vmem [shape: f32[1,32], index: 14, kind: input, shape index: {}]   ;;  %s5585_s15 = inlined_call_operand.vmem [shape: f32[32,16], index: 15, kind: input, shape index: {}]   ;;  %s5586_s16 = inlined_call_operand.vmem [shape: f32[1,16], index: 16, kind: input, shape index: {}]   ;;  %s5587_s17 = inlined_call_operand.vmem [shape: f32[16,8], index: 17, kind: input, shape index: {}]   ;;  %s5588_s18 = inlined_call_operand.vmem [shape: f32[1,8], index: 18, kind: input, shape index: {}]   ;;  %s5589_s19 = inlined_call_operand.vmem [shape: f32[8,4], index: 19, kind: input, shape index: {}]   ;;  %s5590_s20 = inlined_call_operand.vmem [shape: f32[1,4], index: 20, kind: input, shape index: {}]   ;;  %s5591_s21 = inlined_call_operand.hbm [shape: f32[2,4], index: 21, kind: output, shape index: {}]  }
   0x1   :  { %5618 = sst [smem:[#allocation27_spill]] %s5570_s0 }
   0x2   :  { %5619 = sst [smem:[#allocation28_spill]] %s5571_s1 }
   0x3   :  { %5620 = sst [smem:[#allocation29_spill]] %s5572_s2 }
   0x4   :  { %5621 = sst [smem:[#allocation30_spill]] %s5573_s3 }
   0x5   :  { %5622 = sst [smem:[#allocation31_spill]] %s5574_s4 }
   0x6   :  { %5623 = sst [smem:[#allocation32_spill]] %s5575_s5 }
   0x7   :  { %s5624_s26 = sld [smem:[#allocation27_spill]]  ;;  %vm73_vm0 = vcmask 261120  }
   0xd   :  { %v69_v0 = vld [vmem:[%s5624_s26] sm:$0xff]  ;;  %v70_v1 = vld [vmem:[%s5624_s26 + $0x8] sm:$0xff] }
   0xe   :  { %26 = vsyncpa [#allocation3], 0  ;;  %v74_v2 = vsel %vm73_vm0, %v69_v0, 0.0  ;;  %v77_v3 = vsel %vm73_vm0, %v70_v1, 0.0  ;;  %s5625_s0 = sld [smem:[#allocation28_spill]]  ;;  %s5626_s5 = sld [smem:[#allocation29_spill]] }
   0xf   :  { %75 = vadd.xlane.f32.xlu0 %v74_v2  ;;  %s5629_s1 = sld [smem:[#allocation32_spill]]  ;;  %v325_v2 = vld [vmem:[%s5578_s8 + $0x10] sm:$0xff]  ;;  %vm259_vm1 = vcmask 1042432   ;;  %vm274_vm2 = vcmask 1041408   ;;  %vm289_vm3 = vcmask 1040384   ;;  %vm331_vm4 = vcmask 523264  }
  0x10   :  { %s4128_s4 = smov 64   ;;  %vm1508_vm9 = vcmask 1043456   ;;  %vm1511_vm10 = vcmask 1044480   ;;  %vm1514_vm11 = vcmask 1045504   ;;  %vm1517_vm12 = vcmask 1046528  }
  0x13   :  { %78 = vadd.xlane.f32.xlu0 %v77_v3 }
  0x14   :  { %v3556_v21 = vld [vmem:[%s5625_s0] ss:$0 sm:$0xff]  ;;  %s5630_s0 = sld [smem:[#allocation30_spill]] }
  0x15   :  { %v3557_v23 = vld [vmem:[%s5626_s5] ss:$0 sm:$0xff]  ;;  %v162_v43 = vld [vmem:[%s5629_s1 + $0x8] sm:$0xff]  ;;  %v163_v44 = vld [vmem:[%s5629_s1 + $0x10] sm:$0xff]  ;;  %s5631_s5 = sld [smem:[#allocation31_spill]] }
  0x16   :  { %v161_v42 = vld [vmem:[%s5629_s1] sm:$0xff]  ;;  %v164_v46 = vld [vmem:[%s5629_s1 + $0x18] sm:$0xff] }
  0x17   :  { %v3807_v45 = vpack.c.bf16 %v162_v43, %v161_v42  ;;  %v3811_v47 = vpack.c.bf16 %v164_v46, %v163_v44 }
  0x19   :  { %3808 = vmatprep.subr.bf16.mxu0 %v3807_v45 }
  0x1a   :  { %3810 = vmatpush3.bf16.msra.mxu0 %v3807_v45  ;;  %v3558_v55 = vld [vmem:[%s5630_s0] ss:$0 sm:$0xff] }
  0x1b   :  { %3812 = vmatprep.subr.bf16.mxu0 %v3811_v47  ;;  %v3559_v57 = vld [vmem:[%s5631_s5] ss:$0 sm:$0xff] }
  0x1e   :  { %3814 = vmatpush3.bf16.msra.mxu0 %v3811_v47 }
  0x9c   :  { %v76_v4 = vpop.xlane.xlu0 %75 }
  0x9d   :  { %v81_v5 = vmul.f32 0.03125, %v76_v4  ;;  %v326_v4 = vld [vmem:[%s5578_s8 + $0x18] sm:$0xff] }
  0x9f   :  { %v83_v6 = vsub.f32 %v69_v0, %v81_v5  ;;  %v323_v0 = vld [vmem:[%s5578_s8] sm:$0xff]  ;;  %v3819_v5 = vpack.c.bf16 %v326_v4, %v325_v2 }
  0xa0   :  { %v79_v7 = vpop.xlane.xlu0 %78 }
  0xa1   :  { %v82_v8 = vmul.f32 0.03125, %v79_v7  ;;  %v85_v9 = vmul.f32 %v83_v6, %v83_v6  ;;  %v328_v7 = vld [vmem:[%s5578_s8 + $0x28] sm:$0xff] }
  0xa3   :  { %v84_v10 = vsub.f32 %v70_v1, %v82_v8  ;;  %v87_v11 = vsel %vm73_vm0, %v85_v9, 0.0  ;;  %v324_v1 = vld [vmem:[%s5578_s8 + $0x8] sm:$0xff]  ;;  %v329_v9 = vld [vmem:[%s5578_s8 + $0x30] sm:$0xff] }
  0xa4   :  { %88 = vadd.xlane.f32.xlu1 %v87_v11  ;;  %v3815_v3 = vpack.c.bf16 %v324_v1, %v323_v0 }
  0xa5   :  { %v86_v12 = vmul.f32 %v84_v10, %v84_v10 }
  0xa6   :  { %3816 = vmatprep.subr.bf16.mxu1 %v3815_v3 }
  0xa7   :  { %v90_v13 = vsel %vm73_vm0, %v86_v12, 0.0  ;;  %3818 = vmatpush3.bf16.msra.mxu1 %v3815_v3  ;;  %v247_v12 = vlaneseq }
  0xa8   :  { %91 = vadd.xlane.f32.xlu1 %v90_v13  ;;  %3820 = vmatprep.subr.bf16.mxu1 %v3819_v5 }
  0xa9   :  { %v4316_v13 = vshrl.u32 %v247_v12, 7 }
  0xab   :  { %3822 = vmatpush3.bf16.msra.mxu1 %v3819_v5  ;;  %v4381_v12 = vsub.s32 6, %v4316_v13 }
  0xad   :  { %5639 = vst [vmem:[#allocation14_spill] sm:$0xff] %v4381_v12 }
 0x131   :  { %v89_v14 = vpop.xlane.xlu1 %88 }
 0x132   :  { %v93_v15 = vmul.f32 0.03125, %v89_v14  ;;  %v4319_v14 = vsub.s32 3, %v4316_v13 }
 0x134   :  { %v95_v16 = vadd.f32 1e-05, %v93_v15  ;;  %5632 = vst [vmem:[#allocation7_spill] sm:$0xff] %v4319_v14  ;;  %v4322_v15 = vsub.s32 0, %v4316_v13 }
 0x135   :  { %v92_v17 = vpop.xlane.xlu1 %91 }
 0x136   :  { %3903 = vrsqrt.f32 %v95_v16  ;;  %v94_v18 = vmul.f32 0.03125, %v92_v17  ;;  %v246_v16 = vld [vmem:[%s5576_s6] sm:$0xf]  ;;  %v4328_v17 = vsub.s32 1, %v4316_v13 }
 0x138   :  { %v96_v19 = vadd.f32 1e-05, %v94_v18  ;;  %5633 = vst [vmem:[#allocation8_spill] sm:$0xff] %v4328_v17  ;;  %v4331_v18 = vsub.s32 2, %v4316_v13 }
 0x13a   :  { %3905 = vrsqrt.f32 %v96_v19  ;;  %5634 = vst [vmem:[#allocation9_spill] sm:$0xff] %v4331_v18 }
 0x140   :  { %v3904_v20 = vpop.eup %3903 }
 0x141   :  { %v99_v22 = vmul.f32 %v3904_v20, %v83_v6  ;;  %v327_v6 = vld [vmem:[%s5578_s8 + $0x20] sm:$0xff]  ;;  %v250_v20 = vrot.slane %v246_v16, %v4319_v14 }
 0x142   :  { %v3823_v8 = vpack.c.bf16 %v328_v7, %v327_v6 }
 0x143   :  { %v107_v24 = vmul.f32 %v3556_v21, %v99_v22 }
 0x144   :  { %v3906_v25 = vpop.eup %3905  ;;  %3824 = vmatprep.subr.bf16.mxu1 %v3823_v8 }
 0x145   :  { %v4260_v26 = vadd.f32 %v3557_v23, %v107_v24  ;;  %v100_v27 = vmul.f32 %v3906_v25, %v84_v10  ;;  %v330_v10 = vld [vmem:[%s5578_s8 + $0x38] sm:$0xff]  ;;  %3826 = vmatpush3.bf16.msra.mxu1 %v3823_v8  ;;  %v280_v25 = vrot.slane %v246_v16, %v4328_v17  ;;  %v4373_v8 = vsub.s32 4, %v4316_v13 }
 0x146   :  { %v3827_v11 = vpack.c.bf16 %v330_v10, %v329_v9  ;;  %v4377_v10 = vsub.s32 5, %v4316_v13 }
 0x147   :  { %5627 = vst [vmem:[#allocation5_spill] sm:$0xff] %v4260_v26  ;;  %v119_v28 = vsel %vm73_vm0, %v4260_v26, 0.0  ;;  %v108_v29 = vmul.f32 %v3556_v21, %v100_v27  ;;  %v265_v21 = vrot.slane %v246_v16, %v4322_v15  ;;  %5637 = vst [vmem:[#allocation12_spill] sm:$0xff] %v4373_v8 }
 0x148   :  { %120 = vadd.xlane.f32.xlu0 %v119_v28  ;;  %3828 = vmatprep.subr.bf16.mxu1 %v3827_v11  ;;  %5638 = vst [vmem:[#allocation13_spill] sm:$0xff] %v4377_v10 }
 0x149   :  { %v4264_v30 = vadd.f32 %v3557_v23, %v108_v29  ;;  %3830 = vmatpush3.bf16.msra.mxu1 %v3827_v11 }
 0x14b   :  { %5628 = vst [vmem:[#allocation6_spill] sm:$0xff] %v4264_v30  ;;  %v122_v31 = vsel %vm73_vm0, %v4264_v30, 0.0 }
 0x14c   :  { %123 = vadd.xlane.f32.xlu1 %v122_v31 }
 0x1d5   :  { %v121_v32 = vpop.xlane.xlu0 %120 }
 0x1d6   :  { %v125_v33 = vmul.f32 0.03125, %v121_v32 }
 0x1d8   :  { %v127_v34 = vsub.f32 %v4260_v26, %v125_v33 }
 0x1d9   :  { %v124_v35 = vpop.xlane.xlu1 %123 }
 0x1da   :  { %v126_v36 = vmul.f32 0.03125, %v124_v35  ;;  %v129_v37 = vmul.f32 %v127_v34, %v127_v34 }
 0x1dc   :  { %v128_v38 = vsub.f32 %v4264_v30, %v126_v36  ;;  %v131_v39 = vsel %vm73_vm0, %v129_v37, 0.0 }
 0x1dd   :  { %132 = vadd.xlane.f32.xlu0 %v131_v39 }
 0x1de   :  { %v130_v40 = vmul.f32 %v128_v38, %v128_v38 }
 0x1e0   :  { %v134_v41 = vsel %vm73_vm0, %v130_v40, 0.0 }
 0x1e1   :  { %135 = vadd.xlane.f32.xlu1 %v134_v41 }
 0x26a   :  { %v133_v48 = vpop.xlane.xlu0 %132 }
 0x26b   :  { %v137_v49 = vmul.f32 0.03125, %v133_v48 }
 0x26d   :  { %v139_v50 = vadd.f32 1e-05, %v137_v49 }
 0x26e   :  { %v136_v51 = vpop.xlane.xlu1 %135 }
 0x26f   :  { %3907 = vrsqrt.f32 %v139_v50  ;;  %v138_v52 = vmul.f32 0.03125, %v136_v51  ;;  %v3562_v51 = vld [vmem:[%s5577_s7] ss:$0 sm:$0xff] }
 0x271   :  { %v140_v53 = vadd.f32 1e-05, %v138_v52 }
 0x273   :  { %3909 = vrsqrt.f32 %v140_v53 }
 0x279   :  { %v3908_v54 = vpop.eup %3907 }
 0x27a   :  { %v143_v56 = vmul.f32 %v3908_v54, %v127_v34  ;;  %v295_v34 = vrot.slane %v246_v16, %v4331_v18 }
 0x27c   :  { %v151_v58 = vmul.f32 %v3558_v55, %v143_v56 }
 0x27d   :  { %v3910_v59 = vpop.eup %3909 }
 0x27e   :  { %v144_v60 = vmul.f32 %v3910_v59, %v128_v38  ;;  %v159_v61 = vadd.f32 %v3559_v57, %v151_v58 }
 0x280   :  { %v152_v62 = vmul.f32 %v3558_v55, %v144_v60  ;;  %3694 = vmatprep.mubr.msk.f32.mxu0 %vm73_vm0, %v159_v61 }
 0x282   :  { %v160_v63 = vadd.f32 %v3559_v57, %v152_v62 }
 0x284   :  { %3695 = vmatmul.mubr.msk.f32.vlgmr.msra.gmra.mrb[0].mxu0 %vm73_vm0, %v160_v63 }
 0x357   :  { %v4333_v19 = vpop.f32.mrb[0].mxu0 }
 0x358   :  { %v256_v22 = vrot.slane %v4333_v19, 5  ;;  %v271_v23 = vrot.slane %v4333_v19, 6  ;;  %v4339_v24 = vpop.f32.mrb[1].mxu0  ;;  %v286_v27 = vrot.slane %v4333_v19, 7  ;;  %v252_v35 = vmul.f32 %v4333_v19, %v250_v20 }
 0x359   :  { %v255_v28 = vrot.slane %v4339_v24, 5  ;;  %v270_v29 = vrot.slane %v4339_v24, 6  ;;  %v285_v33 = vrot.slane %v4339_v24, 7  ;;  %v251_v39 = vmul.f32 %v250_v20, %v4339_v24 }
 0x35a   :  { %v261_v31 = vsel %vm259_vm1, 0.0, %v256_v22  ;;  %v276_v32 = vsel %vm274_vm2, 0.0, %v271_v23  ;;  %v291_v44 = vsel %vm289_vm3, 0.0, %v286_v27  ;;  %v4385_v20 = vsub.s32 7, %v4316_v13  ;;  %v3567_v27 = vld [vmem:[%s5579_s9] ss:$0 sm:$0xff] }
 0x35b   :  { %v267_v36 = vmul.f32 %v265_v21, %v261_v31  ;;  %v260_v37 = vsel %vm259_vm1, 0.0, %v255_v28  ;;  %v275_v38 = vsel %vm274_vm2, 0.0, %v270_v29  ;;  %v282_v42 = vmul.f32 %v280_v25, %v276_v32 }
 0x35c   :  { %v266_v40 = vmul.f32 %v265_v21, %v260_v37  ;;  %v290_v43 = vsel %vm289_vm3, 0.0, %v285_v33  ;;  %v281_v46 = vmul.f32 %v280_v25, %v275_v38  ;;  %v297_v48 = vmul.f32 %v295_v34, %v291_v44  ;;  %5640 = vst [vmem:[#allocation15_spill] sm:$0xff] %v4385_v20 }
 0x35d   :  { %v269_v41 = vadd.f32 %v267_v36, %v252_v35  ;;  %v296_v50 = vmul.f32 %v295_v34, %v290_v43  ;;  %v3569_v37 = vmul.f32 -1.442695, %v4339_v24  ;;  %v3570_v43 = vmul.f32 -1.442695, %v4333_v19 }
 0x35e   :  { %v268_v45 = vadd.f32 %v266_v40, %v251_v39 }
 0x35f   :  { %v284_v47 = vadd.f32 %v282_v42, %v269_v41 }
 0x360   :  { %v283_v49 = vadd.f32 %v281_v46, %v268_v45 }
 0x361   :  { %v299_v52 = vadd.f32 %v297_v48, %v284_v47  ;;  %v4127_v48 = vmov 1966171168  }
 0x362   :  { %v298_v53 = vadd.f32 %v296_v50, %v283_v49  ;;  %v458_v49 = vunpack.c.l.s4 %v4127_v48 }
 0x363   :  { %v308_v54 = vadd.f32 %v3562_v51, %v299_v52 }
 0x364   :  { %v307_v55 = vadd.f32 %v3562_v51, %v298_v53 }
 0x365   :  { %v3564_v56 = vmul.f32 -1.442695, %v308_v54 }
 0x366   :  { %v3563_v57 = vmul.f32 -1.442695, %v307_v55 }
 0x367   :  { %3911 = vpow2.f32 %v3564_v56 }
 0x368   :  { %3913 = vpow2.f32 %v3563_v57 }
 0x371   :  { %v3912_v58 = vpop.eup %3911 }
 0x372   :  { %v3914_v59 = vpop.eup %3913  ;;  %v316_v60 = vadd.f32 1.0, %v3912_v58 }
 0x373   :  { %v315_v61 = vadd.f32 1.0, %v3914_v59 }
 0x374   :  { %3915 = vrcp.f32 %v316_v60 }
 0x375   :  { %3917 = vrcp.f32 %v315_v61 }
 0x37e   :  { %v3916_v62 = vpop.eup %3915 }
 0x37f   :  { %v3918_v63 = vpop.eup %3917  ;;  %v4360_v1 = vmul.f32 %v3916_v62, %v308_v54 }
 0x380   :  { %v4358_v0 = vmul.f32 %v3918_v63, %v307_v55  ;;  %v459_v55 = vunpack.c.0.s8 %v458_v49  ;;  %v1558_v49 = vld [vmem:[%s5582_s12 + $0x18] sm:$0xff] }
 0x381   :  { %5636 = vst [vmem:[#allocation11_spill] sm:$0xff] %v4360_v1 }
 0x382   :  { %5635 = vst [vmem:[#allocation10_spill] sm:$0xff] %v4358_v0  ;;  %3713 = vmatprep.mubr.msk.f32.mxu1 %vm331_vm4, %v4358_v0  ;;  %v4425_v62 = vsub.s32 %v459_v55, %v4316_v13 }
 0x383   :  { %3714 = vmatmul.mubr.msk.f32.vlgmr.msra.gmra.mrb[0].mxu1 %vm331_vm4, %v4360_v1 }
 0x384   :  { %5641 = vst [vmem:[#allocation16_spill] sm:$0xff] %v4425_v62 }
 0x456   :  { %v3715_v2 = vpop.f32.mrb[0].mxu1 }
 0x457   :  { %v4366_v3 = vpop.f32.mrb[1].mxu1  ;;  %v941_v4 = vrot.slane %v3715_v2, %v4328_v17  ;;  %v929_v5 = vrot.slane %v3715_v2, %v4322_v15  ;;  %v953_v6 = vrot.slane %v3715_v2, %v4331_v18  ;;  %v965_v7 = vrot.slane %v3715_v2, %v4319_v14 }
 0x458   :  { %v977_v9 = vrot.slane %v3715_v2, %v4373_v8  ;;  %v989_v11 = vrot.slane %v3715_v2, %v4377_v10  ;;  %v1001_v16 = vrot.slane %v3715_v2, %v4381_v12  ;;  %v4388_v21 = vrot.slane %v3715_v2, %v4385_v20 }
 0x459   :  { %944 = vbcast.lane.b32.xlu0 %v941_v4, 320  ;;  %932 = vbcast.lane.b32.xlu1 %v929_v5, 320  ;;  %v833_v22 = vrot.slane %v4366_v3, %v4322_v15  ;;  %v845_v23 = vrot.slane %v4366_v3, %v4328_v17  ;;  %v857_v25 = vrot.slane %v4366_v3, %v4331_v18 }
 0x45a   :  { %v869_v28 = vrot.slane %v4366_v3, %v4319_v14  ;;  %v4403_v29 = vadd.f32 %v3715_v2, %v3567_v27  ;;  %v881_v31 = vrot.slane %v4366_v3, %v4373_v8  ;;  %v893_v33 = vrot.slane %v4366_v3, %v4377_v10 }
 0x45b   :  { %v905_v35 = vrot.slane %v4366_v3, %v4381_v12  ;;  %v4413_v36 = vadd.f32 %v3567_v27, %v4366_v3  ;;  %v917_v41 = vrot.slane %v4366_v3, %v4385_v20 }
 0x45c   :  { %v425_v32 = vmin.f32 %v4403_v29, 20.0  ;;  %vm423_vm6 = vcmp.gt.f32.partialorder %v4403_v29, 20.0 }
 0x45d   :  { %956 = vbcast.lane.b32.xlu0 %v953_v6, 320  ;;  %936 = vbcast.lane.b32.xlu1 %v929_v5, 328  ;;  %v424_v39 = vmin.f32 %v4413_v36, 20.0  ;;  %vm422_vm8 = vcmp.gt.f32.partialorder %v4413_v36, 20.0 }
 0x45e   :  { %v428_v34 = vmul.f32 1.442695, %v425_v32 }
 0x45f   :  { %v426_v42 = vmul.f32 1.442695, %v424_v39 }
 0x460   :  { %3919 = vpow2.f32 %v428_v34 }
 0x461   :  { %968 = vbcast.lane.b32.xlu0 %v965_v7, 320  ;;  %948 = vbcast.lane.b32.xlu1 %v941_v4, 328  ;;  %3921 = vpow2.f32 %v3569_v37 }
 0x465   :  { %980 = vbcast.lane.b32.xlu0 %v977_v9, 320  ;;  %960 = vbcast.lane.b32.xlu1 %v953_v6, 328 }
 0x469   :  { %992 = vbcast.lane.b32.xlu0 %v989_v11, 320  ;;  %972 = vbcast.lane.b32.xlu1 %v965_v7, 328 }
 0x46a   :  { %v3920_v38 = vpop.eup %3919 }
 0x46b   :  { %v439_v40 = vadd.f32 1.0, %v3920_v38  ;;  %v3922_v44 = vpop.eup %3921  ;;  %v442_v45 = vmul.f32 -0.5, %v3920_v38  ;;  %v445_v52 = vand.u32 2147483647, %v3920_v38 }
 0x46c   :  { %v1537_v46 = vadd.f32 1.0, %v3922_v44  ;;  %v1557_v44 = vld [vmem:[%s5582_s12 + $0x10] sm:$0xff] }
 0x46d   :  { %1004 = vbcast.lane.b32.xlu0 %v1001_v16, 320  ;;  %984 = vbcast.lane.b32.xlu1 %v977_v9, 328  ;;  %3923 = vlog2.f32 %v439_v40  ;;  %v443_v50 = vadd.f32 1.0, %v442_v45  ;;  %vm446_vm5 = vcmp.lt.f32.partialorder %v445_v52, 0.0004427343  ;;  %v3835_v52 = vpack.c.bf16 %v1558_v49, %v1557_v44 }
 0x46e   :  { %3925 = vpow2.f32 %v426_v42  ;;  %v4473_v42 = vld [vmem:[%s5580_s10 + $0x8] sm:$0xff] }
 0x46f   :  { %3927 = vpow2.f32 %v3570_v43  ;;  %v444_v56 = vmul.f32 %v3920_v38, %v443_v50  ;;  %v1556_v43 = vld [vmem:[%s5582_s12 + $0x8] sm:$0xff] }
 0x470   :  { %3929 = vrcp.f32 %v1537_v46 }
 0x471   :  { %1200 = vbcast.lane.b32.xlu0 %v929_v5, 336  ;;  %996 = vbcast.lane.b32.xlu1 %v989_v11, 328 }
 0x475   :  { %1208 = vbcast.lane.b32.xlu0 %v941_v4, 336  ;;  %1008 = vbcast.lane.b32.xlu1 %v1001_v16, 328 }
 0x477   :  { %v3924_v47 = vpop.eup %3923 }
 0x478   :  { %v3926_v51 = vpop.eup %3925  ;;  %v441_v54 = vmul.f32 0.6931472, %v3924_v47 }
 0x479   :  { %1216 = vbcast.lane.b32.xlu0 %v953_v6, 336  ;;  %1204 = vbcast.lane.b32.xlu1 %v929_v5, 344  ;;  %v3928_v53 = vpop.eup %3927  ;;  %v430_v57 = vadd.f32 1.0, %v3926_v51 }
 0x47a   :  { %v1538_v58 = vadd.f32 1.0, %v3928_v53  ;;  %v447_v60 = vsel %vm446_vm5, %v444_v56, %v441_v54  ;;  %v1559_v53 = vld [vmem:[%s5582_s12 + $0x20] sm:$0xff] }
 0x47b   :  { %3931 = vlog2.f32 %v430_v57  ;;  %v4429_v63 = vsel %vm423_vm6, %v4403_v29, %v447_v60  ;;  %vm3466_vm6 = vcmask 64512  }
 0x47c   :  { %3933 = vrcp.f32 %v1538_v58  ;;  %v512_v13 = vrot.slane %v4429_v63, %v4425_v62  ;;  %v453_v50 = vmul.f32 %v4429_v63, %v4360_v1 }
 0x47d   :  { %1016 = vbcast.lane.b32.xlu0 %v4388_v21, 320  ;;  %1212 = vbcast.lane.b32.xlu1 %v941_v4, 344  ;;  %v3930_v4 = vpop.eup %3929 }
 0x481   :  { %1224 = vbcast.lane.b32.xlu0 %v965_v7, 336  ;;  %1220 = vbcast.lane.b32.xlu1 %v953_v6, 344 }
 0x485   :  { %1232 = vbcast.lane.b32.xlu0 %v977_v9, 336  ;;  %1020 = vbcast.lane.b32.xlu1 %v4388_v21, 328 }
 0x489   :  { %1240 = vbcast.lane.b32.xlu0 %v989_v11, 336  ;;  %1228 = vbcast.lane.b32.xlu1 %v965_v7, 344  ;;  %v1543_v7 = vmul.f32 %v3930_v4, %v4339_v24  ;;  %v436_v24 = vand.u32 2147483647, %v3926_v51  ;;  %v788_v4 = vrot.slane %v453_v50, %v4425_v62 }
 0x48b   :  { %vm437_vm7 = vcmp.lt.f32.partialorder %v436_v24, 0.0004427343 }
 0x48d   :  { %1248 = vbcast.lane.b32.xlu0 %v1001_v16, 336  ;;  %1236 = vbcast.lane.b32.xlu1 %v977_v9, 344  ;;  %v433_v9 = vmul.f32 -0.5, %v3926_v51 }
 0x48f   :  { %v434_v27 = vadd.f32 1.0, %v433_v9  ;;  %v1561_v9 = vld [vmem:[%s5582_s12 + $0x30] sm:$0xff] }
 0x491   :  { %1244 = vbcast.lane.b32.xlu1 %v989_v11, 344  ;;  %836 = vbcast.lane.b32.xlu0 %v833_v22, 320  ;;  %v528_v11 = vrot.slane %v512_v13, %v4425_v62  ;;  %v435_v37 = vmul.f32 %v3926_v51, %v434_v27  ;;  %v781_v27 = vcombine.high %v453_v50, %v453_v50 }
 0x493   :  { %v589_v29 = vrot.slane %v528_v11, %v4322_v15  ;;  %v550_v57 = vcombine.high %v528_v11, %v528_v11 }
 0x495   :  { %1252 = vbcast.lane.b32.xlu1 %v1001_v16, 344  ;;  %848 = vbcast.lane.b32.xlu0 %v845_v23, 320  ;;  %v3932_v16 = vpop.eup %3931  ;;  %v651_v51 = vmul.f32 %v589_v29, %v4473_v42 }
 0x496   :  { %v432_v32 = vmul.f32 0.6931472, %v3932_v16  ;;  %v1562_v16 = vld [vmem:[%s5582_s12 + $0x38] sm:$0xff] }
 0x498   :  { %v438_v39 = vsel %vm437_vm7, %v435_v37, %v432_v32  ;;  %v3843_v32 = vpack.c.bf16 %v1562_v16, %v1561_v9  ;;  %vm3540_vm7 = vcmask 25600  }
 0x499   :  { %840 = vbcast.lane.b32.xlu1 %v833_v22, 328  ;;  %860 = vbcast.lane.b32.xlu0 %v857_v25, 320  ;;  %v4488_v47 = vsel %vm422_vm8, %v4413_v36, %v438_v39  ;;  %v1560_v36 = vld [vmem:[%s5582_s12 + $0x28] sm:$0xff]  ;;  %v796_v39 = vcombine.high %v788_v4, %v788_v4 }
 0x49a   :  { %v452_v56 = vmul.f32 %v4488_v47, %v4358_v0  ;;  %v3839_v60 = vpack.c.bf16 %v1560_v36, %v1559_v53 }
 0x49c   :  { %v732_v44 = vcombine.high %v452_v56, %v452_v56 }
 0x49d   :  { %852 = vbcast.lane.b32.xlu1 %v845_v23, 328  ;;  %872 = vbcast.lane.b32.xlu0 %v869_v28, 320 }
 0x4a1   :  { %864 = vbcast.lane.b32.xlu1 %v857_v25, 328  ;;  %884 = vbcast.lane.b32.xlu0 %v881_v31, 320 }
 0x4a5   :  { %876 = vbcast.lane.b32.xlu1 %v869_v28, 328  ;;  %896 = vbcast.lane.b32.xlu0 %v893_v33, 320 }
 0x4a9   :  { %888 = vbcast.lane.b32.xlu1 %v881_v31, 328  ;;  %908 = vbcast.lane.b32.xlu0 %v905_v35, 320 }
 0x4ad   :  { %900 = vbcast.lane.b32.xlu1 %v893_v33, 328  ;;  %1136 = vbcast.lane.b32.xlu0 %v833_v22, 336 }
 0x4b1   :  { %912 = vbcast.lane.b32.xlu1 %v905_v35, 328  ;;  %1144 = vbcast.lane.b32.xlu0 %v845_v23, 336 }
 0x4b5   :  { %1140 = vbcast.lane.b32.xlu1 %v833_v22, 344  ;;  %1152 = vbcast.lane.b32.xlu0 %v857_v25, 336 }
 0x4b9   :  { %1148 = vbcast.lane.b32.xlu1 %v845_v23, 344  ;;  %920 = vbcast.lane.b32.xlu0 %v917_v41, 320 }
 0x4bd   :  { %1156 = vbcast.lane.b32.xlu1 %v857_v25, 344  ;;  %1160 = vbcast.lane.b32.xlu0 %v869_v28, 336  ;;  %v3934_v25 = vpop.eup %3933 }
 0x4c1   :  { %924 = vbcast.lane.b32.xlu1 %v917_v41, 328  ;;  %1168 = vbcast.lane.b32.xlu0 %v881_v31, 336 }
 0x4c5   :  { %1164 = vbcast.lane.b32.xlu1 %v869_v28, 344  ;;  %1176 = vbcast.lane.b32.xlu0 %v893_v33, 336  ;;  %v520_v28 = vcombine.high %v512_v13, %v512_v13  ;;  %v700_v13 = vmul.f32 1.442695, %v651_v51 }
 0x4c9   :  { %1172 = vbcast.lane.b32.xlu1 %v881_v31, 344  ;;  %1184 = vbcast.lane.b32.xlu0 %v905_v35, 336  ;;  %v4454_v31 = vld [vmem:[%s5580_s10] sm:$0xff] }
 0x4ca   :  { %v650_v38 = vmul.f32 %v589_v29, %v4454_v31  ;;  %v597_v29 = vrot.slane %v550_v57, %v4322_v15  ;;  %v818_v57 = vrot.slane %v796_v39, %v4425_v62 }
 0x4cb   :  { %v4420_v59 = vpop.permute.xlu0 %944  ;;  %v4422_v61 = vpop.permute.xlu1 %932 }
 0x4cc   :  { %v698_v45 = vmul.f32 1.442695, %v650_v38 }
 0x4cd   :  { %1180 = vbcast.lane.b32.xlu1 %v893_v33, 344  ;;  %1192 = vbcast.lane.b32.xlu0 %v917_v41, 336 }
 0x4ce   :  { %3935 = vpow2.f32 %v698_v45  ;;  %v795_v45 = vrot.slane %v781_v27, %v4425_v62 }
 0x4cf   :  { %v4431_v2 = vpop.permute.xlu0 %956  ;;  %v4433_v3 = vpop.permute.xlu1 %936  ;;  %3937 = vpow2.f32 %v700_v13 }
 0x4d0   :  { %v797_v16 = vcombine.high %v795_v45, %v795_v45 }
 0x4d1   :  { %1188 = vbcast.lane.b32.xlu1 %v905_v35, 344  ;;  %1256 = vbcast.lane.b32.xlu0 %v4388_v21, 336  ;;  %v1544_v35 = vmul.f32 %v3934_v25, %v4333_v19  ;;  %v1555_v19 = vld [vmem:[%s5582_s12] sm:$0xff] }
 0x4d2   :  { %v3831_v48 = vpack.c.bf16 %v1556_v43, %v1555_v19 }
 0x4d3   :  { %v4438_v5 = vpop.permute.xlu0 %968  ;;  %v4440_v6 = vpop.permute.xlu1 %948 }
 0x4d4   :  { %3832 = vmatprep.subr.bf16.mxu0 %v3831_v48 }
 0x4d5   :  { %1196 = vbcast.lane.b32.xlu1 %v917_v41, 344  ;;  %1547 = vrot.lane.b32.xlu0 %v1543_v7, %s4128_s4  ;;  %v505_v7 = vcombine.high %v4429_v63, %v4429_v63  ;;  %v4526_v63 = vrot.slane %v4488_v47, %v4425_v62 }
 0x4d6   :  { %3834 = vmatpush3.bf16.msra.mxu0 %v3831_v48 }
 0x4d7   :  { %v4445_v22 = vpop.permute.xlu0 %980  ;;  %v4447_v23 = vpop.permute.xlu1 %960  ;;  %3836 = vmatprep.subr.bf16.mxu0 %v3835_v52  ;;  %v519_v38 = vrot.slane %v505_v7, %v4425_v62  ;;  %v471_v36 = vcombine.high %v4526_v63, %v4526_v63  ;;  %v4558_v13 = vrot.slane %v4526_v63, %v4425_v62  ;;  %v655_v63 = vmul.f32 %v597_v29, %v4473_v42 }
 0x4d9   :  { %1260 = vbcast.lane.b32.xlu1 %v4388_v21, 344  ;;  %v4463_v21 = vrot.slane %v520_v28, %v4425_v62  ;;  %v739_v28 = vrot.slane %v452_v56, %v4425_v62  ;;  %v535_v53 = vrot.slane %v519_v38, %v4425_v62  ;;  %v3936_v56 = vpop.eup %3935  ;;  %v521_v39 = vcombine.high %v519_v38, %v519_v38 }
 0x4da   :  { %3838 = vmatpush3.bf16.msra.mxu0 %v3835_v52  ;;  %v557_v38 = vrot.slane %v4558_v13, %v4322_v15  ;;  %v708_v8 = vmul.f32 1.442695, %v655_v63 }
 0x4db   :  { %v4456_v33 = vpop.permute.xlu0 %992  ;;  %v4458_v34 = vpop.permute.xlu1 %972  ;;  %v593_v46 = vrot.slane %v4463_v21, %v4322_v15  ;;  %3840 = vmatprep.subr.bf16.mxu0 %v3839_v60  ;;  %v4537_v48 = vrot.slane %v739_v28, %v4425_v62  ;;  %v552_v49 = vcombine.high %v4463_v21, %v4463_v21  ;;  %v605_v50 = vrot.slane %v535_v53, %v4322_v15 }
 0x4dc   :  { %v4590_v10 = vrot.slane %v521_v39, %v4425_v62  ;;  %v551_v18 = vcombine.high %v535_v53, %v535_v53  ;;  %v635_v53 = vmul.f32 %v557_v38, %v4473_v42 }
 0x4dd   :  { %1549 = vrot.lane.b32.xlu1 %v1544_v35, %s4128_s4  ;;  %v652_v58 = vmul.f32 %v593_v46, %v4454_v31  ;;  %v804_v35 = vrot.slane %v788_v4, %v4425_v62  ;;  %v653_v37 = vmul.f32 %v593_v46, %v4473_v42  ;;  %v654_v46 = vmul.f32 %v597_v29, %v4454_v31 }
 0x4de   :  { %3842 = vmatpush3.bf16.msra.mxu0 %v3839_v60  ;;  %v747_v60 = vcombine.high %v739_v28, %v739_v28  ;;  %v4554_v4 = vrot.slane %v732_v44, %v4425_v62  ;;  %v4563_v27 = vrot.slane %v4537_v48, %v4322_v15  ;;  %v601_v28 = vrot.slane %v552_v49, %v4322_v15  ;;  %v3938_v49 = vpop.eup %3937 }
 0x4df   :  { %v4466_v40 = vpop.permute.xlu0 %1004  ;;  %v4468_v41 = vpop.permute.xlu1 %984  ;;  %v702_v24 = vmul.f32 1.442695, %v652_v58  ;;  %3844 = vmatprep.subr.bf16.mxu0 %v3843_v32  ;;  %v1057_v51 = vrot.slane %v804_v35, %v4322_v15  ;;  %v704_v52 = vmul.f32 1.442695, %v653_v37  ;;  %v826_v9 = vcombine.high %v804_v35, %v804_v35 }
 0x4e0   :  { %v706_v37 = vmul.f32 1.442695, %v654_v46  ;;  %v1264_v44 = vmul.f32 0.0, %v3936_v56  ;;  %v828_v46 = vcombine.high %v818_v57, %v818_v57  ;;  %v657_v63 = vmul.f32 %v601_v28, %v4473_v42 }
 0x4e1   :  { %3939 = vpow2.f32 %v702_v24  ;;  %v1118_v7 = vmul.f32 %v1057_v51, %v4422_v61  ;;  %v811_v24 = vrot.slane %v795_v45, %v4425_v62  ;;  %v1061_v61 = vrot.slane %v818_v57, %v4322_v15 }
 0x4e2   :  { %3846 = vmatpush3.bf16.msra.mxu0 %v3843_v32  ;;  %3941 = vpow2.f32 %v704_v52  ;;  %v4575_v32 = vrot.slane %v747_v60, %v4425_v62  ;;  %v4582_v29 = vrot.slane %v826_v9, %v4322_v15  ;;  %v825_v52 = vrot.slane %v797_v16, %v4425_v62 }
 0x4e3   :  { %v4502_v54 = vpop.permute.xlu0 %1200  ;;  %v4504_v55 = vpop.permute.xlu1 %996  ;;  %v4585_v56 = vadd.f32 %v1264_v44, %v1118_v7  ;;  %v1119_v12 = vmul.f32 %v1057_v51, %v4433_v3  ;;  %3943 = vpow2.f32 %v706_v37  ;;  %v656_v60 = vmul.f32 %v601_v28, %v4454_v31 }
 0x4e4   :  { %v4593_v45 = vrot.slane %v811_v24, %v4322_v15  ;;  %v658_v9 = vmul.f32 %v605_v50, %v4454_v31  ;;  %v827_v17 = vcombine.high %v811_v24, %v811_v24  ;;  %v1265_v16 = vmul.f32 0.0, %v3938_v49 }
 0x4e5   :  { %v493_v3 = vrot.slane %v471_v36, %v4425_v62  ;;  %v634_v51 = vmul.f32 %v557_v38, %v4454_v31  ;;  %v4603_v37 = vrot.slane %v828_v46, %v4322_v15  ;;  %v829_v24 = vcombine.high %v825_v52, %v825_v52 }
 0x4e6   :  { %v4608_v14 = vadd.f32 %v1265_v16, %v1119_v12  ;;  %v710_v49 = vmul.f32 1.442695, %v656_v60  ;;  %v609_v26 = vrot.slane %v4590_v10, %v4322_v15  ;;  %v1120_v36 = vmul.f32 %v1061_v61, %v4420_v59 }
 0x4e7   :  { %v4518_v11 = vpop.permute.xlu0 %1208  ;;  %v4520_v25 = vpop.permute.xlu1 %1008  ;;  %3945 = vpow2.f32 %v708_v8  ;;  %v714_v30 = vmul.f32 1.442695, %v658_v9  ;;  %v613_v46 = vrot.slane %v551_v18, %v4322_v15  ;;  %v4615_v1 = vrot.slane %v825_v52, %v4322_v15 }
 0x4e8   :  { %v659_v12 = vmul.f32 %v605_v50, %v4473_v42  ;;  %v666_v38 = vmul.f32 1.442695, %v634_v51  ;;  %v561_v60 = vrot.slane %v493_v3, %v4322_v15  ;;  %v4624_v0 = vrot.slane %v827_v17, %v4322_v15 }
 0x4e9   :  { %v712_v59 = vmul.f32 1.442695, %v657_v63  ;;  %v668_v18 = vmul.f32 1.442695, %v635_v53  ;;  %v1121_v52 = vmul.f32 %v1061_v61, %v4440_v6  ;;  %3947 = vpow2.f32 %v710_v49 }
 0x4ea   :  { %v4632_v50 = vrot.slane %v829_v24, %v4322_v15  ;;  %3949 = vpow2.f32 %v714_v30  ;;  %v662_v51 = vmul.f32 %v613_v46, %v4454_v31  ;;  %v501_v17 = vcombine.high %v4558_v13, %v4558_v13 }
 0x4eb   :  { %v4531_v19 = vpop.permute.xlu0 %1216  ;;  %v4533_v43 = vpop.permute.xlu1 %1204  ;;  %v716_v6 = vmul.f32 1.442695, %v659_v12  ;;  %v503_v61 = vcombine.high %v493_v3, %v493_v3  ;;  %3951 = vpow2.f32 %v666_v38  ;;  %v636_v53 = vmul.f32 %v561_v60, %v4454_v31 }
 0x4ec   :  { %v3940_v57 = vpop.eup %3939  ;;  %5646 = vst [vmem:[#allocation21_spill] sm:$0xff] %v4632_v50  ;;  %v661_v24 = vmul.f32 %v609_v26, %v4473_v42  ;;  %3953 = vpow2.f32 %v668_v18  ;;  %v637_v30 = vmul.f32 %v561_v60, %v4473_v42  ;;  %v1122_v3 = vmul.f32 %v4582_v29, %v4431_v2 }
 0x4ed   :  { %v1294_v39 = vmul.f32 %v3940_v57, %v4585_v56  ;;  %v3942_v16 = vpop.eup %3941  ;;  %3955 = vpow2.f32 %v712_v59  ;;  %v722_v12 = vmul.f32 1.442695, %v662_v51  ;;  %v663_v38 = vmul.f32 %v613_v46, %v4473_v42 }
 0x4ee   :  { %v1295_v9 = vmul.f32 %v3942_v16, %v4608_v14  ;;  %v779_v60 = vcombine.high %v4575_v32, %v4575_v32  ;;  %v670_v59 = vmul.f32 1.442695, %v636_v53  ;;  %3957 = vpow2.f32 %v716_v6 }
 0x4ef   :  { %v4549_v58 = vpop.permute.xlu0 %1016  ;;  %v4551_v21 = vpop.permute.xlu1 %1212  ;;  %v4626_v8 = vadd.f32 %v1294_v39, %v1120_v36  ;;  %v720_v2 = vmul.f32 1.442695, %v661_v24  ;;  %v672_v46 = vmul.f32 1.442695, %v637_v30  ;;  %v1123_v51 = vmul.f32 %v4582_v29, %v4447_v23 }
 0x4f0   :  { %5642 = vst [vmem:[#allocation17_spill] sm:$0xff] %v4549_v58  ;;  %v3944_v39 = vpop.eup %3943  ;;  %v4645_v16 = vadd.f32 %v1295_v9, %v1121_v52  ;;  %v569_v52 = vrot.slane %v503_v61, %v4322_v15  ;;  %v5651_v61 = vcombine.high %v4537_v48, %v4537_v48  ;;  %v748_v6 = vcombine.high %v4554_v4, %v4554_v4 }
 0x4f1   :  { %v1324_v49 = vmul.f32 %v3944_v39, %v4626_v8  ;;  %v565_v39 = vrot.slane %v501_v17, %v4322_v15  ;;  %v3946_v9 = vpop.eup %3945  ;;  %v724_v24 = vmul.f32 1.442695, %v663_v38 }
 0x4f2   :  { %v1325_v17 = vmul.f32 %v3946_v9, %v4645_v16  ;;  %v4675_v53 = vrot.slane %v5651_v61, %v4322_v15  ;;  %v1124_v61 = vmul.f32 %v4603_v37, %v4438_v5 }
 0x4f3   :  { %v4570_v35 = vpop.permute.xlu0 %1224  ;;  %v4572_v20 = vpop.permute.xlu1 %1220  ;;  %v638_v23 = vmul.f32 %v565_v39, %v4454_v31 }
 0x4f4   :  { %v3948_v29 = vpop.eup %3947 }
 0x4f7   :  { %v4596_v7 = vpop.permute.xlu0 %1232  ;;  %v4598_v44 = vpop.permute.xlu1 %1020 }
 0x4f8   :  { %5643 = vst [vmem:[#allocation18_spill] sm:$0xff] %v4596_v7  ;;  %5644 = vst [vmem:[#allocation19_spill] sm:$0xff] %v4598_v44 }
 0x4fb   :  { %v4617_v57 = vpop.permute.xlu0 %1240  ;;  %v4619_v28 = vpop.permute.xlu1 %1228 }
 0x4fc   :  { %5645 = vst [vmem:[#allocation20_spill] sm:$0xff] %v4617_v57  ;;  %v660_v57 = vmul.f32 %v609_v26, %v4454_v31 }
 0x4fe   :  { %v718_v13 = vmul.f32 1.442695, %v660_v57  ;;  %v762_v57 = vrot.slane %v4554_v4, %v4425_v62 }
 0x4ff   :  { %v4637_v36 = vpop.permute.xlu0 %1248  ;;  %v4639_v63 = vpop.permute.xlu1 %1236 }
 0x500   :  { %5647 = vst [vmem:[#allocation22_spill] sm:$0xff] %v4637_v36  ;;  %5648 = vst [vmem:[#allocation23_spill] sm:$0xff] %v4639_v63  ;;  %v4649_v36 = vrot.slane %v4575_v32, %v4322_v15  ;;  %v4662_v63 = vadd.f32 %v1324_v49, %v1122_v3  ;;  %3959 = vpow2.f32 %v718_v13  ;;  %v5650_v32 = vcombine.high %v4488_v47, %v4488_v47  ;;  %v3950_v3 = vpop.eup %3949 }
 0x501   :  { %3961 = vpow2.f32 %v722_v12  ;;  %v639_v47 = vmul.f32 %v565_v39, %v4473_v42  ;;  %v640_v13 = vmul.f32 %v569_v52, %v4454_v31  ;;  %v4686_v12 = vrot.slane %v779_v60, %v4322_v15  ;;  %v3952_v9 = vpop.eup %3951 }
 0x502   :  { %3963 = vpow2.f32 %v670_v59  ;;  %v1354_v48 = vmul.f32 %v3948_v29, %v4662_v63  ;;  %v4689_v4 = vrot.slane %v762_v57, %v4322_v15  ;;  %v778_v38 = vcombine.high %v762_v57, %v762_v57  ;;  %v3954_v39 = vpop.eup %3953 }
 0x503   :  { %v4655_v26 = vpop.permute.xlu1 %1244  ;;  %v837_v18 = vpop.permute.xlu0 %836  ;;  %3965 = vpow2.f32 %v672_v46  ;;  %v4698_v60 = vrot.slane %v748_v6, %v4425_v62  ;;  %v641_v57 = vmul.f32 %v569_v52, %v4473_v42  ;;  %v1262_v5 = vmul.f32 0.0, %v3952_v9 }
 0x504   :  { %5649 = vst [vmem:[#allocation24_spill] sm:$0xff] %v4655_v26  ;;  %v470_v26 = vrot.slane %v5650_v32, %v4425_v62  ;;  %5653 = vst [vmem:[#allocation26_spill] sm:$0xff] %v4689_v4  ;;  %v4691_v32 = vadd.f32 %v1325_v17, %v1123_v51  ;;  %3967 = vpow2.f32 %v720_v2  ;;  %v1102_v29 = vmul.f32 %v4563_v27, %v837_v18  ;;  %v3956_v44 = vpop.eup %3955 }
 0x505   :  { %v676_v51 = vmul.f32 1.442695, %v639_v47  ;;  %v678_v17 = vmul.f32 1.442695, %v640_v13  ;;  %v4703_v7 = vadd.f32 %v1354_v48, %v1124_v61  ;;  %v553_v18 = vcombine.high %v4590_v10, %v4590_v10  ;;  %v3958_v13 = vpop.eup %3957 }
 0x506   :  { %v486_v59 = vrot.slane %v470_v26, %v4425_v62  ;;  %v472_v2 = vcombine.high %v470_v26, %v470_v26  ;;  %v1125_v6 = vmul.f32 %v4603_v37, %v4458_v34  ;;  %v1263_v58 = vmul.f32 0.0, %v3954_v39 }
 0x507   :  { %v4680_v49 = vpop.permute.xlu1 %1252  ;;  %v849_v30 = vpop.permute.xlu0 %848  ;;  %3969 = vpow2.f32 %v724_v24  ;;  %v4714_v26 = vrot.slane %v4698_v60, %v4322_v15  ;;  %v4719_v52 = vadd.f32 %v1262_v5, %v1102_v29  ;;  %v1273_v9 = vmul.f32 %v4608_v14, %v4533_v43 }
 0x508   :  { %5652 = vst [vmem:[#allocation25_spill] sm:$0xff] %v4680_v49  ;;  %v674_v49 = vmul.f32 1.442695, %v638_v23  ;;  %v1355_v23 = vmul.f32 %v3956_v44, %v4691_v32  ;;  %v573_v47 = vrot.slane %v486_v59, %v4322_v15  ;;  %v680_v44 = vmul.f32 1.442695, %v641_v57 }
 0x509   :  { %v4726_v37 = vrot.slane %v472_v2, %v4425_v62  ;;  %v502_v39 = vcombine.high %v486_v59, %v486_v59  ;;  %v1126_v57 = vmul.f32 %v4593_v45, %v4445_v22  ;;  %v1272_v2 = vmul.f32 %v4585_v56, %v4502_v54 }
 0x50a   :  { %v3960_v10 = vpop.eup %3959  ;;  %3971 = vpow2.f32 %v674_v49  ;;  %v4733_v29 = vadd.f32 %v1355_v23, %v1125_v6  ;;  %v1104_v14 = vmul.f32 %v4649_v36, %v849_v30  ;;  %v643_v22 = vmul.f32 %v573_v47, %v4473_v42 }
 0x50b   :  { %v841_v4 = vpop.permute.xlu1 %840  ;;  %v4700_v46 = vpop.permute.xlu0 %860  ;;  %3973 = vpow2.f32 %v676_v51  ;;  %v1284_v6 = vsel %vm331_vm4, %v1273_v9, 0.0  ;;  %v581_v56 = vrot.slane %v502_v39, %v4322_v15  ;;  %v1303_v30 = vmul.f32 %v4645_v16, %v4551_v21 }
 0x50c   :  { %v1103_v50 = vmul.f32 %v4563_v27, %v841_v4  ;;  %v4717_v27 = vrot.slane %v778_v38, %v4322_v15  ;;  %v4728_v24 = vpop.eup %3961  ;;  %v1384_v38 = vmul.f32 %v3950_v3, %v4703_v7  ;;  %3975 = vpow2.f32 %v678_v17 }
 0x50d   :  { %v3964_v61 = vpop.eup %3963  ;;  %3977 = vpow2.f32 %v680_v44  ;;  %v1385_v23 = vmul.f32 %v3958_v13, %v4733_v29  ;;  %v504_v44 = vcombine.high %v4726_v37, %v4726_v37 }
 0x50e   :  { %v4723_v34 = vadd.f32 %v1263_v58, %v1103_v50  ;;  %v642_v58 = vmul.f32 %v573_v47, %v4454_v31  ;;  %v617_v50 = vrot.slane %v553_v18, %v4322_v15  ;;  %v3966_v49 = vpop.eup %3965  ;;  %v1292_v43 = vmul.f32 %v3964_v61, %v4719_v52 }
 0x50f   :  { %v853_v48 = vpop.permute.xlu1 %852  ;;  %v4721_v4 = vpop.permute.xlu0 %872  ;;  %v577_v18 = vrot.slane %v4726_v37, %v4322_v15  ;;  %v4751_v54 = vadd.f32 %v1384_v38, %v1126_v57  ;;  %v1283_v61 = vsel %vm331_vm4, %v1272_v2, 0.0  ;;  %v1302_v38 = vmul.f32 %v4626_v8, %v4518_v11 }
 0x510   :  { %v3968_v3 = vpop.eup %3967  ;;  %v1105_v59 = vmul.f32 %v4649_v36, %v853_v48  ;;  %v1293_v5 = vmul.f32 %v3966_v49, %v4723_v34  ;;  %v1127_v36 = vmul.f32 %v4593_v45, %v4468_v41  ;;  %v664_v48 = vmul.f32 %v617_v50, %v4454_v31 }
 0x511   :  { %v4761_v47 = vadd.f32 %v1292_v43, %v1104_v14  ;;  %v682_v9 = vmul.f32 1.442695, %v642_v58  ;;  %v1285_v39 = vadd.f32 %v1284_v6, %v1283_v61  ;;  %v644_v16 = vmul.f32 %v577_v18, %v4454_v31  ;;  %v4772_v13 = vpop.eup %3969 }
 0x512   :  { %v4769_v21 = vadd.f32 %v1293_v5, %v1105_v59  ;;  %v1414_v49 = vmul.f32 %v3960_v10, %v4751_v54  ;;  %v684_v57 = vmul.f32 1.442695, %v643_v22  ;;  %v646_v58 = vmul.f32 %v581_v56, %v4454_v31 }
 0x513   :  { %v865_v51 = vpop.permute.xlu1 %864  ;;  %v4744_v17 = vpop.permute.xlu0 %884  ;;  %v645_v37 = vmul.f32 %v577_v18, %v4473_v42  ;;  %v1314_v11 = vsel %vm331_vm4, %v1303_v30, 0.0  ;;  %v4778_v8 = vadd.f32 %v1385_v23, %v1127_v36  ;;  %v726_v14 = vmul.f32 1.442695, %v664_v48 }
 0x514   :  { %v3972_v2 = vpop.eup %3971  ;;  %v665_v43 = vmul.f32 %v617_v50, %v4473_v42  ;;  %v1128_v5 = vmul.f32 %v4615_v1, %v4456_v33  ;;  %v1333_v10 = vmul.f32 %v4691_v32, %v4572_v20  ;;  %v1106_v22 = vmul.f32 %v4675_v53, %v4700_v46 }
 0x515   :  { %v3974_v59 = vpop.eup %3973  ;;  %v1322_v18 = vmul.f32 %v3972_v2, %v4761_v47  ;;  %v1313_v30 = vsel %vm331_vm4, %v1302_v38, 0.0  ;;  %v1286_v36 = vrot.slane %v1285_v39, 4  ;;  %v1107_v23 = vmul.f32 %v4675_v53, %v865_v51 }
 0x516   :  { %v3976_v6 = vpop.eup %3975  ;;  %v1323_v33 = vmul.f32 %v3974_v59, %v4769_v21  ;;  %v1332_v20 = vmul.f32 %v4662_v63, %v4531_v19  ;;  %v1315_v32 = vadd.f32 %v1314_v11, %v1313_v30  ;;  %v4797_v61 = vadd.f32 %v1414_v49, %v1128_v5 }
 0x517   :  { %v877_v41 = vpop.permute.xlu1 %876  ;;  %v4767_v45 = vpop.permute.xlu0 %896  ;;  %v585_v46 = vrot.slane %v504_v44, %v4322_v15  ;;  %v1129_v38 = vmul.f32 %v4615_v1, %v4504_v55  ;;  %v1415_v2 = vmul.f32 %v3968_v3, %v4778_v8  ;;  %v647_v53 = vmul.f32 %v581_v56, %v4473_v42 }
 0x518   :  { %3979 = vpow2.f32 %v726_v14  ;;  %v3978_v51 = vpop.eup %3977  ;;  %v1344_v62 = vsel %vm331_vm4, %v1333_v10, 0.0  ;;  %v4805_v59 = vadd.f32 %v1322_v18, %v1106_v22  ;;  %v728_v19 = vmul.f32 1.442695, %v665_v43 }
 0x519   :  { %3981 = vpow2.f32 %v682_v9  ;;  %v1287_v63 = vadd.f32 %v1286_v36, %v1285_v39  ;;  %v4811_v44 = vadd.f32 %v1323_v33, %v1107_v23  ;;  %v686_v1 = vmul.f32 1.442695, %v644_v16 }
 0x51a   :  { %3983 = vpow2.f32 %v684_v57  ;;  %v1343_v55 = vsel %vm331_vm4, %v1332_v20, 0.0  ;;  %v1316_v3 = vrot.slane %v1315_v32, 4  ;;  %v1444_v56 = vmul.f32 %v4728_v24, %v4797_v61 }
 0x51b   :  { %v4790_v48 = vpop.permute.xlu1 %888  ;;  %v4792_v50 = vpop.permute.xlu0 %908  ;;  %v648_v14 = vmul.f32 %v585_v46, %v4454_v31  ;;  %v1345_v5 = vadd.f32 %v1344_v62, %v1343_v55  ;;  %v4817_v9 = vadd.f32 %v1415_v2, %v1129_v38  ;;  %v690_v39 = vmul.f32 1.442695, %v646_v58  ;;  %v5654_v38 = vld [vmem:[#allocation17_spill] sm:$0xff]  ;;  %v5656_v55 = vld [vmem:[#allocation18_spill] sm:$0xff] }
 0x51c   :  { %v688_v43 = vmul.f32 1.442695, %v645_v37  ;;  %v1130_v10 = vmul.f32 %v4624_v0, %v4466_v40  ;;  %v1108_v16 = vmul.f32 %v4686_v12, %v4721_v4  ;;  %v1352_v57 = vmul.f32 %v3976_v6, %v4805_v59 }
 0x51d   :  { %3985 = vpow2.f32 %v728_v19  ;;  %v1288_v22 = vrot.slane %v1287_v63, 2  ;;  %v1109_v18 = vmul.f32 %v4686_v12, %v877_v41  ;;  %v1353_v62 = vmul.f32 %v3978_v51, %v4811_v44 }
 0x51e   :  { %3987 = vpow2.f32 %v686_v1  ;;  %v1317_v58 = vadd.f32 %v1316_v3, %v1315_v32  ;;  %v4830_v37 = vadd.f32 %v1444_v56, %v1130_v10  ;;  %v694_v40 = vmul.f32 1.442695, %v648_v14  ;;  %v5657_v3 = vld [vmem:[#allocation26_spill] sm:$0xff] }
 0x51f   :  { %v4807_v49 = vpop.permute.xlu1 %900  ;;  %v4809_v11 = vpop.permute.xlu0 %1136  ;;  %v649_v30 = vmul.f32 %v585_v46, %v4473_v42  ;;  %v1131_v4 = vmul.f32 %v4624_v0, %v4520_v25  ;;  %v1346_v6 = vrot.slane %v1345_v5, 4  ;;  %v1363_v12 = vmul.f32 %v4733_v29, %v4619_v28 }
 0x520   :  { %v1445_v41 = vmul.f32 %v4772_v13, %v4817_v9  ;;  %v1362_v36 = vmul.f32 %v4703_v7, %v4570_v35  ;;  %v780_v23 = vcombine.high %v4698_v60, %v4698_v60  ;;  %v4843_v33 = vadd.f32 %v1352_v57, %v1108_v16  ;;  %v5655_v60 = vld [vmem:[#allocation21_spill] sm:$0xff] }
 0x521   :  { %3989 = vpow2.f32 %v690_v39  ;;  %v1289_v20 = vadd.f32 %v1288_v22, %v1287_v63  ;;  %v4845_v25 = vadd.f32 %v1353_v62, %v1109_v18  ;;  %v692_v28 = vmul.f32 1.442695, %v647_v53 }
 0x522   :  { %v3980_v42 = vpop.eup %3979  ;;  %3991 = vpow2.f32 %v688_v43  ;;  %v1318_v46 = vrot.slane %v1317_v58, 2  ;;  %v696_v35 = vmul.f32 1.442695, %v649_v30  ;;  %v1132_v2 = vmul.f32 %v5655_v60, %v5654_v38  ;;  %v5658_v43 = vld [vmem:[#allocation19_spill] sm:$0xff] }
 0x523   :  { %v4825_v24 = vpop.permute.xlu1 %912  ;;  %v4827_v31 = vpop.permute.xlu0 %1144  ;;  %3993 = vpow2.f32 %v694_v40  ;;  %v1474_v13 = vmul.f32 %v3980_v42, %v4830_v37  ;;  %v1347_v51 = vadd.f32 %v1346_v6, %v1345_v5  ;;  %v1374_v19 = vsel %vm331_vm4, %v1363_v12, 0.0  ;;  %v5659_v12 = vld [vmem:[#allocation23_spill] sm:$0xff] }
 0x524   :  { %v3982_v29 = vpop.eup %3981  ;;  %v4851_v63 = vadd.f32 %v1445_v41, %v1131_v4  ;;  %v1373_v1 = vsel %vm331_vm4, %v1362_v36, 0.0  ;;  %v1392_v53 = vmul.f32 %v4751_v54, %v5656_v55  ;;  %v1110_v56 = vmul.f32 %v5657_v3, %v4744_v17 }
 0x525   :  { %v3984_v7 = vpop.eup %3983  ;;  %v1382_v14 = vmul.f32 %v3982_v29, %v4843_v33  ;;  %v1290_v39 = vrot.slane %v1289_v20, 1  ;;  %v1133_v10 = vmul.f32 %v5655_v60, %v5658_v43  ;;  %v1111_v5 = vmul.f32 %v5657_v3, %v4790_v48 }
 0x526   :  { %v1383_v22 = vmul.f32 %v3984_v7, %v4845_v25  ;;  %v4866_v62 = vadd.f32 %v1318_v46, %v1317_v58  ;;  %v1375_v54 = vadd.f32 %v1374_v19, %v1373_v1  ;;  %v4869_v17 = vrot.slane %v780_v23, %v4322_v15  ;;  %v5660_v23 = vld [vmem:[#allocation20_spill] sm:$0xff] }
 0x527   :  { %v1141_v32 = vpop.permute.xlu1 %1140  ;;  %v1153_v0 = vpop.permute.xlu0 %1152  ;;  %3995 = vpow2.f32 %v692_v28  ;;  %v1348_v30 = vrot.slane %v1347_v51, 2  ;;  %v4871_v4 = vadd.f32 %v1474_v13, %v1132_v2  ;;  %v1403_v6 = vsel %vm331_vm4, %v1392_v53, 0.0  ;;  %v5661_v2 = vld [vmem:[#allocation24_spill] sm:$0xff] }
 0x528   :  { %v3986_v18 = vpop.eup %3985  ;;  %3997 = vpow2.f32 %v696_v35  ;;  %v1393_v41 = vmul.f32 %v4778_v8, %v5659_v12  ;;  %v1386_v36 = vadd.f32 %v1382_v14, %v1110_v56  ;;  %v4878_v42 = vadd.f32 %v1290_v39, %v1289_v20 }
 0x529   :  { %v3988_v40 = vpop.eup %3987  ;;  %v1475_v48 = vmul.f32 %v3986_v18, %v4851_v63  ;;  %v1422_v28 = vmul.f32 %v4797_v61, %v5660_v23  ;;  %v4882_v13 = vadd.f32 %v1383_v22, %v1111_v5  ;;  %v1320_v38 = vrot.slane %v4866_v62, 1  ;;  %v5662_v61 = vld [vmem:[#allocation22_spill] sm:$0xff] }
 0x52a   :  { %v1376_v60 = vrot.slane %v1375_v54, 4  ;;  %v1423_v8 = vmul.f32 %v4817_v9, %v5661_v2  ;;  %v4891_v19 = vadd.f32 %v1348_v30, %v1347_v51  ;;  %v1452_v1 = vmul.f32 %v4830_v37, %v5662_v61 }
 0x52b   :  { %v1149_v16 = vpop.permute.xlu1 %1148  ;;  %v4863_v57 = vpop.permute.xlu0 %920  ;;  %v4884_v35 = vadd.f32 %v1475_v48, %v1133_v10  ;;  %v1271_v55 = vmul.f32 %v4723_v34, %v1141_v32  ;;  %v1404_v56 = vsel %vm331_vm4, %v1393_v41, 0.0  ;;  %v1112_v9 = vmul.f32 %v4714_v26, %v4767_v45  ;;  %v5663_v41 = vld [vmem:[#allocation25_spill] sm:$0xff] }
 0x52c   :  { %v1301_v58 = vmul.f32 %v4769_v21, %v1149_v16  ;;  %v3990_v7 = vpop.eup %3989  ;;  %v1300_v21 = vmul.f32 %v4761_v47, %v4827_v31  ;;  %v1412_v47 = vmul.f32 %v3988_v40, %v1386_v36  ;;  %v1113_v31 = vmul.f32 %v4714_v26, %v4807_v49 }
 0x52d   :  { %v3992_v20 = vpop.eup %3991  ;;  %v1270_v37 = vmul.f32 %v4719_v52, %v4809_v11  ;;  %v1330_v34 = vmul.f32 %v4805_v59, %v1153_v0  ;;  %v1433_v39 = vsel %vm331_vm4, %v1422_v28, 0.0  ;;  %v1377_v43 = vadd.f32 %v1376_v60, %v1375_v54 }
 0x52e   :  { %v4897_v3 = vpop.eup %3993  ;;  %v1305_v14 = vsel %vm331_vm4, %v1301_v58, 0.0  ;;  %v1413_v51 = vmul.f32 %v3992_v20, %v4882_v13  ;;  %v1434_v45 = vsel %vm331_vm4, %v1423_v8, 0.0  ;;  %v1304_v10 = vsel %vm331_vm4, %v1300_v21, 0.0 }
 0x52f   :  { %v1157_v29 = vpop.permute.xlu1 %1156  ;;  %v1161_v46 = vpop.permute.xlu0 %1160  ;;  %v1405_v5 = vadd.f32 %v1404_v56, %v1403_v6  ;;  %v1275_v26 = vsel %vm331_vm4, %v1271_v55, 0.0  ;;  %v1306_v49 = vadd.f32 %v1305_v14, %v1304_v10  ;;  %v1350_v59 = vrot.slane %v4891_v19, 1 }
 0x530   :  { %v1331_v53 = vmul.f32 %v4811_v44, %v1157_v29  ;;  %v1463_v0 = vsel %vm331_vm4, %v1452_v1, 0.0  ;;  %v1360_v16 = vmul.f32 %v4843_v33, %v1161_v46  ;;  %v1416_v22 = vadd.f32 %v1412_v47, %v1112_v9 }
 0x531   :  { %v3996_v11 = vpop.eup %3995  ;;  %v1435_v54 = vadd.f32 %v1434_v45, %v1433_v39  ;;  %v1274_v40 = vsel %vm331_vm4, %v1270_v37, 0.0  ;;  %v1334_v30 = vsel %vm331_vm4, %v1330_v34, 0.0  ;;  %v1417_v12 = vadd.f32 %v1413_v51, %v1113_v31 }
 0x532   :  { %v1335_v52 = vsel %vm331_vm4, %v1331_v53, 0.0  ;;  %v3998_v18 = vpop.eup %3997  ;;  %v1453_v58 = vmul.f32 %v4851_v63, %v5663_v41  ;;  %v1276_v23 = vadd.f32 %v1275_v26, %v1274_v40  ;;  %v1378_v60 = vrot.slane %v1377_v43, 2 }
 0x533   :  { %v4908_v32 = vpop.permute.xlu1 %924  ;;  %v1169_v44 = vpop.permute.xlu0 %1168  ;;  %v1336_v28 = vadd.f32 %v1335_v52, %v1334_v30  ;;  %v1406_v2 = vrot.slane %v1405_v5, 4  ;;  %v1114_v33 = vmul.f32 %v4717_v27, %v4792_v50  ;;  %v1307_v46 = vrot.slane %v1306_v49, 4 }
 0x534   :  { %v1364_v8 = vsel %vm331_vm4, %v1360_v16, 0.0  ;;  %v1390_v21 = vmul.f32 %v1386_v36, %v1169_v44  ;;  %v1442_v61 = vmul.f32 %v3990_v7, %v1416_v22  ;;  %v1436_v1 = vrot.slane %v1435_v54, 4 }
 0x535   :  { %v1115_v63 = vmul.f32 %v4717_v27, %v4825_v24  ;;  %v1464_v9 = vsel %vm331_vm4, %v1453_v58, 0.0  ;;  %v1277_v14 = vrot.slane %v1276_v23, 4  ;;  %v1337_v47 = vrot.slane %v1336_v28, 4 }
 0x536   :  { %v4932_v31 = vadd.f32 %v1378_v60, %v1377_v43  ;;  %v1407_v36 = vadd.f32 %v1406_v2, %v1405_v5  ;;  %v1308_v37 = vadd.f32 %v1307_v46, %v1306_v49  ;;  %v1394_v7 = vsel %vm331_vm4, %v1390_v21, 0.0 }
 0x537   :  { %v1165_v48 = vpop.permute.xlu1 %1164  ;;  %v1177_v6 = vpop.permute.xlu0 %1176  ;;  %v1446_v24 = vadd.f32 %v1442_v61, %v1114_v33  ;;  %v1437_v51 = vadd.f32 %v1436_v1, %v1435_v54  ;;  %v1465_v39 = vadd.f32 %v1464_v9, %v1463_v0  ;;  %v1278_v52 = vadd.f32 %v1277_v14, %v1276_v23 }
 0x538   :  { %v1361_v29 = vmul.f32 %v4845_v25, %v1165_v48  ;;  %v1443_v25 = vmul.f32 %v3996_v11, %v1417_v12  ;;  %v1420_v44 = vmul.f32 %v1416_v22, %v1177_v6  ;;  %v1338_v43 = vadd.f32 %v1337_v47, %v1336_v28 }
 0x539   :  { %v1309_v5 = vrot.slane %v1308_v37, 2  ;;  %v1117_v49 = vmul.f32 %v4869_v17, %v4908_v32  ;;  %v1472_v48 = vmul.f32 %v4897_v3, %v1446_v24  ;;  %v1466_v6 = vrot.slane %v1465_v39, 4 }
 0x53a   :  { %v1365_v20 = vsel %vm331_vm4, %v1361_v29, 0.0  ;;  %v1447_v26 = vadd.f32 %v1443_v25, %v1115_v63  ;;  %v1424_v30 = vsel %vm331_vm4, %v1420_v44, 0.0  ;;  %v1339_v28 = vrot.slane %v1338_v43, 2 }
 0x53b   :  { %v1366_v55 = vadd.f32 %v1365_v20, %v1364_v8  ;;  %v1173_v53 = vpop.permute.xlu1 %1172  ;;  %v1185_v56 = vpop.permute.xlu0 %1184  ;;  %v1408_v3 = vrot.slane %v1407_v36, 2  ;;  %v1438_v61 = vrot.slane %v1437_v51, 2 }
 0x53c   :  { %v1391_v50 = vmul.f32 %v4882_v13, %v1173_v53  ;;  %v1116_v13 = vmul.f32 %v4869_v17, %v4863_v57  ;;  %v1450_v54 = vmul.f32 %v1446_v24, %v1185_v56  ;;  %v1473_v23 = vmul.f32 %v3998_v18, %v1447_v26 }
 0x53d   :  { %v1367_v34 = vrot.slane %v1366_v55, 4  ;;  %v1310_v17 = vadd.f32 %v1309_v5, %v1308_v37  ;;  %v1467_v53 = vadd.f32 %v1466_v6, %v1465_v39  ;;  %v1340_v25 = vadd.f32 %v1339_v28, %v1338_v43 }
 0x53e   :  { %v1395_v27 = vsel %vm331_vm4, %v1391_v50, 0.0  ;;  %v1476_v29 = vadd.f32 %v1472_v48, %v1116_v13  ;;  %v1477_v33 = vadd.f32 %v1473_v23, %v1117_v49  ;;  %v1454_v8 = vsel %vm331_vm4, %v1450_v54, 0.0 }
 0x53f   :  { %v1396_v45 = vadd.f32 %v1395_v27, %v1394_v7  ;;  %v1181_v10 = vpop.permute.xlu1 %1180  ;;  %v1368_v16 = vadd.f32 %v1367_v34, %v1366_v55  ;;  %v1193_v40 = vpop.permute.xlu0 %1192  ;;  %v1311_v14 = vrot.slane %v1310_v17, 1  ;;  %v1409_v24 = vadd.f32 %v1408_v3, %v1407_v36 }
 0x540   :  { %v1421_v11 = vmul.f32 %v1417_v12, %v1181_v10  ;;  %v1279_v12 = vrot.slane %v1278_v52, 2  ;;  %v1480_v21 = vmul.f32 %v1476_v29, %v1193_v40  ;;  %v1468_v39 = vrot.slane %v1467_v53, 2 }
 0x541   :  { %v1397_v22 = vrot.slane %v1396_v45, 4  ;;  %v1369_v32 = vrot.slane %v1368_v16, 2  ;;  %v1341_v43 = vrot.slane %v1340_v25, 1  ;;  %v1439_v5 = vadd.f32 %v1438_v61, %v1437_v51 }
 0x542   :  { %v1425_v0 = vsel %vm331_vm4, %v1421_v11, 0.0  ;;  %v1280_v56 = vadd.f32 %v1279_v12, %v1278_v52  ;;  %v1484_v7 = vsel %vm331_vm4, %v1480_v21, 0.0  ;;  %v1312_v40 = vadd.f32 %v1311_v14, %v1310_v17 }
 0x543   :  { %v1398_v41 = vadd.f32 %v1397_v22, %v1396_v45  ;;  %v1426_v58 = vadd.f32 %v1425_v0, %v1424_v30  ;;  %v1189_v57 = vpop.permute.xlu1 %1188  ;;  %v1257_v55 = vpop.permute.xlu0 %1256  ;;  %v1370_v47 = vadd.f32 %v1369_v32, %v1368_v16  ;;  %v1321_v29 = vadd.f32 %v1320_v38, %v4866_v62  ;;  %v3568_v62 = vld [vmem:[%s5581_s11] ss:$0 sm:$0xff] }
 0x544   :  { %v1451_v60 = vmul.f32 %v1447_v26, %v1189_v57  ;;  %v1482_v44 = vmul.f32 %v4871_v4, %v1257_v55  ;;  %v1281_v52 = vrot.slane %v1280_v56, 1  ;;  %v1440_v17 = vrot.slane %v1439_v5, 1 }
 0x545   :  { %v1427_v2 = vrot.slane %v1426_v58, 4  ;;  %v1399_v46 = vrot.slane %v1398_v41, 2  ;;  %v1371_v49 = vrot.slane %v1370_v47, 1  ;;  %v1351_v21 = vadd.f32 %v1350_v59, %v4891_v19 }
 0x546   :  { %v1455_v20 = vsel %vm331_vm4, %v1451_v60, 0.0  ;;  %v1493_v4 = vsel %vm331_vm4, %v1482_v44, 0.0  ;;  %v1282_v51 = vadd.f32 %v1281_v52, %v1280_v56  ;;  %v1410_v60 = vrot.slane %v1409_v24, 1 }
 0x547   :  { %v1428_v1 = vadd.f32 %v1427_v2, %v1426_v58  ;;  %v1456_v63 = vadd.f32 %v1455_v20, %v1454_v8  ;;  %v1197_v18 = vpop.permute.xlu1 %1196  ;;  %v1400_v34 = vadd.f32 %v1399_v46, %v1398_v41  ;;  %v1380_v41 = vrot.slane %v4932_v31, 1 }
 0x548   :  { %v1481_v9 = vmul.f32 %v1477_v33, %v1197_v18  ;;  %v1342_v58 = vadd.f32 %v1341_v43, %v1340_v25  ;;  %v1372_v57 = vadd.f32 %v1371_v49, %v1370_v47  ;;  %v1502_v2 = vsel %vm289_vm3, %v1282_v51, %v1312_v40 }
 0x549   :  { %v1429_v50 = vrot.slane %v1428_v1, 2  ;;  %v1457_v37 = vrot.slane %v1456_v63, 4  ;;  %v1401_v30 = vrot.slane %v1400_v34, 1  ;;  %v1503_v18 = vsel %vm289_vm3, %v4878_v42, %v1321_v29  ;;  %v3577_v29 = vld [vmem:[%s5629_s1 + $0x20] sm:$0xff] }
 0x54a   :  { %v1485_v27 = vsel %vm331_vm4, %v1481_v9, 0.0  ;;  %v1504_v3 = vsel %vm274_vm2, %v1502_v2, %v1342_v58  ;;  %v1441_v59 = vadd.f32 %v1440_v17, %v1439_v5  ;;  %v5664_v9 = vld [vmem:[#allocation10_spill] sm:$0xff]  ;;  %v3580_v2 = vld [vmem:[%s5629_s1 + $0x38] sm:$0xff] }
 0x54b   :  { %v1430_v45 = vadd.f32 %v1429_v50, %v1428_v1  ;;  %v1458_v10 = vadd.f32 %v1457_v37, %v1456_v63  ;;  %v1486_v26 = vadd.f32 %v1485_v27, %v1484_v7  ;;  %v1261_v13 = vpop.permute.xlu1 %1260  ;;  %v1402_v32 = vadd.f32 %v1401_v30, %v1400_v34  ;;  %v3579_v17 = vld [vmem:[%s5629_s1 + $0x30] sm:$0xff] }
 0x54c   :  { %v1483_v11 = vmul.f32 %v4884_v35, %v1261_v13  ;;  %v1469_v35 = vadd.f32 %v1468_v39, %v1467_v53  ;;  %v1381_v1 = vadd.f32 %v1380_v41, %v4932_v31  ;;  %v1506_v38 = vsel %vm259_vm1, %v1504_v3, %v1372_v57  ;;  %v5665_v39 = vld [vmem:[#allocation11_spill] sm:$0xff] }
 0x54d   :  { %v1459_v16 = vrot.slane %v1458_v10, 2  ;;  %v1487_v22 = vrot.slane %v1486_v26, 4  ;;  %v1431_v54 = vrot.slane %v1430_v45, 1  ;;  %v1411_v53 = vadd.f32 %v1410_v60, %v1409_v24  ;;  %v1548_v24 = vpop.permute.xlu0 %1547  ;;  %v3578_v60 = vld [vmem:[%s5629_s1 + $0x28] sm:$0xff] }
 0x54e   :  { %v1494_v36 = vsel %vm331_vm4, %v1483_v11, 0.0  ;;  %v1470_v20 = vrot.slane %v1469_v35, 1  ;;  %v1509_v19 = vsel %vm1508_vm9, %v1506_v38, %v1402_v32  ;;  %v1527_v14 = vmul.f32 %v3568_v62, %v5664_v9  ;;  %v3576_v38 = vld [vmem:[%s5631_s5 + $0x1] ss:$0 sm:$0xff]  ;;  %v3590_v9 = vld [vmem:[%s5578_s8 + $0x50] sm:$0xff] }
 0x54f   :  { %v1460_v0 = vadd.f32 %v1459_v16, %v1458_v10  ;;  %v1488_v48 = vadd.f32 %v1487_v22, %v1486_v26  ;;  %v1495_v6 = vadd.f32 %v1494_v36, %v1493_v4  ;;  %v1432_v33 = vadd.f32 %v1431_v54, %v1430_v45  ;;  %v1550_v5 = vpop.permute.xlu1 %1549  ;;  %v5666_v22 = vld [vmem:[#allocation6_spill] sm:$0xff]  ;;  %v5667_v4 = vld [vmem:[#allocation5_spill] sm:$0xff] }
 0x550   :  { %v1471_v50 = vadd.f32 %v1470_v20, %v1469_v35  ;;  %v1505_v37 = vsel %vm274_vm2, %v1503_v18, %v1351_v21  ;;  %v1528_v52 = vmul.f32 %v3568_v62, %v5665_v39  ;;  %v3847_v32 = vpack.c.bf16 %v3578_v60, %v3577_v29 }
 0x551   :  { %v1461_v23 = vrot.slane %v1460_v0, 1  ;;  %v1489_v12 = vrot.slane %v1488_v48, 2  ;;  %v1496_v28 = vrot.slane %v1495_v6, 4  ;;  %v1512_v25 = vsel %vm1511_vm10, %v1509_v19, %v1432_v33 }
 0x552   :  { %v1507_v42 = vsel %vm259_vm1, %v1505_v37, %v1381_v1  ;;  %v3851_v33 = vpack.c.bf16 %v3580_v2, %v3579_v17  ;;  %3848 = vmatprep.subr.bf16.mxu1 %v3847_v32  ;;  %v3592_v37 = vld [vmem:[%s5578_s8 + $0x60] sm:$0xff] }
 0x553   :  { %v1490_v46 = vadd.f32 %v1489_v12, %v1488_v48  ;;  %v1497_v8 = vadd.f32 %v1496_v28, %v1495_v6  ;;  %v1462_v61 = vadd.f32 %v1461_v23, %v1460_v0  ;;  %v1510_v27 = vsel %vm1508_vm9, %v1507_v42, %v1411_v53  ;;  %3850 = vmatpush3.bf16.msra.mxu1 %v3847_v32  ;;  %v3594_v42 = vld [vmem:[%s5578_s8 + $0x70] sm:$0xff] }
 0x554   :  { %v1513_v45 = vsel %vm1511_vm10, %v1510_v27, %v1441_v59  ;;  %3852 = vmatprep.subr.bf16.mxu1 %v3851_v33 }
 0x555   :  { %v1491_v63 = vrot.slane %v1490_v46, 1  ;;  %v1498_v55 = vrot.slane %v1497_v8, 2  ;;  %v1515_v47 = vsel %vm1514_vm11, %v1512_v25, %v1462_v61  ;;  %v1516_v13 = vsel %vm1514_vm11, %v1513_v45, %v1471_v50  ;;  %v3588_v25 = vld [vmem:[%s5578_s8 + $0x40] sm:$0xff] }
 0x557   :  { %v1492_v56 = vadd.f32 %v1491_v63, %v1490_v46  ;;  %v1499_v31 = vadd.f32 %v1498_v55, %v1497_v8  ;;  %3854 = vmatpush3.bf16.msra.mxu1 %v3851_v33  ;;  %v3575_v63 = vld [vmem:[%s5630_s0 + $0x1] ss:$0 sm:$0xff] }
 0x558   :  { %v3585_v33 = vld [vmem:[%s5577_s7 + $0x1] ss:$0 sm:$0xff] }
 0x559   :  { %v1518_v34 = vsel %vm1517_vm12, %v1515_v47, %v1492_v56  ;;  %v1500_v7 = vrot.slane %v1499_v31, 1  ;;  %v3591_v47 = vld [vmem:[%s5578_s8 + $0x58] sm:$0xff] }
 0x55a   :  { %v1529_v44 = vadd.f32 %v1527_v14, %v1518_v34  ;;  %v3859_v50 = vpack.c.bf16 %v3591_v47, %v3590_v9  ;;  %v3593_v34 = vld [vmem:[%s5578_s8 + $0x68] sm:$0xff] }
 0x55b   :  { %v1501_v10 = vadd.f32 %v1500_v7, %v1499_v31  ;;  %v3589_v31 = vld [vmem:[%s5578_s8 + $0x48] sm:$0xff]  ;;  %v3863_v7 = vpack.c.bf16 %v3593_v34, %v3592_v37  ;;  %v5671_v37 = vld [vmem:[#allocation12_spill] sm:$0xff] }
 0x55c   :  { %v1553_v26 = vmul.f32 %v1548_v24, %v1529_v44  ;;  %v3855_v14 = vpack.c.bf16 %v3589_v31, %v3588_v25  ;;  %v3595_v44 = vld [vmem:[%s5578_s8 + $0x78] sm:$0xff]  ;;  %v3583_v24 = vld [vmem:[%s5576_s6 + $0x4] sm:$0xf]  ;;  %s4133_s8 = smov [#allocation2]  }
 0x55d   :  { %v1519_v43 = vsel %vm1517_vm12, %v1516_v13, %v1501_v10  ;;  %v3867_v27 = vpack.c.bf16 %v3595_v44, %v3594_v42  ;;  %v5668_v10 = vld [vmem:[#allocation7_spill] sm:$0xff]  ;;  %v1795_v13 = vrot.slane %v3583_v24, %v4322_v15  ;;  %v5673_v44 = vld [vmem:[#allocation14_spill] sm:$0xff]  ;;  %s3548_s7 = sshll.u32 %s4133_s8, 4  ;;  %s3549_s7 = int_to_ptr.vmem [resolvable:$true] %s3548_s7 }
 0x55e   :  { %v1530_v11 = vadd.f32 %v1528_v52, %v1519_v43  ;;  %3732 = vmatprep.mubr.msk.f32.mxu0 %vm331_vm4, %v1553_v26  ;;  %3856 = vmatprep.subr.bf16.mxu0 %v3855_v14  ;;  %v1781_v26 = vrot.slane %v3583_v24, %v5668_v10  ;;  %s4103_s24 = scalar_lea.vmem %s3549_s7, 32  ;;  %p4108_p1 = scmp.lt.s32.totalorder %s3549_s7, %s3549_s7 }
 0x55f   :  { %p4104_p0 = scmp.ne.s32.totalorder %s3549_s7, %s4103_s24  ;;  %p4109_p2 = scmp.lt.s32.totalorder %s4103_s24, %s4103_s24 }
 0x560   :  { %v1554_v49 = vmul.f32 %v1550_v5, %v1530_v11  ;;  %v5669_v5 = vld [vmem:[#allocation8_spill] sm:$0xff] }
 0x561   :  { %p4110_p3 = por %p4109_p2, %p4108_p1 }
 0x562   :  { %3733 = vmatmul.mubr.msk.f32.vlgmr.msra.gmra.mrb[2].mxu0 %vm331_vm4, %v1554_v49  ;;  %v1809_v49 = vrot.slane %v3583_v24, %v5669_v5 }
 0x563   :  { %3858 = vmatpush3.bf16.msra.mxu0 %v3855_v14  ;;  %p4111_p4 = pnand %p4110_p3, %p4104_p0 }
 0x564   :  { %3860 = vmatprep.subr.bf16.mxu0 %v3859_v50 }
 0x567   :  { %3862 = vmatpush3.bf16.msra.mxu0 %v3859_v50 }
 0x568   :  { %3864 = vmatprep.subr.bf16.mxu0 %v3863_v7 }
 0x56b   :  { %3866 = vmatpush3.bf16.msra.mxu0 %v3863_v7  ;;  %v5672_v7 = vld [vmem:[#allocation13_spill] sm:$0xff] }
 0x56c   :  { %3868 = vmatprep.subr.bf16.mxu0 %v3867_v27 }
 0x56f   :  { %3870 = vmatpush3.bf16.msra.mxu0 %v3867_v27 }
 0x635   :  { %v3734_v16 = vpop.f32.mrb[2].mxu0 }
 0x636   :  { %v4982_v40 = vadd.f32 %v3734_v16, %v5666_v22  ;;  %v1635_v30 = vpop.f32.mrb[3].mxu0 }
 0x637   :  { %v4985_v36 = vadd.f32 %v1635_v30, %v5667_v4 }
 0x638   :  { %v1651_v54 = vsel %vm73_vm0, %v4982_v40, 0.0 }
 0x639   :  { %1652 = vadd.xlane.f32.xlu1 %v1651_v54  ;;  %v1648_v0 = vsel %vm73_vm0, %v4985_v36, 0.0 }
 0x63a   :  { %1649 = vadd.xlane.f32.xlu0 %v1648_v0 }
 0x6c6   :  { %v1653_v48 = vpop.xlane.xlu1 %1652 }
 0x6c7   :  { %v1655_v6 = vmul.f32 0.03125, %v1653_v48  ;;  %v1650_v41 = vpop.xlane.xlu0 %1649 }
 0x6c8   :  { %v1654_v35 = vmul.f32 0.03125, %v1650_v41 }
 0x6c9   :  { %v1657_v51 = vsub.f32 %v4982_v40, %v1655_v6  ;;  %v5670_v6 = vld [vmem:[#allocation9_spill] sm:$0xff] }
 0x6ca   :  { %v1656_v58 = vsub.f32 %v4985_v36, %v1654_v35  ;;  %v1823_v41 = vrot.slane %v3583_v24, %v5670_v6  ;;  %v3599_v24 = vld [vmem:[%s5579_s9 + $0x1] ss:$0 sm:$0xff] }
 0x6cb   :  { %v1659_v12 = vmul.f32 %v1657_v51, %v1657_v51 }
 0x6cc   :  { %v1658_v57 = vmul.f32 %v1656_v58, %v1656_v58 }
 0x6cd   :  { %v1663_v28 = vsel %vm73_vm0, %v1659_v12, 0.0 }
 0x6ce   :  { %v1660_v23 = vsel %vm73_vm0, %v1658_v57, 0.0 }
 0x6cf   :  { %1661 = vadd.xlane.f32.xlu0 %v1660_v23 }
 0x6d3   :  { %1664 = vadd.xlane.f32.xlu0 %v1663_v28 }
 0x75c   :  { %v1662_v46 = vpop.xlane.xlu0 %1661 }
 0x75d   :  { %v1666_v8 = vmul.f32 0.03125, %v1662_v46 }
 0x75f   :  { %v1668_v21 = vadd.f32 1e-05, %v1666_v8 }
 0x760   :  { %v1665_v20 = vpop.xlane.xlu0 %1664 }
 0x761   :  { %3999 = vrsqrt.f32 %v1668_v21  ;;  %v1667_v3 = vmul.f32 0.03125, %v1665_v20 }
 0x763   :  { %v1669_v61 = vadd.f32 1e-05, %v1667_v3 }
 0x765   :  { %4001 = vrsqrt.f32 %v1669_v61 }
 0x76b   :  { %v4000_v1 = vpop.eup %3999 }
 0x76c   :  { %v1672_v62 = vmul.f32 %v4000_v1, %v1656_v58 }
 0x76e   :  { %v1680_v55 = vmul.f32 %v3575_v63, %v1672_v62 }
 0x76f   :  { %v4002_v18 = vpop.eup %4001 }
 0x770   :  { %v1673_v53 = vmul.f32 %v4002_v18, %v1657_v51  ;;  %v1688_v19 = vadd.f32 %v3576_v38, %v1680_v55 }
 0x772   :  { %v1681_v59 = vmul.f32 %v3575_v63, %v1673_v53  ;;  %3743 = vmatprep.mubr.msk.f32.mxu1 %vm73_vm0, %v1688_v19 }
 0x774   :  { %v1689_v56 = vadd.f32 %v3576_v38, %v1681_v59 }
 0x776   :  { %3744 = vmatmul.mubr.msk.f32.vlgmr.msra.gmra.mrb[2].mxu1 %vm73_vm0, %v1689_v56 }
 0x849   :  { %v5042_v45 = vpop.f32.mrb[2].mxu1 }
 0x84a   :  { %v1787_v39 = vrot.slane %v5042_v45, 5  ;;  %v1801_v52 = vrot.slane %v5042_v45, 6  ;;  %v1815_v43 = vrot.slane %v5042_v45, 7  ;;  %v5049_v11 = vpop.f32.mrb[3].mxu1  ;;  %v1783_v0 = vmul.f32 %v5042_v45, %v1781_v26 }
 0x84b   :  { %v1786_v16 = vrot.slane %v5049_v11, 5  ;;  %v1800_v22 = vrot.slane %v5049_v11, 6  ;;  %v1814_v54 = vrot.slane %v5049_v11, 7  ;;  %v1782_v12 = vmul.f32 %v1781_v26, %v5049_v11 }
 0x84c   :  { %v1791_v30 = vsel %vm259_vm1, 0.0, %v1787_v39  ;;  %v1805_v4 = vsel %vm274_vm2, 0.0, %v1801_v52  ;;  %v1819_v35 = vsel %vm289_vm3, 0.0, %v1815_v43  ;;  %v5674_v39 = vld [vmem:[#allocation15_spill] sm:$0xff] }
 0x84d   :  { %v1797_v48 = vmul.f32 %v1795_v13, %v1791_v30  ;;  %v1790_v51 = vsel %vm259_vm1, 0.0, %v1786_v16  ;;  %v1804_v58 = vsel %vm274_vm2, 0.0, %v1800_v22  ;;  %v1811_v23 = vmul.f32 %v1809_v49, %v1805_v4 }
 0x84e   :  { %v1796_v28 = vmul.f32 %v1795_v13, %v1790_v51  ;;  %v1818_v29 = vsel %vm289_vm3, 0.0, %v1814_v54  ;;  %v1825_v60 = vmul.f32 %v1823_v41, %v1819_v35  ;;  %v1810_v32 = vmul.f32 %v1809_v49, %v1804_v58 }
 0x84f   :  { %v1799_v57 = vadd.f32 %v1797_v48, %v1783_v0  ;;  %v1824_v8 = vmul.f32 %v1823_v41, %v1818_v29 }
 0x850   :  { %v1798_v17 = vadd.f32 %v1796_v28, %v1782_v12  ;;  %v5675_v12 = vld [vmem:[#allocation16_spill] sm:$0xff] }
 0x851   :  { %v1813_v2 = vadd.f32 %v1811_v23, %v1799_v57 }
 0x852   :  { %v1812_v46 = vadd.f32 %v1810_v32, %v1798_v17 }
 0x853   :  { %v1827_v21 = vadd.f32 %v1825_v60, %v1813_v2  ;;  %v3604_v60 = vmul.f32 -1.442695, %v5049_v11  ;;  %v3605_v2 = vmul.f32 -1.442695, %v5042_v45 }
 0x854   :  { %v1826_v20 = vadd.f32 %v1824_v8, %v1812_v46  ;;  %v5133_v46 = vld [vmem:[%s5580_s10 + $0x10] sm:$0xff] }
 0x855   :  { %v1837_v3 = vadd.f32 %v3585_v33, %v1827_v21 }
 0x856   :  { %v1836_v61 = vadd.f32 %v3585_v33, %v1826_v20 }
 0x857   :  { %v3587_v1 = vmul.f32 -1.442695, %v1837_v3 }
 0x858   :  { %v3586_v63 = vmul.f32 -1.442695, %v1836_v61 }
 0x859   :  { %4003 = vpow2.f32 %v3587_v1 }
 0x85a   :  { %4005 = vpow2.f32 %v3586_v63  ;;  %v5145_v63 = vld [vmem:[%s5580_s10 + $0x18] sm:$0xff] }
 0x863   :  { %v4004_v62 = vpop.eup %4003 }
 0x864   :  { %v1845_v38 = vadd.f32 1.0, %v4004_v62  ;;  %v4006_v55 = vpop.eup %4005 }
 0x865   :  { %v1844_v18 = vadd.f32 1.0, %v4006_v55 }
 0x866   :  { %4007 = vrcp.f32 %v1845_v38 }
 0x867   :  { %4009 = vrcp.f32 %v1844_v18 }
 0x870   :  { %v4008_v53 = vpop.eup %4007 }
 0x871   :  { %v4010_v19 = vpop.eup %4009  ;;  %v5069_v56 = vmul.f32 %v4008_v53, %v1837_v3 }
 0x872   :  { %v5067_v59 = vmul.f32 %v4010_v19, %v1836_v61 }
 0x874   :  { %3762 = vmatprep.mubr.msk.f32.mxu0 %vm331_vm4, %v5067_v59 }
 0x875   :  { %3763 = vmatmul.mubr.msk.f32.vlgmr.msra.gmra.mrb[4].mxu0 %vm331_vm4, %v5069_v56 }
 0x948   :  { %v3764_v25 = vpop.f32.mrb[4].mxu0 }
 0x949   :  { %v5075_v31 = vpop.f32.mrb[5].mxu0  ;;  %v2472_v9 = vrot.slane %v3764_v25, %v5669_v5  ;;  %v2460_v14 = vrot.slane %v3764_v25, %v4322_v15  ;;  %v2484_v47 = vrot.slane %v3764_v25, %v5670_v6  ;;  %v2496_v50 = vrot.slane %v3764_v25, %v5668_v10 }
 0x94a   :  { %v2508_v34 = vrot.slane %v3764_v25, %v5671_v37  ;;  %v2520_v42 = vrot.slane %v3764_v25, %v5672_v7  ;;  %v2532_v27 = vrot.slane %v3764_v25, %v5673_v44  ;;  %v1951_v26 = vadd.f32 %v3764_v25, %v3599_v24 }
 0x94b   :  { %2475 = vbcast.lane.b32.xlu0 %v2472_v9, 320  ;;  %2463 = vbcast.lane.b32.xlu1 %v2460_v14, 320  ;;  %v5088_v52 = vrot.slane %v3764_v25, %v5674_v39  ;;  %v2364_v16 = vrot.slane %v5075_v31, %v4322_v15  ;;  %v2376_v30 = vrot.slane %v5075_v31, %v5669_v5 }
 0x94c   :  { %v1955_v13 = vmin.f32 %v1951_v26, 20.0  ;;  %v2388_v4 = vrot.slane %v5075_v31, %v5670_v6  ;;  %v5100_v54 = vrot.slane %v5075_v31, %v5668_v10  ;;  %v5105_v5 = vrot.slane %v5075_v31, %v5671_v37 }
 0x94d   :  { %v5110_v51 = vrot.slane %v5075_v31, %v5672_v7  ;;  %v5116_v57 = vrot.slane %v5075_v31, %v5673_v44  ;;  %vm1953_vm14 = vcmp.gt.f32.partialorder %v1951_v26, 20.0  ;;  %v5125_v17 = vadd.f32 %v3599_v24, %v5075_v31 }
 0x94e   :  { %v1958_v43 = vmul.f32 1.442695, %v1955_v13  ;;  %v5139_v20 = vrot.slane %v5075_v31, %v5674_v39 }
 0x94f   :  { %2487 = vbcast.lane.b32.xlu0 %v2484_v47, 320  ;;  %2467 = vbcast.lane.b32.xlu1 %v2460_v14, 328  ;;  %v1954_v8 = vmin.f32 %v5125_v17, 20.0  ;;  %vm1952_vm5 = vcmp.gt.f32.partialorder %v5125_v17, 20.0 }
 0x950   :  { %4011 = vpow2.f32 %v1958_v43 }
 0x951   :  { %v1956_v62 = vmul.f32 1.442695, %v1954_v8 }
 0x953   :  { %2499 = vbcast.lane.b32.xlu0 %v2496_v50, 320  ;;  %2479 = vbcast.lane.b32.xlu1 %v2472_v9, 328 }
 0x957   :  { %2511 = vbcast.lane.b32.xlu0 %v2508_v34, 320  ;;  %2491 = vbcast.lane.b32.xlu1 %v2484_v47, 328 }
 0x95a   :  { %v4012_v49 = vpop.eup %4011 }
 0x95b   :  { %2523 = vbcast.lane.b32.xlu0 %v2520_v42, 320  ;;  %2503 = vbcast.lane.b32.xlu1 %v2496_v50, 328  ;;  %v1969_v22 = vadd.f32 1.0, %v4012_v49  ;;  %v1972_v0 = vmul.f32 -0.5, %v4012_v49  ;;  %v1975_v35 = vand.u32 2147483647, %v4012_v49 }
 0x95d   :  { %4013 = vlog2.f32 %v1969_v22  ;;  %v1973_v41 = vadd.f32 1.0, %v1972_v0  ;;  %vm1976_vm13 = vcmp.lt.f32.partialorder %v1975_v35, 0.0004427343 }
 0x95e   :  { %4015 = vpow2.f32 %v3604_v60 }
 0x95f   :  { %2535 = vbcast.lane.b32.xlu0 %v2532_v27, 320  ;;  %2515 = vbcast.lane.b32.xlu1 %v2508_v34, 328  ;;  %v1974_v10 = vmul.f32 %v4012_v49, %v1973_v41  ;;  %4017 = vpow2.f32 %v3605_v2 }
 0x960   :  { %4019 = vpow2.f32 %v1956_v62 }
 0x963   :  { %2731 = vbcast.lane.b32.xlu0 %v2460_v14, 336  ;;  %2527 = vbcast.lane.b32.xlu1 %v2520_v42, 328 }
 0x967   :  { %2739 = vbcast.lane.b32.xlu0 %v2472_v9, 336  ;;  %2539 = vbcast.lane.b32.xlu1 %v2532_v27, 328  ;;  %v4014_v48 = vpop.eup %4013 }
 0x968   :  { %v1971_v6 = vmul.f32 0.6931472, %v4014_v48 }
 0x96a   :  { %v1977_v58 = vsel %vm1976_vm13, %v1974_v10, %v1971_v6 }
 0x96b   :  { %2747 = vbcast.lane.b32.xlu0 %v2484_v47, 336  ;;  %2735 = vbcast.lane.b32.xlu1 %v2460_v14, 344  ;;  %v1979_v23 = vsel %vm1953_vm14, %v1951_v26, %v1977_v58 }
 0x96c   :  { %v2043_v28 = vrot.slane %v1979_v23, %v5675_v12  ;;  %v2036_v61 = vcombine.high %v1979_v23, %v1979_v23  ;;  %v1984_v55 = vmul.f32 %v1979_v23, %v5069_v56 }
 0x96e   :  { %v2059_v29 = vrot.slane %v2043_v28, %v5675_v12  ;;  %v2051_v32 = vcombine.high %v2043_v28, %v2043_v28  ;;  %v2050_v19 = vrot.slane %v2036_v61, %v5675_v12  ;;  %v2319_v14 = vrot.slane %v1984_v55, %v5675_v12 }
 0x96f   :  { %2547 = vbcast.lane.b32.xlu0 %v5088_v52, 320  ;;  %2743 = vbcast.lane.b32.xlu1 %v2472_v9, 344  ;;  %v2312_v35 = vcombine.high %v1984_v55, %v1984_v55 }
 0x970   :  { %v2120_v33 = vrot.slane %v2059_v29, %v4322_v15  ;;  %v2073_v21 = vrot.slane %v2051_v32, %v5675_v12  ;;  %v2081_v1 = vcombine.high %v2059_v29, %v2059_v29  ;;  %v2066_v37 = vrot.slane %v2050_v19, %v5675_v12 }
 0x971   :  { %v2052_v24 = vcombine.high %v2050_v19, %v2050_v19  ;;  %v2327_v13 = vcombine.high %v2319_v14, %v2319_v14  ;;  %v2335_v48 = vrot.slane %v2319_v14, %v5675_v12 }
 0x972   :  { %v2181_v3 = vmul.f32 %v5133_v46, %v2120_v33  ;;  %v2124_v38 = vrot.slane %v2073_v21, %v4322_v15  ;;  %v2182_v53 = vmul.f32 %v5145_v63, %v2120_v33  ;;  %v2128_v25 = vrot.slane %v2081_v1, %v4322_v15 }
 0x973   :  { %2755 = vbcast.lane.b32.xlu0 %v2496_v50, 336  ;;  %2751 = vbcast.lane.b32.xlu1 %v2484_v47, 344  ;;  %v2083_v31 = vcombine.high %v2073_v21, %v2073_v21  ;;  %v4016_v47 = vpop.eup %4015  ;;  %v2136_v43 = vrot.slane %v2066_v37, %v4322_v15  ;;  %v2349_v0 = vrot.slane %v2327_v13, %v5675_v12 }
 0x974   :  { %v2229_v18 = vmul.f32 1.442695, %v2181_v3  ;;  %v2183_v9 = vmul.f32 %v5133_v46, %v2124_v38  ;;  %v2185_v7 = vmul.f32 %v5133_v46, %v2128_v25  ;;  %v2184_v44 = vmul.f32 %v5145_v63, %v2124_v38 }
 0x975   :  { %v3065_v26 = vadd.f32 1.0, %v4016_v47  ;;  %v2189_v6 = vmul.f32 %v5133_v46, %v2136_v43  ;;  %v2592_v60 = vrot.slane %v2349_v0, %v4322_v15  ;;  %v2588_v32 = vrot.slane %v2335_v48, %v4322_v15 }
 0x976   :  { %4021 = vpow2.f32 %v2229_v18  ;;  %v2237_v49 = vmul.f32 1.442695, %v2185_v7  ;;  %v2235_v22 = vmul.f32 1.442695, %v2184_v44  ;;  %v2357_v2 = vcombine.high %v2335_v48, %v2335_v48 }
 0x977   :  { %2763 = vbcast.lane.b32.xlu0 %v2508_v34, 336  ;;  %2551 = vbcast.lane.b32.xlu1 %v5088_v52, 328  ;;  %v2326_v3 = vrot.slane %v2312_v35, %v5675_v12  ;;  %v2190_v1 = vmul.f32 %v5145_v63, %v2136_v43 }
 0x979   :  { %v2247_v7 = vmul.f32 1.442695, %v2190_v1 }
 0x97b   :  { %2771 = vbcast.lane.b32.xlu0 %v2520_v42, 336  ;;  %2759 = vbcast.lane.b32.xlu1 %v2496_v50, 344  ;;  %v2231_v50 = vmul.f32 1.442695, %v2182_v53 }
 0x97d   :  { %4023 = vpow2.f32 %v2231_v50 }
 0x97f   :  { %2779 = vbcast.lane.b32.xlu0 %v2532_v27, 336  ;;  %2767 = vbcast.lane.b32.xlu1 %v2508_v34, 344  ;;  %v4018_v34 = vpop.eup %4017 }
 0x980   :  { %v3066_v39 = vadd.f32 1.0, %v4018_v34  ;;  %v5170_v41 = vpop.eup %4019  ;;  %v5190_v34 = vrot.slane %v2326_v3, %v5675_v12 }
 0x981   :  { %v4022_v58 = vpop.eup %4021  ;;  %v1960_v33 = vadd.f32 1.0, %v5170_v41 }
 0x982   :  { %v2795_v55 = vmul.f32 0.0, %v4022_v58 }
 0x983   :  { %2775 = vbcast.lane.b32.xlu1 %v2520_v42, 344  ;;  %2367 = vbcast.lane.b32.xlu0 %v2364_v16, 320  ;;  %v2233_v42 = vmul.f32 1.442695, %v2183_v9  ;;  %v2359_v9 = vcombine.high %v2349_v0, %v2349_v0 }
 0x985   :  { %4025 = vpow2.f32 %v2233_v42 }
 0x986   :  { %4027 = vrcp.f32 %v3065_v26 }
 0x987   :  { %2783 = vbcast.lane.b32.xlu1 %v2532_v27, 344  ;;  %2379 = vbcast.lane.b32.xlu0 %v2376_v30, 320  ;;  %v2132_v27 = vrot.slane %v2083_v31, %v4322_v15  ;;  %4029 = vrcp.f32 %v3066_v39  ;;  %v4024_v18 = vpop.eup %4023  ;;  %v2596_v31 = vrot.slane %v2357_v2, %v4322_v15 }
 0x988   :  { %4031 = vpow2.f32 %v2237_v49  ;;  %v2796_v26 = vmul.f32 0.0, %v4024_v18 }
 0x989   :  { %4033 = vpow2.f32 %v2235_v22  ;;  %v2188_v29 = vmul.f32 %v5145_v63, %v2132_v27  ;;  %v2600_v22 = vrot.slane %v2359_v9, %v4322_v15 }
 0x98b   :  { %2371 = vbcast.lane.b32.xlu1 %v2364_v16, 328  ;;  %2391 = vbcast.lane.b32.xlu0 %v2388_v4, 320  ;;  %v2243_v19 = vmul.f32 1.442695, %v2188_v29 }
 0x98f   :  { %2383 = vbcast.lane.b32.xlu1 %v2376_v30, 328  ;;  %2403 = vbcast.lane.b32.xlu0 %v5100_v54, 320  ;;  %v4026_v47 = vpop.eup %4025 }
 0x990   :  { %v4028_v42 = vpop.eup %4027 }
 0x991   :  { %v4030_v13 = vpop.eup %4029 }
 0x993   :  { %2395 = vbcast.lane.b32.xlu1 %v2388_v4, 328  ;;  %2415 = vbcast.lane.b32.xlu0 %v5105_v5, 320 }
 0x997   :  { %2407 = vbcast.lane.b32.xlu1 %v5100_v54, 328  ;;  %2427 = vbcast.lane.b32.xlu0 %v5110_v51, 320 }
 0x99b   :  { %2419 = vbcast.lane.b32.xlu1 %v5105_v5, 328  ;;  %2439 = vbcast.lane.b32.xlu0 %v5116_v57, 320 }
 0x99f   :  { %2431 = vbcast.lane.b32.xlu1 %v5110_v51, 328  ;;  %2667 = vbcast.lane.b32.xlu0 %v2364_v16, 336 }
 0x9a3   :  { %2443 = vbcast.lane.b32.xlu1 %v5116_v57, 328  ;;  %2675 = vbcast.lane.b32.xlu0 %v2376_v30, 336 }
 0x9a7   :  { %2671 = vbcast.lane.b32.xlu1 %v2364_v16, 344  ;;  %2683 = vbcast.lane.b32.xlu0 %v2388_v4, 336  ;;  %v2186_v16 = vmul.f32 %v5145_v63, %v2128_v25 }
 0x9a9   :  { %v2239_v10 = vmul.f32 1.442695, %v2186_v16  ;;  %v4032_v16 = vpop.eup %4031 }
 0x9aa   :  { %v4034_v48 = vpop.eup %4033 }
 0x9ab   :  { %2679 = vbcast.lane.b32.xlu1 %v2376_v30, 344  ;;  %2451 = vbcast.lane.b32.xlu0 %v5139_v20, 320  ;;  %v2187_v30 = vmul.f32 %v5133_v46, %v2132_v27  ;;  %4035 = vpow2.f32 %v2239_v10 }
 0x9ad   :  { %v2241_v23 = vmul.f32 1.442695, %v2187_v30  ;;  %v2328_v30 = vcombine.high %v2326_v3, %v2326_v3 }
 0x9af   :  { %2687 = vbcast.lane.b32.xlu1 %v2388_v4, 344  ;;  %2691 = vbcast.lane.b32.xlu0 %v5100_v54, 336  ;;  %v2080_v4 = vrot.slane %v2052_v24, %v5675_v12  ;;  %4037 = vpow2.f32 %v2241_v23 }
 0x9b0   :  { %4039 = vlog2.f32 %v1960_v33 }
 0x9b1   :  { %v2140_v28 = vrot.slane %v2080_v4, %v4322_v15  ;;  %v2084_v25 = vcombine.high %v2080_v4, %v2080_v4 }
 0x9b3   :  { %2455 = vbcast.lane.b32.xlu1 %v5139_v20, 328  ;;  %2699 = vbcast.lane.b32.xlu0 %v5105_v5, 336  ;;  %v2191_v53 = vmul.f32 %v5133_v46, %v2140_v28  ;;  %v2192_v43 = vmul.f32 %v5145_v63, %v2140_v28  ;;  %v2148_v49 = vrot.slane %v2084_v25, %v4322_v15 }
 0x9b5   :  { %v2249_v39 = vmul.f32 1.442695, %v2191_v53  ;;  %v2195_v2 = vmul.f32 %v5133_v46, %v2148_v49  ;;  %v4036_v33 = vpop.eup %4035  ;;  %v2196_v9 = vmul.f32 %v5145_v63, %v2148_v49 }
 0x9b7   :  { %2695 = vbcast.lane.b32.xlu1 %v5100_v54, 344  ;;  %2707 = vbcast.lane.b32.xlu0 %v5110_v51, 336  ;;  %v2082_v54 = vcombine.high %v2066_v37, %v2066_v37  ;;  %v2257_v25 = vmul.f32 1.442695, %v2195_v2 }
 0x9b9   :  { %v2144_v61 = vrot.slane %v2082_v54, %v4322_v15  ;;  %v4038_v3 = vpop.eup %4037 }
 0x9ba   :  { %v4040_v1 = vpop.eup %4039 }
 0x9bb   :  { %2703 = vbcast.lane.b32.xlu1 %v5105_v5, 344  ;;  %2715 = vbcast.lane.b32.xlu0 %v5116_v57, 336  ;;  %v2245_v5 = vmul.f32 1.442695, %v2189_v6  ;;  %v2194_v10 = vmul.f32 %v5145_v63, %v2144_v61 }
 0x9bd   :  { %v2476_v8 = vpop.permute.xlu0 %2475  ;;  %v2464_v21 = vpop.permute.xlu1 %2463  ;;  %4041 = vpow2.f32 %v2245_v5 }
 0x9be   :  { %v2651_v62 = vmul.f32 %v2592_v60, %v2476_v8  ;;  %v2649_v38 = vmul.f32 %v2588_v32, %v2464_v21  ;;  %4043 = vpow2.f32 %v2243_v19  ;;  %v5213_v8 = vrot.slane %v2328_v30, %v5675_v12 }
 0x9bf   :  { %2711 = vbcast.lane.b32.xlu1 %v5110_v51, 344  ;;  %2723 = vbcast.lane.b32.xlu0 %v5139_v20, 336  ;;  %v2193_v51 = vmul.f32 %v5133_v46, %v2144_v61  ;;  %4045 = vpow2.f32 %v2247_v7  ;;  %v2255_v61 = vmul.f32 1.442695, %v2194_v10  ;;  %v1963_v19 = vmul.f32 -0.5, %v5170_v41 }
 0x9c0   :  { %v5187_v14 = vadd.f32 %v2795_v55, %v2649_v38  ;;  %4047 = vpow2.f32 %v2249_v39 }
 0x9c1   :  { %v2488_v50 = vpop.permute.xlu0 %2487  ;;  %v2468_v37 = vpop.permute.xlu1 %2467  ;;  %v2253_v54 = vmul.f32 1.442695, %v2193_v51 }
 0x9c2   :  { %v2653_v44 = vmul.f32 %v2596_v31, %v2488_v50  ;;  %v2650_v27 = vmul.f32 %v2588_v32, %v2468_v37  ;;  %v2825_v24 = vmul.f32 %v4026_v47, %v5187_v14  ;;  %v2251_v32 = vmul.f32 1.442695, %v2192_v43 }
 0x9c3   :  { %2719 = vbcast.lane.b32.xlu1 %v5116_v57, 344  ;;  %2787 = vbcast.lane.b32.xlu0 %v5088_v52, 336  ;;  %v3071_v57 = vmul.f32 %v4028_v42, %v5049_v11  ;;  %v2604_v11 = vrot.slane %v5190_v34, %v4322_v15  ;;  %4049 = vpow2.f32 %v2253_v54  ;;  %v2608_v47 = vrot.slane %v5213_v8, %v4322_v15 }
 0x9c4   :  { %v5199_v4 = vadd.f32 %v2825_v24, %v2651_v62  ;;  %v5201_v0 = vadd.f32 %v2796_v26, %v2650_v27  ;;  %4051 = vpow2.f32 %v2251_v32  ;;  %v2358_v50 = vcombine.high %v5190_v34, %v5190_v34 }
 0x9c5   :  { %v2500_v35 = vpop.permute.xlu0 %2499  ;;  %v2480_v6 = vpop.permute.xlu1 %2479  ;;  %4053 = vpow2.f32 %v2255_v61  ;;  %v1964_v34 = vadd.f32 1.0, %v1963_v19  ;;  %v2259_v43 = vmul.f32 1.442695, %v2196_v9  ;;  %v3610_v61 = vld [vmem:[%s5582_s12 + $0x60] sm:$0xff] }
 0x9c6   :  { %v2655_v58 = vmul.f32 %v2600_v22, %v2500_v35  ;;  %v2652_v23 = vmul.f32 %v2592_v60, %v2480_v6  ;;  %v2855_v28 = vmul.f32 %v4032_v16, %v5199_v4  ;;  %v2826_v29 = vmul.f32 %v4034_v48, %v5201_v0 }
 0x9c7   :  { %2727 = vbcast.lane.b32.xlu1 %v5139_v20, 344  ;;  %3075 = vrot.lane.b32.xlu0 %v3071_v57, %s4128_s4  ;;  %v4042_v53 = vpop.eup %4041  ;;  %4055 = vpow2.f32 %v2257_v25  ;;  %v2612_v49 = vrot.slane %v2358_v50, %v4322_v15  ;;  %v1962_v35 = vmul.f32 0.6931472, %v4040_v1  ;;  %v1965_v32 = vmul.f32 %v5170_v41, %v1964_v34 }
 0x9c8   :  { %v5215_v60 = vadd.f32 %v2855_v28, %v2653_v44  ;;  %v5217_v21 = vadd.f32 %v2826_v29, %v2652_v23  ;;  %v4044_v51 = vpop.eup %4043  ;;  %v3607_v23 = vld [vmem:[%s5582_s12 + $0x48] sm:$0xff]  ;;  %v3608_v28 = vld [vmem:[%s5582_s12 + $0x50] sm:$0xff]  ;;  %4057 = vpow2.f32 %v2259_v43 }
 0x9c9   :  { %v2512_v5 = vpop.permute.xlu0 %2511  ;;  %v2492_v20 = vpop.permute.xlu1 %2491 }
 0x9ca   :  { %v2657_v62 = vmul.f32 %v2604_v11, %v2512_v5  ;;  %v2654_v38 = vmul.f32 %v2596_v31, %v2492_v20  ;;  %v2885_v55 = vmul.f32 %v4038_v3, %v5215_v60  ;;  %v2856_v18 = vmul.f32 %v4036_v33, %v5217_v21  ;;  %v4046_v39 = vpop.eup %4045  ;;  %v3609_v33 = vld [vmem:[%s5582_s12 + $0x58] sm:$0xff] }
 0x9cb   :  { %2791 = vbcast.lane.b32.xlu1 %v5088_v52, 344  ;;  %v3072_v52 = vmul.f32 %v4030_v13, %v5042_v45  ;;  %v1966_v45 = vand.u32 2147483647, %v5170_v41  ;;  %v4048_v13 = vpop.eup %4047  ;;  %v3875_v20 = vpack.c.bf16 %v3609_v33, %v3608_v28  ;;  %v3611_v41 = vld [vmem:[%s5582_s12 + $0x68] sm:$0xff] }
 0x9cc   :  { %v5228_v31 = vadd.f32 %v2885_v55, %v2655_v58  ;;  %v5230_v37 = vadd.f32 %v2856_v18, %v2654_v38  ;;  %v3606_v58 = vld [vmem:[%s5582_s12 + $0x40] sm:$0xff]  ;;  %v3879_v50 = vpack.c.bf16 %v3611_v41, %v3610_v61 }
 0x9cd   :  { %v2524_v7 = vpop.permute.xlu0 %2523  ;;  %v2504_v42 = vpop.permute.xlu1 %2503  ;;  %v3871_v2 = vpack.c.bf16 %v3607_v23, %v3606_v58  ;;  %vm5261_vm15 = vcmp.lt.f32.partialorder %v1966_v45, 0.0004427343  ;;  %v2360_v45 = vcombine.high %v5213_v8, %v5213_v8 }
 0x9ce   :  { %v2659_v44 = vmul.f32 %v2608_v47, %v2524_v7  ;;  %v2656_v27 = vmul.f32 %v2600_v22, %v2504_v42  ;;  %v2915_v24 = vmul.f32 %v4042_v53, %v5228_v31  ;;  %v2886_v26 = vmul.f32 %v4044_v51, %v5230_v37  ;;  %v4050_v29 = vpop.eup %4049 }
 0x9cf   :  { %3077 = vrot.lane.b32.xlu1 %v3072_v52, %s4128_s4  ;;  %v4052_v1 = vpop.eup %4051  ;;  %v1968_v55 = vsel %vm5261_vm15, %v1965_v32, %v1962_v35  ;;  %3872 = vmatprep.subr.bf16.mxu1 %v3871_v2 }
 0x9d0   :  { %v5237_v16 = vadd.f32 %v2915_v24, %v2657_v62  ;;  %v5239_v30 = vadd.f32 %v2886_v26, %v2656_v27  ;;  %3874 = vmatpush3.bf16.msra.mxu1 %v3871_v2  ;;  %v4054_v9 = vpop.eup %4053  ;;  %v5282_v42 = vsel %vm1952_vm5, %v5125_v17, %v1968_v55 }
 0x9d1   :  { %v2536_v22 = vpop.permute.xlu0 %2535  ;;  %v2516_v48 = vpop.permute.xlu1 %2515  ;;  %3876 = vmatprep.subr.bf16.mxu1 %v3875_v20  ;;  %v1994_v17 = vrot.slane %v5282_v42, %v5675_v12 }
 0x9d2   :  { %v2661_v6 = vmul.f32 %v2612_v49, %v2536_v22  ;;  %v2658_v57 = vmul.f32 %v2604_v11, %v2516_v48  ;;  %v2945_v54 = vmul.f32 %v4048_v13, %v5237_v16  ;;  %v2916_v10 = vmul.f32 %v4046_v39, %v5239_v30  ;;  %v4056_v52 = vpop.eup %4055 }
 0x9d3   :  { %v4058_v22 = vpop.eup %4057  ;;  %v2002_v5 = vcombine.high %v1994_v17, %v1994_v17 }
 0x9d4   :  { %v5257_v11 = vadd.f32 %v2945_v54, %v2659_v44  ;;  %v5259_v3 = vadd.f32 %v2916_v10, %v2658_v57  ;;  %3878 = vmatpush3.bf16.msra.mxu1 %v3875_v20  ;;  %v5303_v57 = vrot.slane %v1994_v17, %v5675_v12  ;;  %v2616_v10 = vrot.slane %v2360_v45, %v4322_v15 }
 0x9d5   :  { %v2732_v62 = vpop.permute.xlu0 %2731  ;;  %v2528_v38 = vpop.permute.xlu1 %2527  ;;  %3880 = vmatprep.subr.bf16.mxu1 %v3879_v50 }
 0x9d6   :  { %v2803_v18 = vmul.f32 %v5187_v14, %v2732_v62  ;;  %v2660_v53 = vmul.f32 %v2608_v47, %v2528_v38  ;;  %v2975_v19 = vmul.f32 %v4050_v29, %v5257_v11  ;;  %v2946_v25 = vmul.f32 %v4052_v1, %v5259_v3  ;;  %v3612_v14 = vld [vmem:[%s5582_s12 + $0x70] sm:$0xff]  ;;  %v3613_v47 = vld [vmem:[%s5582_s12 + $0x78] sm:$0xff] }
 0x9d7   :  { %v3883_v43 = vpack.c.bf16 %v3613_v47, %v3612_v14  ;;  %v2088_v32 = vrot.slane %v5303_v57, %v4322_v15 }
 0x9d8   :  { %v5277_v51 = vadd.f32 %v2975_v19, %v2661_v6  ;;  %v5279_v7 = vadd.f32 %v2946_v25, %v2660_v53  ;;  %3882 = vmatpush3.bf16.msra.mxu1 %v3879_v50  ;;  %v2814_v54 = vsel %vm331_vm4, %v2803_v18, 0.0 }
 0x9d9   :  { %v2740_v44 = vpop.permute.xlu0 %2739  ;;  %v2540_v27 = vpop.permute.xlu1 %2539  ;;  %3884 = vmatprep.subr.bf16.mxu1 %v3883_v43  ;;  %v2165_v53 = vmul.f32 %v5133_v46, %v2088_v32  ;;  %v2166_v50 = vmul.f32 %v5145_v63, %v2088_v32 }
 0x9da   :  { %v2833_v24 = vmul.f32 %v5199_v4, %v2740_v44  ;;  %v2662_v26 = vmul.f32 %v2612_v49, %v2540_v27  ;;  %v2976_v39 = vmul.f32 %v4054_v9, %v5279_v7  ;;  %v3005_v34 = vmul.f32 %v4056_v52, %v5277_v51 }
 0x9db   :  { %v5321_v9 = vrot.slane %v2002_v5, %v5675_v12 }
 0x9dc   :  { %v5297_v13 = vadd.f32 %v2976_v39, %v2662_v26  ;;  %3886 = vmatpush3.bf16.msra.mxu1 %v3883_v43  ;;  %v2844_v2 = vsel %vm331_vm4, %v2833_v24, 0.0  ;;  %v5327_v24 = vmul.f32 %v5282_v42, %v5067_v59  ;;  %v2199_v43 = vmul.f32 1.442695, %v2166_v50 }
 0x9dd   :  { %v2748_v48 = vpop.permute.xlu0 %2747  ;;  %v2736_v35 = vpop.permute.xlu1 %2735  ;;  %v2092_v17 = vrot.slane %v5321_v9, %v4322_v15 }
 0x9de   :  { %v2863_v4 = vmul.f32 %v5215_v60, %v2748_v48  ;;  %v2804_v49 = vmul.f32 %v5201_v0, %v2736_v35  ;;  %v3006_v6 = vmul.f32 %v4058_v22, %v5297_v13 }
 0x9e0   :  { %v2815_v8 = vsel %vm331_vm4, %v2804_v49, 0.0  ;;  %v2874_v19 = vsel %vm331_vm4, %v2863_v4, 0.0 }
 0x9e1   :  { %v2816_v58 = vadd.f32 %v2815_v8, %v2814_v54  ;;  %v2548_v23 = vpop.permute.xlu0 %2547  ;;  %v2744_v28 = vpop.permute.xlu1 %2743  ;;  %v2270_v8 = vrot.slane %v5327_v24, %v5675_v12 }
 0x9e2   :  { %v2663_v29 = vmul.f32 %v2616_v10, %v2548_v23  ;;  %v2834_v60 = vmul.f32 %v5217_v21, %v2744_v28  ;;  %v2032_v23 = vcombine.high %v5303_v57, %v5303_v57 }
 0x9e3   :  { %v2817_v0 = vrot.slane %v2816_v58, 4  ;;  %v5345_v57 = vrot.slane %v2270_v8, %v5675_v12 }
 0x9e4   :  { %v2845_v33 = vsel %vm331_vm4, %v2834_v60, 0.0  ;;  %v5313_v20 = vadd.f32 %v3005_v34, %v2663_v29  ;;  %v2197_v34 = vmul.f32 1.442695, %v2165_v53  ;;  %v2167_v29 = vmul.f32 %v5133_v46, %v2092_v17 }
 0x9e5   :  { %v2818_v61 = vadd.f32 %v2817_v0, %v2816_v58  ;;  %v2846_v41 = vadd.f32 %v2845_v33, %v2844_v2  ;;  %v2756_v1 = vpop.permute.xlu0 %2755  ;;  %v2752_v62 = vpop.permute.xlu1 %2751 }
 0x9e6   :  { %v2893_v38 = vmul.f32 %v5228_v31, %v2756_v1  ;;  %v2864_v21 = vmul.f32 %v5230_v37, %v2752_v62  ;;  %4059 = vpow2.f32 %v2197_v34  ;;  %v2201_v50 = vmul.f32 1.442695, %v2167_v29 }
 0x9e7   :  { %v2819_v55 = vrot.slane %v2818_v61, 2  ;;  %v2847_v18 = vrot.slane %v2846_v41, 4  ;;  %4061 = vpow2.f32 %v2199_v43 }
 0x9e8   :  { %v2875_v25 = vsel %vm331_vm4, %v2864_v21, 0.0  ;;  %4063 = vpow2.f32 %v2201_v50 }
 0x9e9   :  { %v2820_v14 = vadd.f32 %v2819_v55, %v2818_v61  ;;  %v2848_v47 = vadd.f32 %v2847_v18, %v2846_v41  ;;  %v2876_v52 = vadd.f32 %v2875_v25, %v2874_v19  ;;  %v2764_v44 = vpop.permute.xlu0 %2763  ;;  %v2552_v31 = vpop.permute.xlu1 %2551  ;;  %v2168_v61 = vmul.f32 %v5145_v63, %v2092_v17 }
 0x9ea   :  { %v2923_v37 = vmul.f32 %v5237_v16, %v2764_v44  ;;  %v2664_v27 = vmul.f32 %v2616_v10, %v2552_v31  ;;  %v2278_v18 = vcombine.high %v2270_v8, %v2270_v8  ;;  %v1987_v44 = vcombine.high %v5282_v42, %v5282_v42 }
 0x9eb   :  { %v2849_v26 = vrot.slane %v2848_v47, 2  ;;  %v2877_v39 = vrot.slane %v2876_v52, 4  ;;  %v2821_v22 = vrot.slane %v2820_v14, 1 }
 0x9ec   :  { %v5331_v45 = vadd.f32 %v3006_v6, %v2664_v27  ;;  %v2904_v6 = vsel %vm331_vm4, %v2893_v38, 0.0  ;;  %v2096_v38 = vrot.slane %v2032_v23, %v4322_v15  ;;  %v2934_v21 = vsel %vm331_vm4, %v2923_v37, 0.0 }
 0x9ed   :  { %v2850_v48 = vadd.f32 %v2849_v26, %v2848_v47  ;;  %v2878_v35 = vadd.f32 %v2877_v39, %v2876_v52  ;;  %v2772_v4 = vpop.permute.xlu0 %2771  ;;  %v2760_v49 = vpop.permute.xlu1 %2759  ;;  %v2822_v60 = vadd.f32 %v2821_v22, %v2820_v14  ;;  %v2556_v47 = vrot.slane %v5345_v57, %v4322_v15 }
 0x9ee   :  { %v2953_v16 = vmul.f32 %v5257_v11, %v2772_v4  ;;  %v2894_v54 = vmul.f32 %v5239_v30, %v2760_v49  ;;  %v2203_v52 = vmul.f32 1.442695, %v2168_v61  ;;  %v2169_v26 = vmul.f32 %v5133_v46, %v2096_v38 }
 0x9ef   :  { %v2851_v10 = vrot.slane %v2850_v48, 1  ;;  %v2879_v58 = vrot.slane %v2878_v35, 2  ;;  %v5362_v17 = vrot.slane %v2278_v18, %v5675_v12  ;;  %v2001_v8 = vrot.slane %v1987_v44, %v5675_v12 }
 0x9f0   :  { %v2905_v28 = vsel %vm331_vm4, %v2894_v54, 0.0  ;;  %v2964_v39 = vsel %vm331_vm4, %v2953_v16, 0.0  ;;  %v4060_v43 = vpop.eup %4059  ;;  %4065 = vpow2.f32 %v2203_v52  ;;  %v2170_v16 = vmul.f32 %v5145_v63, %v2096_v38 }
 0x9f1   :  { %v2852_v11 = vadd.f32 %v2851_v10, %v2850_v48  ;;  %v2880_v0 = vadd.f32 %v2879_v58, %v2878_v35  ;;  %v2906_v30 = vadd.f32 %v2905_v28, %v2904_v6  ;;  %v2780_v32 = vpop.permute.xlu0 %2779  ;;  %v2768_v2 = vpop.permute.xlu1 %2767  ;;  %v2205_v6 = vmul.f32 1.442695, %v2169_v26 }
 0x9f2   :  { %v2983_v33 = vmul.f32 %v5277_v51, %v2780_v32  ;;  %v2924_v5 = vmul.f32 %v5259_v3, %v2768_v2  ;;  %v4062_v49 = vpop.eup %4061  ;;  %v2793_v61 = vmul.f32 0.0, %v4060_v43 }
 0x9f3   :  { %v3034_v41 = vsel %vm289_vm3, %v2822_v60, %v2852_v11  ;;  %v2881_v1 = vrot.slane %v2880_v0, 1  ;;  %v2907_v62 = vrot.slane %v2906_v30, 4  ;;  %4067 = vpow2.f32 %v2205_v6  ;;  %v4064_v44 = vpop.eup %4063 }
 0x9f4   :  { %v2935_v55 = vsel %vm331_vm4, %v2924_v5, 0.0 }
 0x9f5   :  { %v2882_v53 = vadd.f32 %v2881_v1, %v2880_v0  ;;  %v2908_v51 = vadd.f32 %v2907_v62, %v2906_v30  ;;  %v2936_v19 = vadd.f32 %v2935_v55, %v2934_v21  ;;  %v2776_v3 = vpop.permute.xlu1 %2775  ;;  %v2368_v25 = vpop.permute.xlu0 %2367  ;;  %v2207_v1 = vmul.f32 1.442695, %v2170_v16 }
 0x9f6   :  { %v2954_v14 = vmul.f32 %v5279_v7, %v2776_v3  ;;  %v2034_v7 = vcombine.high %v5321_v9, %v5321_v9  ;;  %v2994_v9 = vsel %vm331_vm4, %v2983_v33, 0.0  ;;  %v2633_v28 = vmul.f32 %v2556_v47, %v2368_v25 }
 0x9f7   :  { %v3036_v31 = vsel %vm274_vm2, %v3034_v41, %v2882_v53  ;;  %v2909_v37 = vrot.slane %v2908_v51, 2  ;;  %v2937_v27 = vrot.slane %v2936_v19, 4  ;;  %v2794_v41 = vmul.f32 0.0, %v4062_v49 }
 0x9f8   :  { %v2965_v34 = vsel %vm331_vm4, %v2954_v14, 0.0  ;;  %v2100_v60 = vrot.slane %v2034_v7, %v4322_v15  ;;  %v5373_v55 = vadd.f32 %v2793_v61, %v2633_v28  ;;  %v5377_v53 = vrot.slane %v2001_v8, %v5675_v12 }
 0x9f9   :  { %v2910_v22 = vadd.f32 %v2909_v37, %v2908_v51  ;;  %v2938_v48 = vadd.f32 %v2937_v27, %v2936_v19  ;;  %v2966_v42 = vadd.f32 %v2965_v34, %v2964_v39  ;;  %v2784_v35 = vpop.permute.xlu1 %2783  ;;  %v2380_v4 = vpop.permute.xlu0 %2379  ;;  %4069 = vpow2.f32 %v2207_v1 }
 0x9fa   :  { %v2984_v54 = vmul.f32 %v5297_v13, %v2784_v35  ;;  %v2171_v18 = vmul.f32 %v5133_v46, %v2100_v60  ;;  %v2172_v52 = vmul.f32 %v5145_v63, %v2100_v60  ;;  %v2003_v27 = vcombine.high %v2001_v8, %v2001_v8  ;;  %v4066_v39 = vpop.eup %4065 }
 0x9fb   :  { %v2911_v10 = vrot.slane %v2910_v22, 1  ;;  %v2939_v58 = vrot.slane %v2938_v48, 2  ;;  %v2967_v23 = vrot.slane %v2966_v42, 4  ;;  %v2823_v7 = vmul.f32 %v4064_v44, %v5373_v55 }
 0x9fc   :  { %v2995_v29 = vsel %vm331_vm4, %v2984_v54, 0.0  ;;  %v2209_v43 = vmul.f32 1.442695, %v2171_v18  ;;  %v2308_v8 = vcombine.high %v5345_v57, %v5345_v57  ;;  %v5399_v6 = vrot.slane %v2003_v27, %v5675_v12 }
 0x9fd   :  { %v2912_v11 = vadd.f32 %v2911_v10, %v2910_v22  ;;  %v2940_v0 = vadd.f32 %v2939_v58, %v2938_v48  ;;  %v2968_v30 = vadd.f32 %v2967_v23, %v2966_v42  ;;  %v2996_v13 = vadd.f32 %v2995_v29, %v2994_v9  ;;  %v2372_v32 = vpop.permute.xlu1 %2371  ;;  %v2392_v2 = vpop.permute.xlu0 %2391 }
 0x9fe   :  { %v2634_v5 = vmul.f32 %v2556_v47, %v2372_v32  ;;  %v2560_v47 = vrot.slane %v5362_v17, %v4322_v15  ;;  %v2104_v22 = vrot.slane %v5377_v53, %v4322_v15  ;;  %v2211_v10 = vmul.f32 1.442695, %v2172_v52 }
 0x9ff   :  { %v2941_v62 = vrot.slane %v2940_v0, 1  ;;  %v2969_v38 = vrot.slane %v2968_v30, 2  ;;  %v2997_v21 = vrot.slane %v2996_v13, 4  ;;  %v3038_v33 = vsel %vm259_vm1, %v3036_v31, %v2912_v11 }
 0xa00   :  { %v5381_v14 = vadd.f32 %v2794_v41, %v2634_v5  ;;  %v2635_v34 = vmul.f32 %v2560_v47, %v2380_v4  ;;  %4071 = vpow2.f32 %v2209_v43  ;;  %v2173_v11 = vmul.f32 %v5133_v46, %v2104_v22 }
 0xa01   :  { %v2942_v51 = vadd.f32 %v2941_v62, %v2940_v0  ;;  %v2970_v19 = vadd.f32 %v2969_v38, %v2968_v30  ;;  %v2998_v3 = vadd.f32 %v2997_v21, %v2996_v13  ;;  %v2384_v25 = vpop.permute.xlu1 %2383  ;;  %v5379_v50 = vpop.permute.xlu0 %2403  ;;  %v2564_v57 = vrot.slane %v2308_v8, %v4322_v15 }
 0xa02   :  { %v2636_v35 = vmul.f32 %v2560_v47, %v2384_v25  ;;  %v2824_v16 = vmul.f32 %v4066_v39, %v5381_v14  ;;  %v5396_v23 = vadd.f32 %v2823_v7, %v2635_v34  ;;  %v4068_v0 = vpop.eup %4067  ;;  %4073 = vpow2.f32 %v2211_v10 }
 0xa03   :  { %v2971_v31 = vrot.slane %v2970_v19, 1  ;;  %v2999_v37 = vrot.slane %v2998_v3, 2  ;;  %v3040_v26 = vsel %vm1508_vm9, %v3038_v33, %v2942_v51  ;;  %v2174_v30 = vmul.f32 %v5145_v63, %v2104_v22  ;;  %v4070_v32 = vpop.eup %4069 }
 0xa04   :  { %v5403_v60 = vadd.f32 %v2824_v16, %v2636_v35  ;;  %v2637_v5 = vmul.f32 %v2564_v57, %v2392_v2  ;;  %v2853_v61 = vmul.f32 %v4068_v0, %v5396_v23  ;;  %v2213_v21 = vmul.f32 1.442695, %v2173_v11 }
 0xa05   :  { %v2972_v48 = vadd.f32 %v2971_v31, %v2970_v19  ;;  %v3000_v42 = vadd.f32 %v2999_v37, %v2998_v3  ;;  %v2396_v49 = vpop.permute.xlu1 %2395  ;;  %v5390_v54 = vpop.permute.xlu0 %2415  ;;  %v2108_v33 = vrot.slane %v5399_v6, %v4322_v15  ;;  %v2310_v18 = vcombine.high %v5362_v17, %v5362_v17 }
 0xa06   :  { %v2638_v41 = vmul.f32 %v2564_v57, %v2396_v49  ;;  %v2854_v38 = vmul.f32 %v4070_v32, %v5403_v60  ;;  %v2263_v51 = vcombine.high %v5327_v24, %v5327_v24  ;;  %v2215_v19 = vmul.f32 1.442695, %v2174_v30 }
 0xa07   :  { %v3001_v58 = vrot.slane %v3000_v42, 1  ;;  %v3042_v4 = vsel %vm1511_vm10, %v3040_v26, %v2972_v48  ;;  %v5421_v2 = vadd.f32 %v2853_v61, %v2637_v5  ;;  %4075 = vpow2.f32 %v2213_v21 }
 0xa08   :  { %v2858_v47 = vadd.f32 %v2854_v38, %v2638_v41  ;;  %v2175_v52 = vmul.f32 %v5133_v46, %v2108_v33  ;;  %v2033_v44 = vcombine.high %v5377_v53, %v5377_v53  ;;  %v2568_v31 = vrot.slane %v2310_v18, %v4322_v15 }
 0xa09   :  { %v3002_v9 = vadd.f32 %v3001_v58, %v3000_v42  ;;  %v2408_v28 = vpop.permute.xlu1 %2407  ;;  %v5401_v29 = vpop.permute.xlu0 %2427  ;;  %v2277_v17 = vrot.slane %v2263_v51, %v5675_v12  ;;  %4077 = vpow2.f32 %v2215_v19  ;;  %v2176_v24 = vmul.f32 %v5145_v63, %v2108_v33 }
 0xa0a   :  { %v4072_v37 = vpop.eup %4071  ;;  %v2639_v26 = vmul.f32 %v2568_v31, %v5379_v50  ;;  %v2640_v34 = vmul.f32 %v2568_v31, %v2408_v28  ;;  %v2217_v48 = vmul.f32 1.442695, %v2175_v52  ;;  %v2112_v53 = vrot.slane %v2033_v44, %v4322_v15 }
 0xa0b   :  { %v5409_v13 = vsel %vm1514_vm11, %v3042_v4, %v3002_v9  ;;  %v2883_v39 = vmul.f32 %v4072_v37, %v5421_v2  ;;  %v2293_v42 = vrot.slane %v2277_v17, %v5675_v12  ;;  %v2219_v35 = vmul.f32 1.442695, %v2176_v24 }
 0xa0c   :  { %v4074_v27 = vpop.eup %4073  ;;  %v2035_v16 = vcombine.high %v5399_v6, %v5399_v6  ;;  %4079 = vpow2.f32 %v2217_v48  ;;  %v2177_v58 = vmul.f32 %v5133_v46, %v2112_v53  ;;  %v2279_v9 = vcombine.high %v2277_v17, %v2277_v17 }
 0xa0d   :  { %v2420_v1 = vpop.permute.xlu1 %2419  ;;  %v5412_v62 = vpop.permute.xlu0 %2439  ;;  %v2884_v22 = vmul.f32 %v4074_v27, %v2858_v47  ;;  %v2887_v49 = vadd.f32 %v2883_v39, %v2639_v26  ;;  %v2572_v4 = vrot.slane %v2293_v42, %v4322_v15  ;;  %4081 = vpow2.f32 %v2219_v35 }
 0xa0e   :  { %v2178_v28 = vmul.f32 %v5145_v63, %v2112_v53  ;;  %v2116_v32 = vrot.slane %v2035_v16, %v4322_v15  ;;  %v2221_v38 = vmul.f32 1.442695, %v2177_v58  ;;  %v5449_v21 = vrot.slane %v2279_v9, %v5675_v12 }
 0xa0f   :  { %v2888_v50 = vadd.f32 %v2884_v22, %v2640_v34  ;;  %v2641_v57 = vmul.f32 %v2572_v4, %v5390_v54  ;;  %v2642_v6 = vmul.f32 %v2572_v4, %v2420_v1  ;;  %v2309_v24 = vcombine.high %v2293_v42, %v2293_v42 }
 0xa10   :  { %v2223_v33 = vmul.f32 1.442695, %v2178_v28  ;;  %v2179_v19 = vmul.f32 %v5133_v46, %v2116_v32  ;;  %4083 = vpow2.f32 %v2221_v38  ;;  %v2576_v1 = vrot.slane %v5449_v21, %v4322_v15 }
 0xa11   :  { %v5423_v3 = vpop.permute.xlu1 %2431  ;;  %v5425_v25 = vpop.permute.xlu0 %2667  ;;  %v2180_v17 = vmul.f32 %v5145_v63, %v2116_v32  ;;  %v2580_v16 = vrot.slane %v2309_v24, %v4322_v15 }
 0xa12   :  { %v4076_v11 = vpop.eup %4075  ;;  %4085 = vpow2.f32 %v2223_v33  ;;  %v2643_v46 = vmul.f32 %v2576_v1, %v5401_v29  ;;  %v2225_v34 = vmul.f32 1.442695, %v2179_v19  ;;  %v2644_v22 = vmul.f32 %v2576_v1, %v5423_v3 }
 0xa13   :  { %v4078_v0 = vpop.eup %4077  ;;  %v2913_v30 = vmul.f32 %v4076_v11, %v2887_v49 }
 0xa14   :  { %v2914_v41 = vmul.f32 %v4078_v0, %v2888_v50  ;;  %4087 = vpow2.f32 %v2225_v34  ;;  %v2645_v0 = vmul.f32 %v2580_v16, %v5412_v62 }
 0xa15   :  { %v5435_v7 = vpop.permute.xlu1 %2443  ;;  %v2676_v43 = vpop.permute.xlu0 %2675  ;;  %v2917_v51 = vadd.f32 %v2913_v30, %v2641_v57 }
 0xa16   :  { %v2918_v44 = vadd.f32 %v2914_v41, %v2642_v6  ;;  %v2831_v31 = vmul.f32 %v5396_v23, %v2676_v43  ;;  %v4080_v12 = vpop.eup %4079  ;;  %v2801_v23 = vmul.f32 %v5373_v55, %v5425_v25  ;;  %v2646_v38 = vmul.f32 %v2580_v16, %v5435_v7 }
 0xa17   :  { %v4082_v27 = vpop.eup %4081  ;;  %v2943_v39 = vmul.f32 %v4080_v12, %v2917_v51 }
 0xa18   :  { %v2944_v53 = vmul.f32 %v4082_v27, %v2918_v44  ;;  %v2805_v58 = vsel %vm331_vm4, %v2801_v23, 0.0 }
 0xa19   :  { %v2672_v8 = vpop.permute.xlu1 %2671  ;;  %v2684_v10 = vpop.permute.xlu0 %2683  ;;  %v2947_v3 = vadd.f32 %v2943_v39, %v2643_v46 }
 0xa1a   :  { %v2802_v37 = vmul.f32 %v5381_v14, %v2672_v8  ;;  %v2861_v43 = vmul.f32 %v5421_v2, %v2684_v10  ;;  %v2835_v14 = vsel %vm331_vm4, %v2831_v31, 0.0  ;;  %v2948_v10 = vadd.f32 %v2944_v53, %v2644_v22  ;;  %v4084_v11 = vpop.eup %4083 }
 0xa1b   :  { %v2973_v41 = vmul.f32 %v4084_v11, %v2947_v3 }
 0xa1c   :  { %v2806_v42 = vsel %vm331_vm4, %v2802_v37, 0.0  ;;  %v2865_v55 = vsel %vm331_vm4, %v2861_v43, 0.0  ;;  %v4086_v30 = vpop.eup %4085 }
 0xa1d   :  { %v2680_v5 = vpop.permute.xlu1 %2679  ;;  %v5446_v61 = vpop.permute.xlu0 %2451  ;;  %v2807_v4 = vadd.f32 %v2806_v42, %v2805_v58  ;;  %v2974_v19 = vmul.f32 %v4086_v30, %v2948_v10  ;;  %v2977_v24 = vadd.f32 %v2973_v41, %v2645_v0 }
 0xa1e   :  { %v2832_v18 = vmul.f32 %v5403_v60, %v2680_v5  ;;  %v4088_v34 = vpop.eup %4087 }
 0xa1f   :  { %v2978_v7 = vadd.f32 %v2974_v19, %v2646_v38  ;;  %v3003_v42 = vmul.f32 %v4088_v34, %v2977_v24 }
 0xa20   :  { %v2836_v26 = vsel %vm331_vm4, %v2832_v18, 0.0 }
 0xa21   :  { %v2688_v52 = vpop.permute.xlu1 %2687  ;;  %v2692_v54 = vpop.permute.xlu0 %2691  ;;  %v2837_v29 = vadd.f32 %v2836_v26, %v2835_v14 }
 0xa22   :  { %v2862_v60 = vmul.f32 %v2858_v47, %v2688_v52  ;;  %v2227_v47 = vmul.f32 1.442695, %v2180_v17  ;;  %v2891_v8 = vmul.f32 %v2887_v49, %v2692_v54  ;;  %v2311_v49 = vcombine.high %v5449_v21, %v5449_v21 }
 0xa23   :  { %v2838_v57 = vrot.slane %v2837_v29, 4  ;;  %v2808_v52 = vrot.slane %v2807_v4, 4 }
 0xa24   :  { %v2866_v35 = vsel %vm331_vm4, %v2862_v60, 0.0  ;;  %4089 = vpow2.f32 %v2227_v47  ;;  %v2895_v32 = vsel %vm331_vm4, %v2891_v8, 0.0  ;;  %v2584_v31 = vrot.slane %v2311_v49, %v4322_v15 }
 0xa25   :  { %v2456_v63 = vpop.permute.xlu1 %2455  ;;  %v2700_v48 = vpop.permute.xlu0 %2699  ;;  %v2867_v9 = vadd.f32 %v2866_v35, %v2865_v55  ;;  %v2839_v1 = vadd.f32 %v2838_v57, %v2837_v29  ;;  %v2809_v27 = vadd.f32 %v2808_v52, %v2807_v4 }
 0xa26   :  { %v2921_v6 = vmul.f32 %v2917_v51, %v2700_v48  ;;  %v2647_v46 = vmul.f32 %v2584_v31, %v5446_v61  ;;  %v2648_v22 = vmul.f32 %v2584_v31, %v2456_v63 }
 0xa27   :  { %v2868_v54 = vrot.slane %v2867_v9, 4  ;;  %v2810_v61 = vrot.slane %v2809_v27, 2 }
 0xa28   :  { %v2925_v17 = vsel %vm331_vm4, %v2921_v6, 0.0  ;;  %v3007_v58 = vadd.f32 %v3003_v42, %v2647_v46 }
 0xa29   :  { %v2696_v2 = vpop.permute.xlu1 %2695  ;;  %v2708_v25 = vpop.permute.xlu0 %2707  ;;  %v2869_v26 = vadd.f32 %v2868_v54, %v2867_v9 }
 0xa2a   :  { %v2892_v28 = vmul.f32 %v2888_v50, %v2696_v2  ;;  %v2951_v12 = vmul.f32 %v2947_v3, %v2708_v25 }
 0xa2b   :  { %v2870_v3 = vrot.slane %v2869_v26, 2 }
 0xa2c   :  { %v2896_v5 = vsel %vm331_vm4, %v2892_v28, 0.0  ;;  %v2955_v53 = vsel %vm331_vm4, %v2951_v12, 0.0 }
 0xa2d   :  { %v2897_v33 = vadd.f32 %v2896_v5, %v2895_v32  ;;  %v2704_v18 = vpop.permute.xlu1 %2703  ;;  %v2716_v50 = vpop.permute.xlu0 %2715  ;;  %v2811_v32 = vadd.f32 %v2810_v61, %v2809_v27  ;;  %v2871_v6 = vadd.f32 %v2870_v3, %v2869_v26  ;;  %v3603_v61 = vld [vmem:[%s5581_s11 + $0x1] ss:$0 sm:$0xff] }
 0xa2e   :  { %v2922_v62 = vmul.f32 %v2918_v44, %v2704_v18  ;;  %v2840_v44 = vrot.slane %v2839_v1, 2  ;;  %v4090_v48 = vpop.eup %4089  ;;  %v2981_v14 = vmul.f32 %v2977_v24, %v2716_v50 }
 0xa2f   :  { %v2898_v21 = vrot.slane %v2897_v33, 4  ;;  %v3004_v8 = vmul.f32 %v4090_v48, %v2978_v7  ;;  %v2872_v12 = vrot.slane %v2871_v6, 1 }
 0xa30   :  { %v2926_v51 = vsel %vm331_vm4, %v2922_v62, 0.0  ;;  %v2841_v2 = vadd.f32 %v2840_v44, %v2839_v1  ;;  %v2985_v9 = vsel %vm331_vm4, %v2981_v14, 0.0 }
 0xa31   :  { %v2927_v37 = vadd.f32 %v2926_v51, %v2925_v17  ;;  %v2712_v60 = vpop.permute.xlu1 %2711  ;;  %v2899_v23 = vadd.f32 %v2898_v21, %v2897_v33  ;;  %v2724_v43 = vpop.permute.xlu0 %2723  ;;  %v2812_v17 = vrot.slane %v2811_v32, 1 }
 0xa32   :  { %v2952_v39 = vmul.f32 %v2948_v10, %v2712_v60  ;;  %v3008_v10 = vadd.f32 %v3004_v8, %v2648_v22  ;;  %v3011_v28 = vmul.f32 %v3007_v58, %v2724_v43  ;;  %v2842_v41 = vrot.slane %v2841_v2, 1 }
 0xa33   :  { %v2928_v15 = vrot.slane %v2927_v37, 4  ;;  %v2900_v63 = vrot.slane %v2899_v23, 2  ;;  %v2813_v22 = vadd.f32 %v2812_v17, %v2811_v32 }
 0xa34   :  { %v2956_v47 = vsel %vm331_vm4, %v2952_v39, 0.0  ;;  %v3015_v19 = vsel %vm331_vm4, %v3011_v28, 0.0 }
 0xa35   :  { %v2929_v29 = vadd.f32 %v2928_v15, %v2927_v37  ;;  %v2957_v35 = vadd.f32 %v2956_v47, %v2955_v53  ;;  %v2720_v16 = vpop.permute.xlu1 %2719  ;;  %v2788_v49 = vpop.permute.xlu0 %2787  ;;  %v2901_v38 = vadd.f32 %v2900_v63, %v2899_v23  ;;  %v2873_v23 = vadd.f32 %v2872_v12, %v2871_v6  ;;  %v3235_v12 = vld [vmem:[%s5585_s15 + $0x8] sm:$0xff] }
 0xa36   :  { %v2982_v55 = vmul.f32 %v2978_v7, %v2720_v16  ;;  %v3013_v52 = vmul.f32 %v5313_v20, %v2788_v49  ;;  %v2843_v7 = vadd.f32 %v2842_v41, %v2841_v2 }
 0xa37   :  { %v2958_v25 = vrot.slane %v2957_v35, 4  ;;  %v2930_v4 = vrot.slane %v2929_v29, 2  ;;  %v2902_v24 = vrot.slane %v2901_v38, 1 }
 0xa38   :  { %v2986_v11 = vsel %vm331_vm4, %v2982_v55, 0.0  ;;  %v3024_v46 = vsel %vm331_vm4, %v3013_v52, 0.0  ;;  %v3033_v14 = vsel %vm289_vm3, %v2813_v22, %v2843_v7  ;;  %v4131_v7 = vmov 0.0  }
 0xa39   :  { %v2959_v0 = vadd.f32 %v2958_v25, %v2957_v35  ;;  %v2987_v57 = vadd.f32 %v2986_v11, %v2985_v9  ;;  %v2728_v30 = vpop.permute.xlu1 %2727  ;;  %v2931_v50 = vadd.f32 %v2930_v4, %v2929_v29  ;;  %v2903_v15 = vadd.f32 %v2902_v24, %v2901_v38 }
 0xa3a   :  { %v3012_v5 = vmul.f32 %v3008_v10, %v2728_v30  ;;  %v3035_v35 = vsel %vm274_vm2, %v3033_v14, %v2873_v23  ;;  %v3055_v10 = vmul.f32 %v3603_v61, %v5067_v59  ;;  %v3056_v30 = vmul.f32 %v3603_v61, %v5069_v56  ;;  %v3616_v23 = vld [vmem:[%s5583_s13] ss:$0 sm:$0xff] }
 0xa3b   :  { %v2960_v33 = vrot.slane %v2959_v0, 2  ;;  %v2988_v18 = vrot.slane %v2987_v57, 4  ;;  %v2932_v27 = vrot.slane %v2931_v50, 1  ;;  %v3037_v3 = vsel %vm259_vm1, %v3035_v35, %v2903_v15 }
 0xa3c   :  { %v3016_v54 = vsel %vm331_vm4, %v3012_v5, 0.0  ;;  %v4129_v24 = vmov 0.0|0.0   ;;  %vm4130_vm1 = vmmov 0   ;;  %vm3247_vm2 = vcmask 1041409  }
 0xa3d   :  { %v2961_v62 = vadd.f32 %v2960_v33, %v2959_v0  ;;  %v2989_v1 = vadd.f32 %v2988_v18, %v2987_v57  ;;  %v3017_v31 = vadd.f32 %v3016_v54, %v3015_v19  ;;  %v2792_v21 = vpop.permute.xlu1 %2791  ;;  %v3076_v0 = vpop.permute.xlu0 %3075  ;;  %3887 = vmatprep.subr.bf16.mxu0 %v4129_v24  ;;  %3792 = vmatprep.mubr.msk.f32.mxu0 %vm4130_vm1, %v4131_v7  ;;  %vm3357_vm3 = vcmask 130048  }
 0xa3e   :  { %v3014_v51 = vmul.f32 %v5331_v45, %v2792_v21  ;;  %v2933_v45 = vadd.f32 %v2932_v27, %v2931_v50  ;;  %3893 = vmatprep.subr.bf16.mxu1 %v4129_v24 }
 0xa3f   :  { %v2990_v37 = vrot.slane %v2989_v1, 2  ;;  %v3018_v60 = vrot.slane %v3017_v31, 4  ;;  %v2962_v20 = vrot.slane %v2961_v62, 1 }
 0xa40   :  { %v3025_v26 = vsel %vm331_vm4, %v3014_v51, 0.0  ;;  %v3039_v55 = vsel %vm1508_vm9, %v3037_v3, %v2933_v45  ;;  %v3236_v51 = vld [vmem:[%s5585_s15 + $0x10] sm:$0xff] }
 0xa41   :  { %v2991_v39 = vadd.f32 %v2990_v37, %v2989_v1  ;;  %v3019_v34 = vadd.f32 %v3018_v60, %v3017_v31  ;;  %v3026_v44 = vadd.f32 %v3025_v26, %v3024_v46  ;;  %v2963_v47 = vadd.f32 %v2962_v20, %v2961_v62  ;;  %v3078_v5 = vpop.permute.xlu1 %3077  ;;  %v3237_v60 = vld [vmem:[%s5585_s15 + $0x18] sm:$0xff] }
 0xa42   :  { %v3891_v27 = vpack.c.bf16 %v3237_v60, %v3236_v51 }
 0xa43   :  { %v2992_v43 = vrot.slane %v2991_v39, 1  ;;  %v3020_v48 = vrot.slane %v3019_v34, 2  ;;  %v3027_v53 = vrot.slane %v3026_v44, 4  ;;  %v3041_v63 = vsel %vm1511_vm10, %v3039_v55, %v2963_v47 }
 0xa45   :  { %v3021_v42 = vadd.f32 %v3020_v48, %v3019_v34  ;;  %v3028_v29 = vadd.f32 %v3027_v53, %v3026_v44  ;;  %v2993_v16 = vadd.f32 %v2992_v43, %v2991_v39  ;;  %v3617_v43 = vld [vmem:[%s5584_s14] ss:$0 sm:$0xff] }
 0xa47   :  { %v3022_v8 = vrot.slane %v3021_v42, 1  ;;  %v3029_v58 = vrot.slane %v3028_v29, 2  ;;  %v3043_v4 = vsel %vm1514_vm11, %v3041_v63, %v2993_v16 }
 0xa49   :  { %v3023_v2 = vadd.f32 %v3022_v8, %v3021_v42  ;;  %v3030_v25 = vadd.f32 %v3029_v58, %v3028_v29 }
 0xa4b   :  { %v3045_v9 = vsel %vm1517_vm12, %v3043_v4, %v3023_v2  ;;  %v3031_v28 = vrot.slane %v3030_v25, 1 }
 0xa4c   :  { %v3057_v11 = vadd.f32 %v3055_v10, %v3045_v9 }
 0xa4d   :  { %v3032_v57 = vadd.f32 %v3031_v28, %v3030_v25 }
 0xa4e   :  { %v3081_v49 = vmul.f32 %v3076_v0, %v3057_v11 }
 0xa4f   :  { %v3046_v32 = vsel %vm1517_vm12, %v5409_v13, %v3032_v57  ;;  %v3348_v57 = vld [vmem:[%s5587_s17] sm:$0xff] }
 0xa50   :  { %v3058_v6 = vadd.f32 %v3056_v30, %v3046_v32  ;;  %3781 = vmatprep.mubr.msk.f32.mxu1 %vm331_vm4, %v3081_v49  ;;  %v3349_v49 = vld [vmem:[%s5587_s17 + $0x8] sm:$0xff]  ;;  %v3618_v32 = vld [vmem:[%s5586_s16] ss:$0 sm:$0xff] }
 0xa51   :  { %v3894_v30 = vpack.c.bf16 %v3349_v49, %v3348_v57 }
 0xa52   :  { %v3082_v41 = vmul.f32 %v3078_v5, %v3058_v6 }
 0xa54   :  { %3782 = vmatmul.mubr.msk.f32.vlgmr.msra.gmra.mrb[4].mxu1 %vm331_vm4, %v3082_v41 }
 0xa55   :  { %3799 = vmatprep.mubr.msk.f32.mxu1 %vm4130_vm1, %v4131_v7  ;;  %3895 = vmatpush3.bf16.msra.mxu1 %v3894_v30 }
 0xa56   :  { %3802 = vmatprep.subr.mxu1 %v4131_v7 }
 0xb27   :  { %v3783_v59 = vpop.f32.mrb[4].mxu1 }
 0xb28   :  { %v3170_v38 = vadd.f32 %v3783_v59, %v4982_v40  ;;  %v3164_v33 = vpop.f32.mrb[5].mxu1 }
 0xb29   :  { %v3165_v18 = vadd.f32 %v3164_v33, %v4985_v36  ;;  %v3234_v36 = vld [vmem:[%s5585_s15] sm:$0xff] }
 0xb2a   :  { %v3178_v50 = vsel %vm73_vm0, %v3170_v38, 0.0  ;;  %v3888_v37 = vpack.c.bf16 %v3235_v12, %v3234_v36 }
 0xb2b   :  { %3179 = vadd.xlane.f32.xlu1 %v3178_v50  ;;  %v3175_v56 = vsel %vm73_vm0, %v3165_v18, 0.0 }
 0xb2c   :  { %3176 = vadd.xlane.f32.xlu0 %v3175_v56  ;;  %3889 = vmatpush3.bf16.msra.mxu0 %v3888_v37  ;;  %v4132_v37 = vmov -1.0  }
 0xb2d   :  { %3890 = vmatprep.subr.bf16.mxu0 %v4129_v24 }
 0xb30   :  { %3892 = vmatpush3.bf16.msra.mxu0 %v3891_v27 }
 0xbb8   :  { %v3180_v13 = vpop.xlane.xlu1 %3179 }
 0xbb9   :  { %v3182_v19 = vmul.f32 0.03125, %v3180_v13  ;;  %v3177_v52 = vpop.xlane.xlu0 %3176 }
 0xbba   :  { %v3181_v54 = vmul.f32 0.03125, %v3177_v52 }
 0xbbb   :  { %v3184_v62 = vsub.f32 %v3170_v38, %v3182_v19 }
 0xbbc   :  { %v3183_v1 = vsub.f32 %v3165_v18, %v3181_v54 }
 0xbbd   :  { %v3186_v17 = vmul.f32 %v3184_v62, %v3184_v62 }
 0xbbe   :  { %v3185_v31 = vmul.f32 %v3183_v1, %v3183_v1 }
 0xbbf   :  { %v3190_v40 = vsel %vm73_vm0, %v3186_v17, 0.0 }
 0xbc0   :  { %v3187_v21 = vsel %vm73_vm0, %v3185_v31, 0.0 }
 0xbc1   :  { %3188 = vadd.xlane.f32.xlu0 %v3187_v21 }
 0xbc5   :  { %3191 = vadd.xlane.f32.xlu0 %v3190_v40 }
 0xc4e   :  { %v3189_v46 = vpop.xlane.xlu0 %3188 }
 0xc4f   :  { %v3193_v26 = vmul.f32 0.03125, %v3189_v46 }
 0xc51   :  { %v3195_v20 = vadd.f32 1e-05, %v3193_v26 }
 0xc52   :  { %v3192_v39 = vpop.xlane.xlu0 %3191 }
 0xc53   :  { %4091 = vrsqrt.f32 %v3195_v20  ;;  %v3194_v34 = vmul.f32 0.03125, %v3192_v39  ;;  %v3458_v39 = vld [vmem:[%s5589_s19] sm:$0xff] }
 0xc55   :  { %v3196_v44 = vadd.f32 1e-05, %v3194_v34  ;;  %v3620_v34 = vld [vmem:[%s5588_s18] ss:$0 sm:$0xff] }
 0xc57   :  { %4093 = vrsqrt.f32 %v3196_v44 }
 0xc5d   :  { %v4092_v22 = vpop.eup %4091 }
 0xc5e   :  { %v3199_v15 = vmul.f32 %v4092_v22, %v3183_v1 }
 0xc60   :  { %v3207_v48 = vmul.f32 %v3616_v23, %v3199_v15 }
 0xc61   :  { %v4094_v53 = vpop.eup %4093 }
 0xc62   :  { %v3215_v45 = vadd.f32 %v3617_v43, %v3207_v48  ;;  %v3200_v14 = vmul.f32 %v4094_v53, %v3184_v62 }
 0xc64   :  { %v3208_v47 = vmul.f32 %v3616_v23, %v3200_v14  ;;  %v3217_v42 = vsel %vm73_vm0, %v3215_v45, 0.0 }
 0xc65   :  { %v3218_v29 = vrot.slane %v3217_v42, 4 }
 0xc66   :  { %v3216_v35 = vadd.f32 %v3617_v43, %v3208_v47 }
 0xc67   :  { %v3219_v16 = vadd.f32 %v3218_v29, %v3217_v42 }
 0xc68   :  { %v3224_v8 = vsel %vm73_vm0, %v3216_v35, 0.0 }
 0xc69   :  { %v3220_v61 = vrot.slane %v3219_v16, 2  ;;  %v3225_v3 = vrot.slane %v3224_v8, 4 }
 0xc6b   :  { %v3221_v58 = vadd.f32 %v3220_v61, %v3219_v16  ;;  %v3226_v55 = vadd.f32 %v3225_v3, %v3224_v8 }
 0xc6d   :  { %v3222_v2 = vrot.slane %v3221_v58, 1  ;;  %v3227_v63 = vrot.slane %v3226_v55, 2 }
 0xc6f   :  { %v3228_v25 = vadd.f32 %v3227_v63, %v3226_v55  ;;  %v3223_v10 = vadd.f32 %v3222_v2, %v3221_v58 }
 0xc71   :  { %v3229_v4 = vrot.slane %v3228_v25, 1  ;;  %v3232_v28 = vmul.f32 0.125, %v3223_v10 }
 0xc73   :  { %v3230_v9 = vadd.f32 %v3229_v4, %v3228_v25 }
 0xc75   :  { %v3233_v11 = vmul.f32 0.125, %v3230_v9 }
 0xc77   :  { %v3248_v0 = vsel %vm3247_vm2, %v3233_v11, %v3232_v28 }
 0xc78   :  { %3793 = vmatmul.mubr.msk.f32.vlgmr.msra.gmra.mrb[6].mxu0 %vm73_vm0, %v3248_v0  ;;  %v3622_v0 = vld [vmem:[%s5590_s20] ss:$0 sm:$0xff] }
 0xd4b   :  { %v3317_v6 = vpop.f32.mrb[6].mxu0 }
 0xd4c   :  { %v3318_v5 = vadd.f32 %v3618_v32, %v3317_v6  ;;  %v3794_v41 = vpop.f32.mrb[7].mxu0 }
 0xd4e   :  { %v3322_v59 = vmul.f32 0.70710677, %v3318_v5  ;;  %v3321_v46 = vmul.f32 0.5, %v3318_v5 }
 0xd50   :  { %v3325_v38 = vand.u32 2147483647, %v3322_v59  ;;  %vm3323_vm0 = vcmp.ge.f32.partialorder %v3322_v59, 0.0 }
 0xd51   :  { %v3324_v60 = vsel %vm3323_vm0, 1.0, %v4132_v37 }
 0xd52   :  { %v3326_v33 = vmul.f32 0.3275911, %v3325_v38  ;;  %v3339_v50 = vsub.f32 0.0, %v3325_v38 }
 0xd54   :  { %v3327_v18 = vadd.f32 1.0, %v3326_v33  ;;  %v3340_v13 = vmul.f32 %v3339_v50, %v3325_v38 }
 0xd56   :  { %4095 = vrcp.f32 %v3327_v18  ;;  %v3341_v54 = vmul.f32 1.442695, %v3340_v13 }
 0xd58   :  { %4097 = vpow2.f32 %v3341_v54 }
 0xd60   :  { %v4096_v56 = vpop.eup %4095 }
 0xd61   :  { %v3330_v19 = vmul.f32 1.0614054, %v4096_v56 }
 0xd62   :  { %v4098_v12 = vpop.eup %4097 }
 0xd63   :  { %v3331_v52 = vadd.f32 -1.4531521, %v3330_v19 }
 0xd65   :  { %v3332_v62 = vmul.f32 %v4096_v56, %v3331_v52 }
 0xd67   :  { %v3333_v1 = vadd.f32 1.4214138, %v3332_v62 }
 0xd69   :  { %v3334_v31 = vmul.f32 %v4096_v56, %v3333_v1 }
 0xd6b   :  { %v3335_v21 = vadd.f32 -0.28449672, %v3334_v31 }
 0xd6d   :  { %v3336_v17 = vmul.f32 %v4096_v56, %v3335_v21 }
 0xd6f   :  { %v3337_v40 = vadd.f32 0.2548296, %v3336_v17 }
 0xd71   :  { %v3338_v36 = vmul.f32 %v4096_v56, %v3337_v40 }
 0xd73   :  { %v3343_v51 = vmul.f32 %v4098_v12, %v3338_v36 }
 0xd75   :  { %v3344_v24 = vsub.f32 1.0, %v3343_v51 }
 0xd77   :  { %v3345_v27 = vmul.f32 %v3344_v24, %v3324_v60 }
 0xd79   :  { %v3346_v26 = vadd.f32 1.0, %v3345_v27 }
 0xd7b   :  { %v3347_v20 = vmul.f32 %v3346_v26, %v3321_v46 }
 0xd7d   :  { %3800 = vmatmul.mubr.msk.f32.vlgmr.msra.gmra.mrb[6].mxu1 %vm3357_vm3, %v3347_v20 }
 0xd7e   :  { %3804 = vmatprep.mubr.msk.f32.mxu1 %vm4130_vm1, %v4131_v7  ;;  %3803 = vmatpush3.msra.mxu1 %v3458_v39 }
 0xe50   :  { %v3427_v44 = vpop.f32.mrb[6].mxu1 }
 0xe51   :  { %v3428_v22 = vadd.f32 %v3620_v34, %v3427_v44  ;;  %v3801_v23 = vpop.f32.mrb[7].mxu1 }
 0xe53   :  { %v3432_v15 = vmul.f32 0.70710677, %v3428_v22  ;;  %v3431_v9 = vmul.f32 0.5, %v3428_v22 }
 0xe55   :  { %v3435_v43 = vand.u32 2147483647, %v3432_v15  ;;  %vm3433_vm4 = vcmp.ge.f32.partialorder %v3432_v15, 0.0 }
 0xe56   :  { %v3434_v10 = vsel %vm3433_vm4, 1.0, %v4132_v37 }
 0xe57   :  { %v3436_v48 = vmul.f32 0.3275911, %v3435_v43  ;;  %v3449_v45 = vsub.f32 0.0, %v3435_v43 }
 0xe59   :  { %v3437_v53 = vadd.f32 1.0, %v3436_v48  ;;  %v3450_v7 = vmul.f32 %v3449_v45, %v3435_v43 }
 0xe5b   :  { %4099 = vrcp.f32 %v3437_v53  ;;  %v3451_v29 = vmul.f32 1.442695, %v3450_v7 }
 0xe5d   :  { %4101 = vpow2.f32 %v3451_v29 }
 0xe65   :  { %v4100_v14 = vpop.eup %4099 }
 0xe66   :  { %v3440_v47 = vmul.f32 1.0614054, %v4100_v14 }
 0xe67   :  { %v4102_v2 = vpop.eup %4101 }
 0xe68   :  { %v3441_v42 = vadd.f32 -1.4531521, %v3440_v47 }
 0xe6a   :  { %v3442_v35 = vmul.f32 %v4100_v14, %v3441_v42 }
 0xe6c   :  { %v3443_v16 = vadd.f32 1.4214138, %v3442_v35 }
 0xe6e   :  { %v3444_v8 = vmul.f32 %v4100_v14, %v3443_v16 }
 0xe70   :  { %v3445_v61 = vadd.f32 -0.28449672, %v3444_v8 }
 0xe72   :  { %v3446_v3 = vmul.f32 %v4100_v14, %v3445_v61 }
 0xe74   :  { %v3447_v58 = vadd.f32 0.2548296, %v3446_v3 }
 0xe76   :  { %v3448_v55 = vmul.f32 %v4100_v14, %v3447_v58 }
 0xe78   :  { %v3453_v63 = vmul.f32 %v4102_v2, %v3448_v55 }
 0xe7a   :  { %v3454_v25 = vsub.f32 1.0, %v3453_v63 }
 0xe7c   :  { %v3455_v4 = vmul.f32 %v3454_v25, %v3434_v10 }
 0xe7e   :  { %v3456_v28 = vadd.f32 1.0, %v3455_v4 }
 0xe80   :  { %v3457_v11 = vmul.f32 %v3456_v28, %v3431_v9 }
 0xe82   :  { %3805 = vmatmul.mubr.msk.f32.vlgmr.msra.gmra.mrb[8].mxu1 %vm3466_vm6, %v3457_v11 }
 0xf55   :  { %v3536_v57 = vpop.f32.mrb[8].mxu1 }
 0xf56   :  { %v3537_v49 = vadd.f32 %v3622_v0, %v3536_v57  ;;  %v3806_v30 = vpop.f32.mrb[9].mxu1 }
 0xf58   :  { %3541 = vst.msk [vmem:[#allocation2] sm:$0x3] %vm3540_vm7, %v3537_v49 }
 0xf59   :  { %4114 = shalt.err (!%p4111_p4)
}
 0xf5a   :  { %s4115_s11 = scalar_lea.hbm %s5591_s21, 32 }
 0xf5b   :  { %p4116_p5 = scmp.ne.s32.totalorder %s5591_s21, %s4115_s11  ;;  %p4119_p6 = scmp.lt.u32.totalorder %s4115_s11, %s5591_s21 }
 0xf5d   :  { %p4121_p7 = pnand %p4119_p6, %p4116_p5 }
 0xf5f   :  { %4124 = shalt.err (!%p4121_p7)
}
 0xf60   :  { %3551 = dma.vmem_to_hbm [thread:$0]  %s3549_s7, 32, %s5591_s21, [#allocation3]  }
 0xf61   :  { %4125 = dma.done.wait [#allocation3], 32  }
 0xf62   :  { %4126 = vsyncadd [#allocation3], 4294967264 }
 0xf63   :  { %3555 = vsyncpa [#allocation3], 1 }

</bundles_post_ra>
